<compile_context>
chip_gen: v5e
topology: v5e:2x2
jax: 0.10.0
libtpu: 0.0.40
codegen_flags: <defaults>
</compile_context>

<pallas_src>
import functools

import jax
import jax.numpy as jnp
from jax import lax
from jax.experimental import pallas as pl
from jax.experimental.pallas import tpu as pltpu

# ---------------- scaled-down config consistent with the module -------------
IMG_DIM = 16          # module default 32 (scaled down for a small test)
IN_CH = 2
PATCH = 4
EMBED = 48            # module default 216 (scaled down); divisible by n_heads
HEADS = 6
HEAD_DIM = EMBED // HEADS
MLP_FACTOR = 2
N_BLOCKS = 2
N_CLASSES = 2
N_PATCHES = (IMG_DIM // PATCH) ** 2
SEQ = 1 + N_PATCHES
PATCH_VEC = IN_CH * PATCH * PATCH
LN_EPS = 1e-6         # ViT Block uses LayerNorm(dim, eps=1e-6)
LOGIT_PAD = 128       # lane-dense padded width of the classifier output

# rows of the packed (8, EMBED) bias/scale vector operand
ROW_LN1G, ROW_LN1B, ROW_BO, ROW_LN2G, ROW_LN2B, ROW_B2 = 0, 1, 2, 3, 4, 5
VEC_ROWS = 8          # pad to a full sublane group


# ---------------- in-kernel helpers -----------------------------------------
def _gelu(x):
    # tanh-approx GELU: the tanh rides the EUP slot (essentially free).
    c = 0.7978845608028654  # sqrt(2/pi)
    return 0.5 * x * (1.0 + jnp.tanh(c * (x + 0.044715 * x * x * x)))


def _layernorm(x, g, b):
    mu = jnp.mean(x, axis=-1, keepdims=True)
    var = jnp.mean(jnp.square(x - mu), axis=-1, keepdims=True)
    return (x - mu) * lax.rsqrt(var + LN_EPS) * g + b


# ---------------- fused ViT forward kernel (B_TILE images per step) ---------
def _vit_fused_kernel(b_tile, patches_ref, addb_ref, vecs_ref, w_patch_ref,
                      wqkv_ref, wo_ref, w1_ref, b1_ref, w2_ref,
                      w_head_ref, b_head_ref, o_ref):
    bf16 = jnp.bfloat16
    f32 = jnp.float32
    m = b_tile * SEQ                                   # batch folded into M

    ln1g = vecs_ref[ROW_LN1G:ROW_LN1G + 1, :]
    ln1b = vecs_ref[ROW_LN1B:ROW_LN1B + 1, :]
    bo = vecs_ref[ROW_BO:ROW_BO + 1, :]
    ln2g = vecs_ref[ROW_LN2G:ROW_LN2G + 1, :]
    ln2b = vecs_ref[ROW_LN2B:ROW_LN2B + 1, :]
    b2 = vecs_ref[ROW_B2:ROW_B2 + 1, :]

    # ---- PatchEmbed + cls token + positional embedding -----------------
    # patches_ref row 0 of each image is a zero "cls" patch; the conv bias,
    # cls token and positional embedding are all pre-folded into addb_ref.
    pe = patches_ref[...].reshape(m, PATCH_VEC)                      # bf16
    x = jnp.dot(pe, w_patch_ref[...], preferred_element_type=f32) \
        + addb_ref[...]                                              # (m, D) f32

    scale = HEAD_DIM ** -0.5
    # The PyTorch module applies the SAME Block n_blocks times (shared
    # weights), so one VMEM-resident weight set is reused here.
    for _ in range(N_BLOCKS):
        # ---- LN1 + multi-head self-attention (qkv_bias=False, p=0.0) ----
        xn = _layernorm(x, ln1g, ln1b)
        qkv = jnp.dot(xn.astype(bf16), wqkv_ref[...],
                      preferred_element_type=f32)                    # (m, 3D)
        qkv3 = qkv.astype(bf16).reshape(b_tile, SEQ, 3 * EMBED)      # cast once
        ctx_heads = []
        for h in range(HEADS):
            q_h = qkv3[:, :, h * HEAD_DIM:(h + 1) * HEAD_DIM]
            k_h = qkv3[:, :, EMBED + h * HEAD_DIM:
                        EMBED + (h + 1) * HEAD_DIM]
            v_h = qkv3[:, :, 2 * EMBED + h * HEAD_DIM:
                        2 * EMBED + (h + 1) * HEAD_DIM]
            s_h = lax.dot_general(q_h, k_h, (((2,), (2,)), ((0,), (0,))),
                                  preferred_element_type=f32) * scale  # (b,S,S)
            s_h = s_h - jnp.max(s_h, axis=-1, keepdims=True)
            e = jnp.exp(s_h)
            attn = e * pl.reciprocal(jnp.sum(e, axis=-1, keepdims=True),
                                     approx=True)
            ctx_heads.append(
                lax.dot_general(attn.astype(bf16), v_h,
                                (((2,), (1,)), ((0,), (0,))),
                                preferred_element_type=f32))          # (b,S,hd)
        # reassemble (b, S, H*hd) -> one dense K=D output projection
        ctx = jnp.concatenate(ctx_heads, axis=-1).reshape(m, EMBED)
        x = x + jnp.dot(ctx.astype(bf16), wo_ref[...],
                        preferred_element_type=f32) + bo

        # ---- LN2 + MLP: Linear(D, 2D) -> GELU -> Linear(2D, D) ----
        xn2 = _layernorm(x, ln2g, ln2b)
        h1 = _gelu(jnp.dot(xn2.astype(bf16), w1_ref[...],
                           preferred_element_type=f32) + b1_ref[...])
        x = x + jnp.dot(h1.astype(bf16), w2_ref[...],
                        preferred_element_type=f32) + b2

    # ---- classifier head on the cls tokens; lane-dense (128-wide) output ---
    cls_tok = x.reshape(b_tile, SEQ, EMBED)[:, 0, :].astype(bf16)    # (b, D)
    logits = jnp.dot(cls_tok, w_head_ref[...],
                     preferred_element_type=f32) + b_head_ref[...]   # (b, 128)
    o_ref[0] = logits


# ---------------- glue: im2col for the stride-P conv (wrapper-side layout) --
def extract_patches(x, p):
    n, c, hh, ww = x.shape
    x = x.reshape(n, c, hh // p, p, ww // p, p)
    x = x.transpose(0, 2, 4, 1, 3, 5)               # N, H/P, W/P, C, P, P
    return x.reshape(n, (hh // p) * (ww // p), c * p * p)


# ---------------- full forward pass ------------------------------------------
def vision_transformer(x, params, b_tile=None):
    n = x.shape[0]
    if b_tile is None:
        # keep >= 2 grid steps so both v7x TensorCores get work; at larger
        # batches 8 images per step fills MXU sublanes (M = 8*17 = 136).
        b_tile = min(8, max(1, n // 2))
    grid_len = -(-n // b_tile)
    padded_n = grid_len * b_tile

    # im2col (stride-P conv == matmul), wrapper-side bf16 cast (half the
    # streamed DMA bytes), plus a zero "cls" patch row per image so the cls
    # token rides the same patch-embed matmul.
    patches = extract_patches(x, PATCH).astype(jnp.bfloat16)
    patches = jnp.pad(patches, ((0, padded_n - n), (1, 0), (0, 0)))

    blk = params["block"]
    # pre-fold conv bias + cls token + positional embedding into one additive
    # term: row 0 -> cls + pos[0]; rows 1.. -> pos[i] + b_patch.
    pos = params["pos"][0]                              # (SEQ, D)
    cls = params["cls"][0]                              # (1, D)
    addb = jnp.concatenate([cls + pos[0:1],
                            pos[1:] + params["b_patch"]], axis=0)
    addb_tiled = jnp.tile(addb, (b_tile, 1))            # (b_tile*SEQ, D)

    # pack all (1, EMBED) f32 bias/scale vectors into one sublane-aligned ref
    vecs = jnp.zeros((VEC_ROWS, EMBED), jnp.float32)
    for row, v in ((ROW_LN1G, blk["ln1_g"]), (ROW_LN1B, blk["ln1_b"]),
                   (ROW_BO, blk["bo"]), (ROW_LN2G, blk["ln2_g"]),
                   (ROW_LN2B, blk["ln2_b"]), (ROW_B2, blk["b2"])):
        vecs = vecs.at[row:row + 1, :].set(v)

    weights = [addb_tiled, vecs, params["w_patch"], blk["wqkv"], blk["wo"],
               blk["w1"], blk["b1"], blk["w2"],
               params["w_head"], params["b_head"]]

    in_specs = [pl.BlockSpec((b_tile, SEQ, PATCH_VEC), lambda g: (g, 0, 0))]
    for a in weights:
        # full-array blocks, constant index map -> weights stay VMEM-resident
        in_specs.append(pl.BlockSpec(a.shape, lambda g, nd=a.ndim: (0,) * nd))

    out = pl.pallas_call(
        functools.partial(_vit_fused_kernel, b_tile),
        out_shape=jax.ShapeDtypeStruct((grid_len, b_tile, LOGIT_PAD),
                                       jnp.float32),
        grid=(grid_len,),
        in_specs=in_specs,
        out_specs=pl.BlockSpec((1, b_tile, LOGIT_PAD), lambda g: (g, 0, 0)),
        compiler_params=pltpu.CompilerParams(
            dimension_semantics=("parallel",)),
    )(patches, *weights)
    return out.reshape(padded_n, LOGIT_PAD)[:n, :N_CLASSES]   # (N, n_classes)


# ---------------- deterministic parameter initialization ---------------------
def init_params(key):
    keys = jax.random.split(key, 16)

    def nrm(k, shape, scale=0.02):
        return (scale * jax.random.normal(k, shape)).astype(jnp.float32)

    wq = nrm(keys[2], (EMBED, EMBED))
    wk = nrm(keys[3], (EMBED, EMBED))
    wv = nrm(keys[4], (EMBED, EMBED))
    # (D, 3D): columns [Q | K | V], head h = cols h*hd:(h+1)*hd within each.
    wqkv = jnp.concatenate([wq, wk, wv], axis=1)

    w_head = nrm(keys[11], (EMBED, N_CLASSES))
    b_head = nrm(keys[12], (1, N_CLASSES))
    w_head_pad = jnp.zeros((EMBED, LOGIT_PAD), jnp.float32).at[:, :N_CLASSES].set(w_head)
    b_head_pad = jnp.zeros((1, LOGIT_PAD), jnp.float32).at[:, :N_CLASSES].set(b_head)

    block = {
        "ln1_g": jnp.ones((1, EMBED), jnp.float32),          # LayerNorm init
        "ln1_b": jnp.zeros((1, EMBED), jnp.float32),
        "wqkv": wqkv.astype(jnp.bfloat16),                   # (D, 3D)
        "wo": nrm(keys[5], (EMBED, EMBED)).astype(jnp.bfloat16),
        "bo": nrm(keys[6], (1, EMBED)),
        "ln2_g": jnp.ones((1, EMBED), jnp.float32),
        "ln2_b": jnp.zeros((1, EMBED), jnp.float32),
        "w1": nrm(keys[7], (EMBED, MLP_FACTOR * EMBED)).astype(jnp.bfloat16),
        "b1": nrm(keys[8], (1, MLP_FACTOR * EMBED)),
        "w2": nrm(keys[9], (MLP_FACTOR * EMBED, EMBED)).astype(jnp.bfloat16),
        "b2": nrm(keys[10], (1, EMBED)),
    }
    return {
        "w_patch": nrm(keys[0], (PATCH_VEC, EMBED)).astype(jnp.bfloat16),
        "b_patch": nrm(keys[1], (1, EMBED)),
        "cls": jnp.ones((1, 1, EMBED), jnp.float32),          # torch.ones init
        "pos": jnp.ones((1, SEQ, EMBED), jnp.float32),        # torch.ones init
        "block": block,
        "w_head": w_head_pad.astype(jnp.bfloat16),
        "b_head": b_head_pad,
    }


if __name__ == "__main__":
    key = jax.random.PRNGKey(0)
    kx, kp = jax.random.split(key)
    x = jax.random.normal(kx, (2, IN_CH, IMG_DIM, IMG_DIM), dtype=jnp.float32)
    params = init_params(kp)
    out = jax.jit(vision_transformer)(x, params)
    jax.block_until_ready(out)
    assert out.shape == (2, N_CLASSES) and out.dtype == jnp.float32
    print("KERNEL_OK")
</pallas_src>

<mosaic_0001>
module attributes {stable_mosaic.version = 11 : i64} {
  func.func @_vit_fused_kernel(%arg0: i32, %arg1: memref<1x17x32xbf16, #tpu.memory_space<vmem>>, %arg2: memref<17x48xf32, #tpu.memory_space<vmem>>, %arg3: memref<8x48xf32, #tpu.memory_space<vmem>>, %arg4: memref<32x48xbf16, #tpu.memory_space<vmem>>, %arg5: memref<48x144xbf16, #tpu.memory_space<vmem>>, %arg6: memref<48x48xbf16, #tpu.memory_space<vmem>>, %arg7: memref<48x96xbf16, #tpu.memory_space<vmem>>, %arg8: memref<1x96xf32, #tpu.memory_space<vmem>>, %arg9: memref<96x48xbf16, #tpu.memory_space<vmem>>, %arg10: memref<48x128xbf16, #tpu.memory_space<vmem>>, %arg11: memref<1x128xf32, #tpu.memory_space<vmem>>, %arg12: memref<1x1x128xf32, #tpu.memory_space<vmem>>) attributes {dimension_semantics = [#tpu.dimension_semantics<parallel>], iteration_bounds = array<i64: 2>, scalar_prefetch = 0 : i64, scratch_operands = 0 : i64, tpu.core_type = #tpu.core_type<tc>, window_params = [{transform_indices = @transform_0, window_bounds = array<i64: 1, 17, 32>}, {pipeline_mode = #tpu.pipeline_mode<synchronous>, transform_indices = @transform_1, window_bounds = array<i64: 17, 48>}, {pipeline_mode = #tpu.pipeline_mode<synchronous>, transform_indices = @transform_2, window_bounds = array<i64: 8, 48>}, {pipeline_mode = #tpu.pipeline_mode<synchronous>, transform_indices = @transform_3, window_bounds = array<i64: 32, 48>}, {pipeline_mode = #tpu.pipeline_mode<synchronous>, transform_indices = @transform_4, window_bounds = array<i64: 48, 144>}, {pipeline_mode = #tpu.pipeline_mode<synchronous>, transform_indices = @transform_5, window_bounds = array<i64: 48, 48>}, {pipeline_mode = #tpu.pipeline_mode<synchronous>, transform_indices = @transform_6, window_bounds = array<i64: 48, 96>}, {pipeline_mode = #tpu.pipeline_mode<synchronous>, transform_indices = @transform_7, window_bounds = array<i64: 1, 96>}, {pipeline_mode = #tpu.pipeline_mode<synchronous>, transform_indices = @transform_8, window_bounds = array<i64: 96, 48>}, {pipeline_mode = #tpu.pipeline_mode<synchronous>, transform_indices = @transform_9, window_bounds = array<i64: 48, 128>}, {pipeline_mode = #tpu.pipeline_mode<synchronous>, transform_indices = @transform_10, window_bounds = array<i64: 1, 128>}, {transform_indices = @transform_11, window_bounds = array<i64: 1, 1, 128>}]} {
    %c0 = arith.constant 0 : index
    %c0_0 = arith.constant 0 : index
    %0 = vector.load %arg3[%c0, %c0_0] : memref<8x48xf32, #tpu.memory_space<vmem>>, vector<1x48xf32>
    %c1 = arith.constant 1 : index
    %c0_1 = arith.constant 0 : index
    %1 = vector.load %arg3[%c1, %c0_1] : memref<8x48xf32, #tpu.memory_space<vmem>>, vector<1x48xf32>
    %c2 = arith.constant 2 : index
    %c0_2 = arith.constant 0 : index
    %2 = vector.load %arg3[%c2, %c0_2] : memref<8x48xf32, #tpu.memory_space<vmem>>, vector<1x48xf32>
    %c3 = arith.constant 3 : index
    %c0_3 = arith.constant 0 : index
    %3 = vector.load %arg3[%c3, %c0_3] : memref<8x48xf32, #tpu.memory_space<vmem>>, vector<1x48xf32>
    %c4 = arith.constant 4 : index
    %c0_4 = arith.constant 0 : index
    %4 = vector.load %arg3[%c4, %c0_4] : memref<8x48xf32, #tpu.memory_space<vmem>>, vector<1x48xf32>
    %c5 = arith.constant 5 : index
    %c0_5 = arith.constant 0 : index
    %5 = vector.load %arg3[%c5, %c0_5] : memref<8x48xf32, #tpu.memory_space<vmem>>, vector<1x48xf32>
    %c0_6 = arith.constant 0 : index
    %c0_7 = arith.constant 0 : index
    %c0_8 = arith.constant 0 : index
    %6 = vector.load %arg1[%c0_6, %c0_7, %c0_8] : memref<1x17x32xbf16, #tpu.memory_space<vmem>>, vector<1x17x32xbf16>
    %7 = vector.shape_cast %6 : vector<1x17x32xbf16> to vector<17x32xbf16>
    %c0_9 = arith.constant 0 : index
    %c0_10 = arith.constant 0 : index
    %8 = vector.load %arg4[%c0_9, %c0_10] : memref<32x48xbf16, #tpu.memory_space<vmem>>, vector<32x48xbf16>
    %cst = arith.constant dense<0.000000e+00> : vector<17x48xf32>
    %9 = tpu.matmul %7, %8, %cst {dimension_numbers = #tpu.dot_dimension_numbers<[1], [0], [0], [1], [0, 0, 1, 1], [], []>} : vector<17x32xbf16>, vector<32x48xbf16>, vector<17x48xf32> -> vector<17x48xf32>
    %c0_11 = arith.constant 0 : index
    %c0_12 = arith.constant 0 : index
    %10 = vector.load %arg2[%c0_11, %c0_12] : memref<17x48xf32, #tpu.memory_space<vmem>>, vector<17x48xf32>
    %11 = arith.addf %9, %10 : vector<17x48xf32>
    %cst_13 = arith.constant dense<0.000000e+00> : vector<17xf32>
    %12 = vector.multi_reduction <add>, %11, %cst_13 [1] : vector<17x48xf32> to vector<17xf32>
    %13 = vector.shape_cast %12 : vector<17xf32> to vector<17x1xf32>
    %cst_14 = arith.constant 4.800000e+01 : f32
    %14 = vector.broadcast %cst_14 : f32 to vector<17x1xf32>
    %15 = arith.divf %13, %14 : vector<17x1xf32>
    %16 = vector.broadcast %15 : vector<17x1xf32> to vector<17x48xf32>
    %17 = arith.subf %11, %16 : vector<17x48xf32>
    %18 = arith.mulf %17, %17 : vector<17x48xf32>
    %cst_15 = arith.constant dense<0.000000e+00> : vector<17xf32>
    %19 = vector.multi_reduction <add>, %18, %cst_15 [1] : vector<17x48xf32> to vector<17xf32>
    %20 = vector.shape_cast %19 : vector<17xf32> to vector<17x1xf32>
    %cst_16 = arith.constant 4.800000e+01 : f32
    %21 = vector.broadcast %cst_16 : f32 to vector<17x1xf32>
    %22 = arith.divf %20, %21 : vector<17x1xf32>
    %23 = vector.broadcast %15 : vector<17x1xf32> to vector<17x48xf32>
    %24 = arith.subf %11, %23 : vector<17x48xf32>
    %cst_17 = arith.constant 9.99999997E-7 : f32
    %25 = vector.broadcast %cst_17 : f32 to vector<17x1xf32>
    %26 = arith.addf %22, %25 : vector<17x1xf32>
    %27 = math.rsqrt %26 : vector<17x1xf32>
    %28 = vector.broadcast %27 : vector<17x1xf32> to vector<17x48xf32>
    %29 = arith.mulf %24, %28 : vector<17x48xf32>
    %30 = vector.broadcast %0 : vector<1x48xf32> to vector<17x48xf32>
    %31 = arith.mulf %29, %30 : vector<17x48xf32>
    %32 = vector.broadcast %1 : vector<1x48xf32> to vector<17x48xf32>
    %33 = arith.addf %31, %32 : vector<17x48xf32>
    %34 = arith.truncf %33 : vector<17x48xf32> to vector<17x48xbf16>
    %c0_18 = arith.constant 0 : index
    %c0_19 = arith.constant 0 : index
    %35 = vector.load %arg5[%c0_18, %c0_19] : memref<48x144xbf16, #tpu.memory_space<vmem>>, vector<48x144xbf16>
    %cst_20 = arith.constant dense<0.000000e+00> : vector<17x144xf32>
    %36 = tpu.matmul %34, %35, %cst_20 {dimension_numbers = #tpu.dot_dimension_numbers<[1], [0], [0], [1], [0, 0, 1, 1], [], []>} : vector<17x48xbf16>, vector<48x144xbf16>, vector<17x144xf32> -> vector<17x144xf32>
    %37 = arith.truncf %36 : vector<17x144xf32> to vector<17x144xbf16>
    %38 = vector.shape_cast %37 : vector<17x144xbf16> to vector<1x17x144xbf16>
    %39 = vector.extract_strided_slice %38 {offsets = [0, 0, 0], sizes = [1, 17, 8], strides = [1, 1, 1]} : vector<1x17x144xbf16> to vector<1x17x8xbf16>
    %40 = vector.extract_strided_slice %38 {offsets = [0, 0, 48], sizes = [1, 17, 8], strides = [1, 1, 1]} : vector<1x17x144xbf16> to vector<1x17x8xbf16>
    %41 = vector.extract_strided_slice %38 {offsets = [0, 0, 96], sizes = [1, 17, 8], strides = [1, 1, 1]} : vector<1x17x144xbf16> to vector<1x17x8xbf16>
    %cst_21 = arith.constant dense<0.000000e+00> : vector<1x17x17xf32>
    %42 = tpu.matmul %39, %40, %cst_21 {dimension_numbers = #tpu.dot_dimension_numbers<[2], [2], [1], [1], [0, 0, 0, 1, 1, 1], [0], [0]>} : vector<1x17x8xbf16>, vector<1x17x8xbf16>, vector<1x17x17xf32> -> vector<1x17x17xf32>
    %cst_22 = arith.constant 0.353553385 : f32
    %43 = vector.broadcast %cst_22 : f32 to vector<1x17x17xf32>
    %44 = arith.mulf %42, %43 : vector<1x17x17xf32>
    %cst_23 = arith.constant dense<0xFF800000> : vector<1x17xf32>
    %45 = vector.multi_reduction <maximumf>, %44, %cst_23 [2] : vector<1x17x17xf32> to vector<1x17xf32>
    %46 = vector.shape_cast %45 : vector<1x17xf32> to vector<1x17x1xf32>
    %47 = vector.broadcast %46 : vector<1x17x1xf32> to vector<1x17x17xf32>
    %48 = arith.subf %44, %47 : vector<1x17x17xf32>
    %49 = math.exp %48 : vector<1x17x17xf32>
    %cst_24 = arith.constant dense<0.000000e+00> : vector<1x17xf32>
    %50 = vector.multi_reduction <add>, %49, %cst_24 [2] : vector<1x17x17xf32> to vector<1x17xf32>
    %51 = vector.shape_cast %50 : vector<1x17xf32> to vector<1x17x1xf32>
    %52 = tpu.reciprocal %51 {approx = true} : vector<1x17x1xf32> -> vector<1x17x1xf32>
    %53 = vector.broadcast %52 : vector<1x17x1xf32> to vector<1x17x17xf32>
    %54 = arith.mulf %49, %53 : vector<1x17x17xf32>
    %55 = arith.truncf %54 : vector<1x17x17xf32> to vector<1x17x17xbf16>
    %cst_25 = arith.constant dense<0.000000e+00> : vector<1x17x8xf32>
    %56 = tpu.matmul %55, %41, %cst_25 {dimension_numbers = #tpu.dot_dimension_numbers<[2], [1], [1], [2], [0, 0, 0, 1, 1, 2], [0], [0]>} : vector<1x17x17xbf16>, vector<1x17x8xbf16>, vector<1x17x8xf32> -> vector<1x17x8xf32>
    %57 = vector.extract_strided_slice %38 {offsets = [0, 0, 8], sizes = [1, 17, 8], strides = [1, 1, 1]} : vector<1x17x144xbf16> to vector<1x17x8xbf16>
    %58 = vector.extract_strided_slice %38 {offsets = [0, 0, 56], sizes = [1, 17, 8], strides = [1, 1, 1]} : vector<1x17x144xbf16> to vector<1x17x8xbf16>
    %59 = vector.extract_strided_slice %38 {offsets = [0, 0, 104], sizes = [1, 17, 8], strides = [1, 1, 1]} : vector<1x17x144xbf16> to vector<1x17x8xbf16>
    %cst_26 = arith.constant dense<0.000000e+00> : vector<1x17x17xf32>
    %60 = tpu.matmul %57, %58, %cst_26 {dimension_numbers = #tpu.dot_dimension_numbers<[2], [2], [1], [1], [0, 0, 0, 1, 1, 1], [0], [0]>} : vector<1x17x8xbf16>, vector<1x17x8xbf16>, vector<1x17x17xf32> -> vector<1x17x17xf32>
    %cst_27 = arith.constant 0.353553385 : f32
    %61 = vector.broadcast %cst_27 : f32 to vector<1x17x17xf32>
    %62 = arith.mulf %60, %61 : vector<1x17x17xf32>
    %cst_28 = arith.constant dense<0xFF800000> : vector<1x17xf32>
    %63 = vector.multi_reduction <maximumf>, %62, %cst_28 [2] : vector<1x17x17xf32> to vector<1x17xf32>
    %64 = vector.shape_cast %63 : vector<1x17xf32> to vector<1x17x1xf32>
    %65 = vector.broadcast %64 : vector<1x17x1xf32> to vector<1x17x17xf32>
    %66 = arith.subf %62, %65 : vector<1x17x17xf32>
    %67 = math.exp %66 : vector<1x17x17xf32>
    %cst_29 = arith.constant dense<0.000000e+00> : vector<1x17xf32>
    %68 = vector.multi_reduction <add>, %67, %cst_29 [2] : vector<1x17x17xf32> to vector<1x17xf32>
    %69 = vector.shape_cast %68 : vector<1x17xf32> to vector<1x17x1xf32>
    %70 = tpu.reciprocal %69 {approx = true} : vector<1x17x1xf32> -> vector<1x17x1xf32>
    %71 = vector.broadcast %70 : vector<1x17x1xf32> to vector<1x17x17xf32>
    %72 = arith.mulf %67, %71 : vector<1x17x17xf32>
    %73 = arith.truncf %72 : vector<1x17x17xf32> to vector<1x17x17xbf16>
    %cst_30 = arith.constant dense<0.000000e+00> : vector<1x17x8xf32>
    %74 = tpu.matmul %73, %59, %cst_30 {dimension_numbers = #tpu.dot_dimension_numbers<[2], [1], [1], [2], [0, 0, 0, 1, 1, 2], [0], [0]>} : vector<1x17x17xbf16>, vector<1x17x8xbf16>, vector<1x17x8xf32> -> vector<1x17x8xf32>
    %75 = vector.extract_strided_slice %38 {offsets = [0, 0, 16], sizes = [1, 17, 8], strides = [1, 1, 1]} : vector<1x17x144xbf16> to vector<1x17x8xbf16>
    %76 = vector.extract_strided_slice %38 {offsets = [0, 0, 64], sizes = [1, 17, 8], strides = [1, 1, 1]} : vector<1x17x144xbf16> to vector<1x17x8xbf16>
    %77 = vector.extract_strided_slice %38 {offsets = [0, 0, 112], sizes = [1, 17, 8], strides = [1, 1, 1]} : vector<1x17x144xbf16> to vector<1x17x8xbf16>
    %cst_31 = arith.constant dense<0.000000e+00> : vector<1x17x17xf32>
    %78 = tpu.matmul %75, %76, %cst_31 {dimension_numbers = #tpu.dot_dimension_numbers<[2], [2], [1], [1], [0, 0, 0, 1, 1, 1], [0], [0]>} : vector<1x17x8xbf16>, vector<1x17x8xbf16>, vector<1x17x17xf32> -> vector<1x17x17xf32>
    %cst_32 = arith.constant 0.353553385 : f32
    %79 = vector.broadcast %cst_32 : f32 to vector<1x17x17xf32>
    %80 = arith.mulf %78, %79 : vector<1x17x17xf32>
    %cst_33 = arith.constant dense<0xFF800000> : vector<1x17xf32>
    %81 = vector.multi_reduction <maximumf>, %80, %cst_33 [2] : vector<1x17x17xf32> to vector<1x17xf32>
    %82 = vector.shape_cast %81 : vector<1x17xf32> to vector<1x17x1xf32>
    %83 = vector.broadcast %82 : vector<1x17x1xf32> to vector<1x17x17xf32>
    %84 = arith.subf %80, %83 : vector<1x17x17xf32>
    %85 = math.exp %84 : vector<1x17x17xf32>
    %cst_34 = arith.constant dense<0.000000e+00> : vector<1x17xf32>
    %86 = vector.multi_reduction <add>, %85, %cst_34 [2] : vector<1x17x17xf32> to vector<1x17xf32>
    %87 = vector.shape_cast %86 : vector<1x17xf32> to vector<1x17x1xf32>
    %88 = tpu.reciprocal %87 {approx = true} : vector<1x17x1xf32> -> vector<1x17x1xf32>
    %89 = vector.broadcast %88 : vector<1x17x1xf32> to vector<1x17x17xf32>
    %90 = arith.mulf %85, %89 : vector<1x17x17xf32>
    %91 = arith.truncf %90 : vector<1x17x17xf32> to vector<1x17x17xbf16>
    %cst_35 = arith.constant dense<0.000000e+00> : vector<1x17x8xf32>
    %92 = tpu.matmul %91, %77, %cst_35 {dimension_numbers = #tpu.dot_dimension_numbers<[2], [1], [1], [2], [0, 0, 0, 1, 1, 2], [0], [0]>} : vector<1x17x17xbf16>, vector<1x17x8xbf16>, vector<1x17x8xf32> -> vector<1x17x8xf32>
    %93 = vector.extract_strided_slice %38 {offsets = [0, 0, 24], sizes = [1, 17, 8], strides = [1, 1, 1]} : vector<1x17x144xbf16> to vector<1x17x8xbf16>
    %94 = vector.extract_strided_slice %38 {offsets = [0, 0, 72], sizes = [1, 17, 8], strides = [1, 1, 1]} : vector<1x17x144xbf16> to vector<1x17x8xbf16>
    %95 = vector.extract_strided_slice %38 {offsets = [0, 0, 120], sizes = [1, 17, 8], strides = [1, 1, 1]} : vector<1x17x144xbf16> to vector<1x17x8xbf16>
    %cst_36 = arith.constant dense<0.000000e+00> : vector<1x17x17xf32>
    %96 = tpu.matmul %93, %94, %cst_36 {dimension_numbers = #tpu.dot_dimension_numbers<[2], [2], [1], [1], [0, 0, 0, 1, 1, 1], [0], [0]>} : vector<1x17x8xbf16>, vector<1x17x8xbf16>, vector<1x17x17xf32> -> vector<1x17x17xf32>
    %cst_37 = arith.constant 0.353553385 : f32
    %97 = vector.broadcast %cst_37 : f32 to vector<1x17x17xf32>
    %98 = arith.mulf %96, %97 : vector<1x17x17xf32>
    %cst_38 = arith.constant dense<0xFF800000> : vector<1x17xf32>
    %99 = vector.multi_reduction <maximumf>, %98, %cst_38 [2] : vector<1x17x17xf32> to vector<1x17xf32>
    %100 = vector.shape_cast %99 : vector<1x17xf32> to vector<1x17x1xf32>
    %101 = vector.broadcast %100 : vector<1x17x1xf32> to vector<1x17x17xf32>
    %102 = arith.subf %98, %101 : vector<1x17x17xf32>
    %103 = math.exp %102 : vector<1x17x17xf32>
    %cst_39 = arith.constant dense<0.000000e+00> : vector<1x17xf32>
    %104 = vector.multi_reduction <add>, %103, %cst_39 [2] : vector<1x17x17xf32> to vector<1x17xf32>
    %105 = vector.shape_cast %104 : vector<1x17xf32> to vector<1x17x1xf32>
    %106 = tpu.reciprocal %105 {approx = true} : vector<1x17x1xf32> -> vector<1x17x1xf32>
    %107 = vector.broadcast %106 : vector<1x17x1xf32> to vector<1x17x17xf32>
    %108 = arith.mulf %103, %107 : vector<1x17x17xf32>
    %109 = arith.truncf %108 : vector<1x17x17xf32> to vector<1x17x17xbf16>
    %cst_40 = arith.constant dense<0.000000e+00> : vector<1x17x8xf32>
    %110 = tpu.matmul %109, %95, %cst_40 {dimension_numbers = #tpu.dot_dimension_numbers<[2], [1], [1], [2], [0, 0, 0, 1, 1, 2], [0], [0]>} : vector<1x17x17xbf16>, vector<1x17x8xbf16>, vector<1x17x8xf32> -> vector<1x17x8xf32>
    %111 = vector.extract_strided_slice %38 {offsets = [0, 0, 32], sizes = [1, 17, 8], strides = [1, 1, 1]} : vector<1x17x144xbf16> to vector<1x17x8xbf16>
    %112 = vector.extract_strided_slice %38 {offsets = [0, 0, 80], sizes = [1, 17, 8], strides = [1, 1, 1]} : vector<1x17x144xbf16> to vector<1x17x8xbf16>
    %113 = vector.extract_strided_slice %38 {offsets = [0, 0, 128], sizes = [1, 17, 8], strides = [1, 1, 1]} : vector<1x17x144xbf16> to vector<1x17x8xbf16>
    %cst_41 = arith.constant dense<0.000000e+00> : vector<1x17x17xf32>
    %114 = tpu.matmul %111, %112, %cst_41 {dimension_numbers = #tpu.dot_dimension_numbers<[2], [2], [1], [1], [0, 0, 0, 1, 1, 1], [0], [0]>} : vector<1x17x8xbf16>, vector<1x17x8xbf16>, vector<1x17x17xf32> -> vector<1x17x17xf32>
    %cst_42 = arith.constant 0.353553385 : f32
    %115 = vector.broadcast %cst_42 : f32 to vector<1x17x17xf32>
    %116 = arith.mulf %114, %115 : vector<1x17x17xf32>
    %cst_43 = arith.constant dense<0xFF800000> : vector<1x17xf32>
    %117 = vector.multi_reduction <maximumf>, %116, %cst_43 [2] : vector<1x17x17xf32> to vector<1x17xf32>
    %118 = vector.shape_cast %117 : vector<1x17xf32> to vector<1x17x1xf32>
    %119 = vector.broadcast %118 : vector<1x17x1xf32> to vector<1x17x17xf32>
    %120 = arith.subf %116, %119 : vector<1x17x17xf32>
    %121 = math.exp %120 : vector<1x17x17xf32>
    %cst_44 = arith.constant dense<0.000000e+00> : vector<1x17xf32>
    %122 = vector.multi_reduction <add>, %121, %cst_44 [2] : vector<1x17x17xf32> to vector<1x17xf32>
    %123 = vector.shape_cast %122 : vector<1x17xf32> to vector<1x17x1xf32>
    %124 = tpu.reciprocal %123 {approx = true} : vector<1x17x1xf32> -> vector<1x17x1xf32>
    %125 = vector.broadcast %124 : vector<1x17x1xf32> to vector<1x17x17xf32>
    %126 = arith.mulf %121, %125 : vector<1x17x17xf32>
    %127 = arith.truncf %126 : vector<1x17x17xf32> to vector<1x17x17xbf16>
    %cst_45 = arith.constant dense<0.000000e+00> : vector<1x17x8xf32>
    %128 = tpu.matmul %127, %113, %cst_45 {dimension_numbers = #tpu.dot_dimension_numbers<[2], [1], [1], [2], [0, 0, 0, 1, 1, 2], [0], [0]>} : vector<1x17x17xbf16>, vector<1x17x8xbf16>, vector<1x17x8xf32> -> vector<1x17x8xf32>
    %129 = vector.extract_strided_slice %38 {offsets = [0, 0, 40], sizes = [1, 17, 8], strides = [1, 1, 1]} : vector<1x17x144xbf16> to vector<1x17x8xbf16>
    %130 = vector.extract_strided_slice %38 {offsets = [0, 0, 88], sizes = [1, 17, 8], strides = [1, 1, 1]} : vector<1x17x144xbf16> to vector<1x17x8xbf16>
    %131 = vector.extract_strided_slice %38 {offsets = [0, 0, 136], sizes = [1, 17, 8], strides = [1, 1, 1]} : vector<1x17x144xbf16> to vector<1x17x8xbf16>
    %cst_46 = arith.constant dense<0.000000e+00> : vector<1x17x17xf32>
    %132 = tpu.matmul %129, %130, %cst_46 {dimension_numbers = #tpu.dot_dimension_numbers<[2], [2], [1], [1], [0, 0, 0, 1, 1, 1], [0], [0]>} : vector<1x17x8xbf16>, vector<1x17x8xbf16>, vector<1x17x17xf32> -> vector<1x17x17xf32>
    %cst_47 = arith.constant 0.353553385 : f32
    %133 = vector.broadcast %cst_47 : f32 to vector<1x17x17xf32>
    %134 = arith.mulf %132, %133 : vector<1x17x17xf32>
    %cst_48 = arith.constant dense<0xFF800000> : vector<1x17xf32>
    %135 = vector.multi_reduction <maximumf>, %134, %cst_48 [2] : vector<1x17x17xf32> to vector<1x17xf32>
    %136 = vector.shape_cast %135 : vector<1x17xf32> to vector<1x17x1xf32>
    %137 = vector.broadcast %136 : vector<1x17x1xf32> to vector<1x17x17xf32>
    %138 = arith.subf %134, %137 : vector<1x17x17xf32>
    %139 = math.exp %138 : vector<1x17x17xf32>
    %cst_49 = arith.constant dense<0.000000e+00> : vector<1x17xf32>
    %140 = vector.multi_reduction <add>, %139, %cst_49 [2] : vector<1x17x17xf32> to vector<1x17xf32>
    %141 = vector.shape_cast %140 : vector<1x17xf32> to vector<1x17x1xf32>
    %142 = tpu.reciprocal %141 {approx = true} : vector<1x17x1xf32> -> vector<1x17x1xf32>
    %143 = vector.broadcast %142 : vector<1x17x1xf32> to vector<1x17x17xf32>
    %144 = arith.mulf %139, %143 : vector<1x17x17xf32>
    %145 = arith.truncf %144 : vector<1x17x17xf32> to vector<1x17x17xbf16>
    %cst_50 = arith.constant dense<0.000000e+00> : vector<1x17x8xf32>
    %146 = tpu.matmul %145, %131, %cst_50 {dimension_numbers = #tpu.dot_dimension_numbers<[2], [1], [1], [2], [0, 0, 0, 1, 1, 2], [0], [0]>} : vector<1x17x17xbf16>, vector<1x17x8xbf16>, vector<1x17x8xf32> -> vector<1x17x8xf32>
    %147 = tpu.concatenate %56, %74, %92, %110, %128, %146 in 2 : vector<1x17x8xf32>, vector<1x17x8xf32>, vector<1x17x8xf32>, vector<1x17x8xf32>, vector<1x17x8xf32>, vector<1x17x8xf32> -> vector<1x17x48xf32>
    %148 = vector.shape_cast %147 : vector<1x17x48xf32> to vector<17x48xf32>
    %149 = arith.truncf %148 : vector<17x48xf32> to vector<17x48xbf16>
    %c0_51 = arith.constant 0 : index
    %c0_52 = arith.constant 0 : index
    %150 = vector.load %arg6[%c0_51, %c0_52] : memref<48x48xbf16, #tpu.memory_space<vmem>>, vector<48x48xbf16>
    %cst_53 = arith.constant dense<0.000000e+00> : vector<17x48xf32>
    %151 = tpu.matmul %149, %150, %cst_53 {dimension_numbers = #tpu.dot_dimension_numbers<[1], [0], [0], [1], [0, 0, 1, 1], [], []>} : vector<17x48xbf16>, vector<48x48xbf16>, vector<17x48xf32> -> vector<17x48xf32>
    %152 = arith.addf %11, %151 : vector<17x48xf32>
    %153 = vector.broadcast %2 : vector<1x48xf32> to vector<17x48xf32>
    %154 = arith.addf %152, %153 : vector<17x48xf32>
    %cst_54 = arith.constant dense<0.000000e+00> : vector<17xf32>
    %155 = vector.multi_reduction <add>, %154, %cst_54 [1] : vector<17x48xf32> to vector<17xf32>
    %156 = vector.shape_cast %155 : vector<17xf32> to vector<17x1xf32>
    %cst_55 = arith.constant 4.800000e+01 : f32
    %157 = vector.broadcast %cst_55 : f32 to vector<17x1xf32>
    %158 = arith.divf %156, %157 : vector<17x1xf32>
    %159 = vector.broadcast %158 : vector<17x1xf32> to vector<17x48xf32>
    %160 = arith.subf %154, %159 : vector<17x48xf32>
    %161 = arith.mulf %160, %160 : vector<17x48xf32>
    %cst_56 = arith.constant dense<0.000000e+00> : vector<17xf32>
    %162 = vector.multi_reduction <add>, %161, %cst_56 [1] : vector<17x48xf32> to vector<17xf32>
    %163 = vector.shape_cast %162 : vector<17xf32> to vector<17x1xf32>
    %cst_57 = arith.constant 4.800000e+01 : f32
    %164 = vector.broadcast %cst_57 : f32 to vector<17x1xf32>
    %165 = arith.divf %163, %164 : vector<17x1xf32>
    %166 = vector.broadcast %158 : vector<17x1xf32> to vector<17x48xf32>
    %167 = arith.subf %154, %166 : vector<17x48xf32>
    %cst_58 = arith.constant 9.99999997E-7 : f32
    %168 = vector.broadcast %cst_58 : f32 to vector<17x1xf32>
    %169 = arith.addf %165, %168 : vector<17x1xf32>
    %170 = math.rsqrt %169 : vector<17x1xf32>
    %171 = vector.broadcast %170 : vector<17x1xf32> to vector<17x48xf32>
    %172 = arith.mulf %167, %171 : vector<17x48xf32>
    %173 = vector.broadcast %3 : vector<1x48xf32> to vector<17x48xf32>
    %174 = arith.mulf %172, %173 : vector<17x48xf32>
    %175 = vector.broadcast %4 : vector<1x48xf32> to vector<17x48xf32>
    %176 = arith.addf %174, %175 : vector<17x48xf32>
    %177 = arith.truncf %176 : vector<17x48xf32> to vector<17x48xbf16>
    %c0_59 = arith.constant 0 : index
    %c0_60 = arith.constant 0 : index
    %178 = vector.load %arg7[%c0_59, %c0_60] : memref<48x96xbf16, #tpu.memory_space<vmem>>, vector<48x96xbf16>
    %cst_61 = arith.constant dense<0.000000e+00> : vector<17x96xf32>
    %179 = tpu.matmul %177, %178, %cst_61 {dimension_numbers = #tpu.dot_dimension_numbers<[1], [0], [0], [1], [0, 0, 1, 1], [], []>} : vector<17x48xbf16>, vector<48x96xbf16>, vector<17x96xf32> -> vector<17x96xf32>
    %c0_62 = arith.constant 0 : index
    %c0_63 = arith.constant 0 : index
    %180 = vector.load %arg8[%c0_62, %c0_63] : memref<1x96xf32, #tpu.memory_space<vmem>>, vector<1x96xf32>
    %181 = vector.broadcast %180 : vector<1x96xf32> to vector<17x96xf32>
    %182 = arith.addf %179, %181 : vector<17x96xf32>
    %cst_64 = arith.constant 5.000000e-01 : f32
    %183 = vector.broadcast %cst_64 : f32 to vector<17x96xf32>
    %184 = arith.mulf %183, %182 : vector<17x96xf32>
    %cst_65 = arith.constant 4.471500e-02 : f32
    %185 = vector.broadcast %cst_65 : f32 to vector<17x96xf32>
    %186 = arith.mulf %185, %182 : vector<17x96xf32>
    %187 = arith.mulf %186, %182 : vector<17x96xf32>
    %188 = arith.mulf %187, %182 : vector<17x96xf32>
    %189 = arith.addf %182, %188 : vector<17x96xf32>
    %cst_66 = arith.constant 0.797884583 : f32
    %190 = vector.broadcast %cst_66 : f32 to vector<17x96xf32>
    %191 = arith.mulf %190, %189 : vector<17x96xf32>
    %192 = math.tanh %191 : vector<17x96xf32>
    %cst_67 = arith.constant 1.000000e+00 : f32
    %193 = vector.broadcast %cst_67 : f32 to vector<17x96xf32>
    %194 = arith.addf %193, %192 : vector<17x96xf32>
    %195 = arith.mulf %184, %194 : vector<17x96xf32>
    %196 = arith.truncf %195 : vector<17x96xf32> to vector<17x96xbf16>
    %c0_68 = arith.constant 0 : index
    %c0_69 = arith.constant 0 : index
    %197 = vector.load %arg9[%c0_68, %c0_69] : memref<96x48xbf16, #tpu.memory_space<vmem>>, vector<96x48xbf16>
    %cst_70 = arith.constant dense<0.000000e+00> : vector<17x48xf32>
    %198 = tpu.matmul %196, %197, %cst_70 {dimension_numbers = #tpu.dot_dimension_numbers<[1], [0], [0], [1], [0, 0, 1, 1], [], []>} : vector<17x96xbf16>, vector<96x48xbf16>, vector<17x48xf32> -> vector<17x48xf32>
    %199 = arith.addf %154, %198 : vector<17x48xf32>
    %200 = vector.broadcast %5 : vector<1x48xf32> to vector<17x48xf32>
    %201 = arith.addf %199, %200 : vector<17x48xf32>
    %cst_71 = arith.constant dense<0.000000e+00> : vector<17xf32>
    %202 = vector.multi_reduction <add>, %201, %cst_71 [1] : vector<17x48xf32> to vector<17xf32>
    %203 = vector.shape_cast %202 : vector<17xf32> to vector<17x1xf32>
    %cst_72 = arith.constant 4.800000e+01 : f32
    %204 = vector.broadcast %cst_72 : f32 to vector<17x1xf32>
    %205 = arith.divf %203, %204 : vector<17x1xf32>
    %206 = vector.broadcast %205 : vector<17x1xf32> to vector<17x48xf32>
    %207 = arith.subf %201, %206 : vector<17x48xf32>
    %208 = arith.mulf %207, %207 : vector<17x48xf32>
    %cst_73 = arith.constant dense<0.000000e+00> : vector<17xf32>
    %209 = vector.multi_reduction <add>, %208, %cst_73 [1] : vector<17x48xf32> to vector<17xf32>
    %210 = vector.shape_cast %209 : vector<17xf32> to vector<17x1xf32>
    %cst_74 = arith.constant 4.800000e+01 : f32
    %211 = vector.broadcast %cst_74 : f32 to vector<17x1xf32>
    %212 = arith.divf %210, %211 : vector<17x1xf32>
    %213 = vector.broadcast %205 : vector<17x1xf32> to vector<17x48xf32>
    %214 = arith.subf %201, %213 : vector<17x48xf32>
    %cst_75 = arith.constant 9.99999997E-7 : f32
    %215 = vector.broadcast %cst_75 : f32 to vector<17x1xf32>
    %216 = arith.addf %212, %215 : vector<17x1xf32>
    %217 = math.rsqrt %216 : vector<17x1xf32>
    %218 = vector.broadcast %217 : vector<17x1xf32> to vector<17x48xf32>
    %219 = arith.mulf %214, %218 : vector<17x48xf32>
    %220 = vector.broadcast %0 : vector<1x48xf32> to vector<17x48xf32>
    %221 = arith.mulf %219, %220 : vector<17x48xf32>
    %222 = vector.broadcast %1 : vector<1x48xf32> to vector<17x48xf32>
    %223 = arith.addf %221, %222 : vector<17x48xf32>
    %224 = arith.truncf %223 : vector<17x48xf32> to vector<17x48xbf16>
    %c0_76 = arith.constant 0 : index
    %c0_77 = arith.constant 0 : index
    %225 = vector.load %arg5[%c0_76, %c0_77] : memref<48x144xbf16, #tpu.memory_space<vmem>>, vector<48x144xbf16>
    %cst_78 = arith.constant dense<0.000000e+00> : vector<17x144xf32>
    %226 = tpu.matmul %224, %225, %cst_78 {dimension_numbers = #tpu.dot_dimension_numbers<[1], [0], [0], [1], [0, 0, 1, 1], [], []>} : vector<17x48xbf16>, vector<48x144xbf16>, vector<17x144xf32> -> vector<17x144xf32>
    %227 = arith.truncf %226 : vector<17x144xf32> to vector<17x144xbf16>
    %228 = vector.shape_cast %227 : vector<17x144xbf16> to vector<1x17x144xbf16>
    %229 = vector.extract_strided_slice %228 {offsets = [0, 0, 0], sizes = [1, 17, 8], strides = [1, 1, 1]} : vector<1x17x144xbf16> to vector<1x17x8xbf16>
    %230 = vector.extract_strided_slice %228 {offsets = [0, 0, 48], sizes = [1, 17, 8], strides = [1, 1, 1]} : vector<1x17x144xbf16> to vector<1x17x8xbf16>
    %231 = vector.extract_strided_slice %228 {offsets = [0, 0, 96], sizes = [1, 17, 8], strides = [1, 1, 1]} : vector<1x17x144xbf16> to vector<1x17x8xbf16>
    %cst_79 = arith.constant dense<0.000000e+00> : vector<1x17x17xf32>
    %232 = tpu.matmul %229, %230, %cst_79 {dimension_numbers = #tpu.dot_dimension_numbers<[2], [2], [1], [1], [0, 0, 0, 1, 1, 1], [0], [0]>} : vector<1x17x8xbf16>, vector<1x17x8xbf16>, vector<1x17x17xf32> -> vector<1x17x17xf32>
    %cst_80 = arith.constant 0.353553385 : f32
    %233 = vector.broadcast %cst_80 : f32 to vector<1x17x17xf32>
    %234 = arith.mulf %232, %233 : vector<1x17x17xf32>
    %cst_81 = arith.constant dense<0xFF800000> : vector<1x17xf32>
    %235 = vector.multi_reduction <maximumf>, %234, %cst_81 [2] : vector<1x17x17xf32> to vector<1x17xf32>
    %236 = vector.shape_cast %235 : vector<1x17xf32> to vector<1x17x1xf32>
    %237 = vector.broadcast %236 : vector<1x17x1xf32> to vector<1x17x17xf32>
    %238 = arith.subf %234, %237 : vector<1x17x17xf32>
    %239 = math.exp %238 : vector<1x17x17xf32>
    %cst_82 = arith.constant dense<0.000000e+00> : vector<1x17xf32>
    %240 = vector.multi_reduction <add>, %239, %cst_82 [2] : vector<1x17x17xf32> to vector<1x17xf32>
    %241 = vector.shape_cast %240 : vector<1x17xf32> to vector<1x17x1xf32>
    %242 = tpu.reciprocal %241 {approx = true} : vector<1x17x1xf32> -> vector<1x17x1xf32>
    %243 = vector.broadcast %242 : vector<1x17x1xf32> to vector<1x17x17xf32>
    %244 = arith.mulf %239, %243 : vector<1x17x17xf32>
    %245 = arith.truncf %244 : vector<1x17x17xf32> to vector<1x17x17xbf16>
    %cst_83 = arith.constant dense<0.000000e+00> : vector<1x17x8xf32>
    %246 = tpu.matmul %245, %231, %cst_83 {dimension_numbers = #tpu.dot_dimension_numbers<[2], [1], [1], [2], [0, 0, 0, 1, 1, 2], [0], [0]>} : vector<1x17x17xbf16>, vector<1x17x8xbf16>, vector<1x17x8xf32> -> vector<1x17x8xf32>
    %247 = vector.extract_strided_slice %228 {offsets = [0, 0, 8], sizes = [1, 17, 8], strides = [1, 1, 1]} : vector<1x17x144xbf16> to vector<1x17x8xbf16>
    %248 = vector.extract_strided_slice %228 {offsets = [0, 0, 56], sizes = [1, 17, 8], strides = [1, 1, 1]} : vector<1x17x144xbf16> to vector<1x17x8xbf16>
    %249 = vector.extract_strided_slice %228 {offsets = [0, 0, 104], sizes = [1, 17, 8], strides = [1, 1, 1]} : vector<1x17x144xbf16> to vector<1x17x8xbf16>
    %cst_84 = arith.constant dense<0.000000e+00> : vector<1x17x17xf32>
    %250 = tpu.matmul %247, %248, %cst_84 {dimension_numbers = #tpu.dot_dimension_numbers<[2], [2], [1], [1], [0, 0, 0, 1, 1, 1], [0], [0]>} : vector<1x17x8xbf16>, vector<1x17x8xbf16>, vector<1x17x17xf32> -> vector<1x17x17xf32>
    %cst_85 = arith.constant 0.353553385 : f32
    %251 = vector.broadcast %cst_85 : f32 to vector<1x17x17xf32>
    %252 = arith.mulf %250, %251 : vector<1x17x17xf32>
    %cst_86 = arith.constant dense<0xFF800000> : vector<1x17xf32>
    %253 = vector.multi_reduction <maximumf>, %252, %cst_86 [2] : vector<1x17x17xf32> to vector<1x17xf32>
    %254 = vector.shape_cast %253 : vector<1x17xf32> to vector<1x17x1xf32>
    %255 = vector.broadcast %254 : vector<1x17x1xf32> to vector<1x17x17xf32>
    %256 = arith.subf %252, %255 : vector<1x17x17xf32>
    %257 = math.exp %256 : vector<1x17x17xf32>
    %cst_87 = arith.constant dense<0.000000e+00> : vector<1x17xf32>
    %258 = vector.multi_reduction <add>, %257, %cst_87 [2] : vector<1x17x17xf32> to vector<1x17xf32>
    %259 = vector.shape_cast %258 : vector<1x17xf32> to vector<1x17x1xf32>
    %260 = tpu.reciprocal %259 {approx = true} : vector<1x17x1xf32> -> vector<1x17x1xf32>
    %261 = vector.broadcast %260 : vector<1x17x1xf32> to vector<1x17x17xf32>
    %262 = arith.mulf %257, %261 : vector<1x17x17xf32>
    %263 = arith.truncf %262 : vector<1x17x17xf32> to vector<1x17x17xbf16>
    %cst_88 = arith.constant dense<0.000000e+00> : vector<1x17x8xf32>
    %264 = tpu.matmul %263, %249, %cst_88 {dimension_numbers = #tpu.dot_dimension_numbers<[2], [1], [1], [2], [0, 0, 0, 1, 1, 2], [0], [0]>} : vector<1x17x17xbf16>, vector<1x17x8xbf16>, vector<1x17x8xf32> -> vector<1x17x8xf32>
    %265 = vector.extract_strided_slice %228 {offsets = [0, 0, 16], sizes = [1, 17, 8], strides = [1, 1, 1]} : vector<1x17x144xbf16> to vector<1x17x8xbf16>
    %266 = vector.extract_strided_slice %228 {offsets = [0, 0, 64], sizes = [1, 17, 8], strides = [1, 1, 1]} : vector<1x17x144xbf16> to vector<1x17x8xbf16>
    %267 = vector.extract_strided_slice %228 {offsets = [0, 0, 112], sizes = [1, 17, 8], strides = [1, 1, 1]} : vector<1x17x144xbf16> to vector<1x17x8xbf16>
    %cst_89 = arith.constant dense<0.000000e+00> : vector<1x17x17xf32>
    %268 = tpu.matmul %265, %266, %cst_89 {dimension_numbers = #tpu.dot_dimension_numbers<[2], [2], [1], [1], [0, 0, 0, 1, 1, 1], [0], [0]>} : vector<1x17x8xbf16>, vector<1x17x8xbf16>, vector<1x17x17xf32> -> vector<1x17x17xf32>
    %cst_90 = arith.constant 0.353553385 : f32
    %269 = vector.broadcast %cst_90 : f32 to vector<1x17x17xf32>
    %270 = arith.mulf %268, %269 : vector<1x17x17xf32>
    %cst_91 = arith.constant dense<0xFF800000> : vector<1x17xf32>
    %271 = vector.multi_reduction <maximumf>, %270, %cst_91 [2] : vector<1x17x17xf32> to vector<1x17xf32>
    %272 = vector.shape_cast %271 : vector<1x17xf32> to vector<1x17x1xf32>
    %273 = vector.broadcast %272 : vector<1x17x1xf32> to vector<1x17x17xf32>
    %274 = arith.subf %270, %273 : vector<1x17x17xf32>
    %275 = math.exp %274 : vector<1x17x17xf32>
    %cst_92 = arith.constant dense<0.000000e+00> : vector<1x17xf32>
    %276 = vector.multi_reduction <add>, %275, %cst_92 [2] : vector<1x17x17xf32> to vector<1x17xf32>
    %277 = vector.shape_cast %276 : vector<1x17xf32> to vector<1x17x1xf32>
    %278 = tpu.reciprocal %277 {approx = true} : vector<1x17x1xf32> -> vector<1x17x1xf32>
    %279 = vector.broadcast %278 : vector<1x17x1xf32> to vector<1x17x17xf32>
    %280 = arith.mulf %275, %279 : vector<1x17x17xf32>
    %281 = arith.truncf %280 : vector<1x17x17xf32> to vector<1x17x17xbf16>
    %cst_93 = arith.constant dense<0.000000e+00> : vector<1x17x8xf32>
    %282 = tpu.matmul %281, %267, %cst_93 {dimension_numbers = #tpu.dot_dimension_numbers<[2], [1], [1], [2], [0, 0, 0, 1, 1, 2], [0], [0]>} : vector<1x17x17xbf16>, vector<1x17x8xbf16>, vector<1x17x8xf32> -> vector<1x17x8xf32>
    %283 = vector.extract_strided_slice %228 {offsets = [0, 0, 24], sizes = [1, 17, 8], strides = [1, 1, 1]} : vector<1x17x144xbf16> to vector<1x17x8xbf16>
    %284 = vector.extract_strided_slice %228 {offsets = [0, 0, 72], sizes = [1, 17, 8], strides = [1, 1, 1]} : vector<1x17x144xbf16> to vector<1x17x8xbf16>
    %285 = vector.extract_strided_slice %228 {offsets = [0, 0, 120], sizes = [1, 17, 8], strides = [1, 1, 1]} : vector<1x17x144xbf16> to vector<1x17x8xbf16>
    %cst_94 = arith.constant dense<0.000000e+00> : vector<1x17x17xf32>
    %286 = tpu.matmul %283, %284, %cst_94 {dimension_numbers = #tpu.dot_dimension_numbers<[2], [2], [1], [1], [0, 0, 0, 1, 1, 1], [0], [0]>} : vector<1x17x8xbf16>, vector<1x17x8xbf16>, vector<1x17x17xf32> -> vector<1x17x17xf32>
    %cst_95 = arith.constant 0.353553385 : f32
    %287 = vector.broadcast %cst_95 : f32 to vector<1x17x17xf32>
    %288 = arith.mulf %286, %287 : vector<1x17x17xf32>
    %cst_96 = arith.constant dense<0xFF800000> : vector<1x17xf32>
    %289 = vector.multi_reduction <maximumf>, %288, %cst_96 [2] : vector<1x17x17xf32> to vector<1x17xf32>
    %290 = vector.shape_cast %289 : vector<1x17xf32> to vector<1x17x1xf32>
    %291 = vector.broadcast %290 : vector<1x17x1xf32> to vector<1x17x17xf32>
    %292 = arith.subf %288, %291 : vector<1x17x17xf32>
    %293 = math.exp %292 : vector<1x17x17xf32>
    %cst_97 = arith.constant dense<0.000000e+00> : vector<1x17xf32>
    %294 = vector.multi_reduction <add>, %293, %cst_97 [2] : vector<1x17x17xf32> to vector<1x17xf32>
    %295 = vector.shape_cast %294 : vector<1x17xf32> to vector<1x17x1xf32>
    %296 = tpu.reciprocal %295 {approx = true} : vector<1x17x1xf32> -> vector<1x17x1xf32>
    %297 = vector.broadcast %296 : vector<1x17x1xf32> to vector<1x17x17xf32>
    %298 = arith.mulf %293, %297 : vector<1x17x17xf32>
    %299 = arith.truncf %298 : vector<1x17x17xf32> to vector<1x17x17xbf16>
    %cst_98 = arith.constant dense<0.000000e+00> : vector<1x17x8xf32>
    %300 = tpu.matmul %299, %285, %cst_98 {dimension_numbers = #tpu.dot_dimension_numbers<[2], [1], [1], [2], [0, 0, 0, 1, 1, 2], [0], [0]>} : vector<1x17x17xbf16>, vector<1x17x8xbf16>, vector<1x17x8xf32> -> vector<1x17x8xf32>
    %301 = vector.extract_strided_slice %228 {offsets = [0, 0, 32], sizes = [1, 17, 8], strides = [1, 1, 1]} : vector<1x17x144xbf16> to vector<1x17x8xbf16>
    %302 = vector.extract_strided_slice %228 {offsets = [0, 0, 80], sizes = [1, 17, 8], strides = [1, 1, 1]} : vector<1x17x144xbf16> to vector<1x17x8xbf16>
    %303 = vector.extract_strided_slice %228 {offsets = [0, 0, 128], sizes = [1, 17, 8], strides = [1, 1, 1]} : vector<1x17x144xbf16> to vector<1x17x8xbf16>
    %cst_99 = arith.constant dense<0.000000e+00> : vector<1x17x17xf32>
    %304 = tpu.matmul %301, %302, %cst_99 {dimension_numbers = #tpu.dot_dimension_numbers<[2], [2], [1], [1], [0, 0, 0, 1, 1, 1], [0], [0]>} : vector<1x17x8xbf16>, vector<1x17x8xbf16>, vector<1x17x17xf32> -> vector<1x17x17xf32>
    %cst_100 = arith.constant 0.353553385 : f32
    %305 = vector.broadcast %cst_100 : f32 to vector<1x17x17xf32>
    %306 = arith.mulf %304, %305 : vector<1x17x17xf32>
    %cst_101 = arith.constant dense<0xFF800000> : vector<1x17xf32>
    %307 = vector.multi_reduction <maximumf>, %306, %cst_101 [2] : vector<1x17x17xf32> to vector<1x17xf32>
    %308 = vector.shape_cast %307 : vector<1x17xf32> to vector<1x17x1xf32>
    %309 = vector.broadcast %308 : vector<1x17x1xf32> to vector<1x17x17xf32>
    %310 = arith.subf %306, %309 : vector<1x17x17xf32>
    %311 = math.exp %310 : vector<1x17x17xf32>
    %cst_102 = arith.constant dense<0.000000e+00> : vector<1x17xf32>
    %312 = vector.multi_reduction <add>, %311, %cst_102 [2] : vector<1x17x17xf32> to vector<1x17xf32>
    %313 = vector.shape_cast %312 : vector<1x17xf32> to vector<1x17x1xf32>
    %314 = tpu.reciprocal %313 {approx = true} : vector<1x17x1xf32> -> vector<1x17x1xf32>
    %315 = vector.broadcast %314 : vector<1x17x1xf32> to vector<1x17x17xf32>
    %316 = arith.mulf %311, %315 : vector<1x17x17xf32>
    %317 = arith.truncf %316 : vector<1x17x17xf32> to vector<1x17x17xbf16>
    %cst_103 = arith.constant dense<0.000000e+00> : vector<1x17x8xf32>
    %318 = tpu.matmul %317, %303, %cst_103 {dimension_numbers = #tpu.dot_dimension_numbers<[2], [1], [1], [2], [0, 0, 0, 1, 1, 2], [0], [0]>} : vector<1x17x17xbf16>, vector<1x17x8xbf16>, vector<1x17x8xf32> -> vector<1x17x8xf32>
    %319 = vector.extract_strided_slice %228 {offsets = [0, 0, 40], sizes = [1, 17, 8], strides = [1, 1, 1]} : vector<1x17x144xbf16> to vector<1x17x8xbf16>
    %320 = vector.extract_strided_slice %228 {offsets = [0, 0, 88], sizes = [1, 17, 8], strides = [1, 1, 1]} : vector<1x17x144xbf16> to vector<1x17x8xbf16>
    %321 = vector.extract_strided_slice %228 {offsets = [0, 0, 136], sizes = [1, 17, 8], strides = [1, 1, 1]} : vector<1x17x144xbf16> to vector<1x17x8xbf16>
    %cst_104 = arith.constant dense<0.000000e+00> : vector<1x17x17xf32>
    %322 = tpu.matmul %319, %320, %cst_104 {dimension_numbers = #tpu.dot_dimension_numbers<[2], [2], [1], [1], [0, 0, 0, 1, 1, 1], [0], [0]>} : vector<1x17x8xbf16>, vector<1x17x8xbf16>, vector<1x17x17xf32> -> vector<1x17x17xf32>
    %cst_105 = arith.constant 0.353553385 : f32
    %323 = vector.broadcast %cst_105 : f32 to vector<1x17x17xf32>
    %324 = arith.mulf %322, %323 : vector<1x17x17xf32>
    %cst_106 = arith.constant dense<0xFF800000> : vector<1x17xf32>
    %325 = vector.multi_reduction <maximumf>, %324, %cst_106 [2] : vector<1x17x17xf32> to vector<1x17xf32>
    %326 = vector.shape_cast %325 : vector<1x17xf32> to vector<1x17x1xf32>
    %327 = vector.broadcast %326 : vector<1x17x1xf32> to vector<1x17x17xf32>
    %328 = arith.subf %324, %327 : vector<1x17x17xf32>
    %329 = math.exp %328 : vector<1x17x17xf32>
    %cst_107 = arith.constant dense<0.000000e+00> : vector<1x17xf32>
    %330 = vector.multi_reduction <add>, %329, %cst_107 [2] : vector<1x17x17xf32> to vector<1x17xf32>
    %331 = vector.shape_cast %330 : vector<1x17xf32> to vector<1x17x1xf32>
    %332 = tpu.reciprocal %331 {approx = true} : vector<1x17x1xf32> -> vector<1x17x1xf32>
    %333 = vector.broadcast %332 : vector<1x17x1xf32> to vector<1x17x17xf32>
    %334 = arith.mulf %329, %333 : vector<1x17x17xf32>
    %335 = arith.truncf %334 : vector<1x17x17xf32> to vector<1x17x17xbf16>
    %cst_108 = arith.constant dense<0.000000e+00> : vector<1x17x8xf32>
    %336 = tpu.matmul %335, %321, %cst_108 {dimension_numbers = #tpu.dot_dimension_numbers<[2], [1], [1], [2], [0, 0, 0, 1, 1, 2], [0], [0]>} : vector<1x17x17xbf16>, vector<1x17x8xbf16>, vector<1x17x8xf32> -> vector<1x17x8xf32>
    %337 = tpu.concatenate %246, %264, %282, %300, %318, %336 in 2 : vector<1x17x8xf32>, vector<1x17x8xf32>, vector<1x17x8xf32>, vector<1x17x8xf32>, vector<1x17x8xf32>, vector<1x17x8xf32> -> vector<1x17x48xf32>
    %338 = vector.shape_cast %337 : vector<1x17x48xf32> to vector<17x48xf32>
    %339 = arith.truncf %338 : vector<17x48xf32> to vector<17x48xbf16>
    %c0_109 = arith.constant 0 : index
    %c0_110 = arith.constant 0 : index
    %340 = vector.load %arg6[%c0_109, %c0_110] : memref<48x48xbf16, #tpu.memory_space<vmem>>, vector<48x48xbf16>
    %cst_111 = arith.constant dense<0.000000e+00> : vector<17x48xf32>
    %341 = tpu.matmul %339, %340, %cst_111 {dimension_numbers = #tpu.dot_dimension_numbers<[1], [0], [0], [1], [0, 0, 1, 1], [], []>} : vector<17x48xbf16>, vector<48x48xbf16>, vector<17x48xf32> -> vector<17x48xf32>
    %342 = arith.addf %201, %341 : vector<17x48xf32>
    %343 = vector.broadcast %2 : vector<1x48xf32> to vector<17x48xf32>
    %344 = arith.addf %342, %343 : vector<17x48xf32>
    %cst_112 = arith.constant dense<0.000000e+00> : vector<17xf32>
    %345 = vector.multi_reduction <add>, %344, %cst_112 [1] : vector<17x48xf32> to vector<17xf32>
    %346 = vector.shape_cast %345 : vector<17xf32> to vector<17x1xf32>
    %cst_113 = arith.constant 4.800000e+01 : f32
    %347 = vector.broadcast %cst_113 : f32 to vector<17x1xf32>
    %348 = arith.divf %346, %347 : vector<17x1xf32>
    %349 = vector.broadcast %348 : vector<17x1xf32> to vector<17x48xf32>
    %350 = arith.subf %344, %349 : vector<17x48xf32>
    %351 = arith.mulf %350, %350 : vector<17x48xf32>
    %cst_114 = arith.constant dense<0.000000e+00> : vector<17xf32>
    %352 = vector.multi_reduction <add>, %351, %cst_114 [1] : vector<17x48xf32> to vector<17xf32>
    %353 = vector.shape_cast %352 : vector<17xf32> to vector<17x1xf32>
    %cst_115 = arith.constant 4.800000e+01 : f32
    %354 = vector.broadcast %cst_115 : f32 to vector<17x1xf32>
    %355 = arith.divf %353, %354 : vector<17x1xf32>
    %356 = vector.broadcast %348 : vector<17x1xf32> to vector<17x48xf32>
    %357 = arith.subf %344, %356 : vector<17x48xf32>
    %cst_116 = arith.constant 9.99999997E-7 : f32
    %358 = vector.broadcast %cst_116 : f32 to vector<17x1xf32>
    %359 = arith.addf %355, %358 : vector<17x1xf32>
    %360 = math.rsqrt %359 : vector<17x1xf32>
    %361 = vector.broadcast %360 : vector<17x1xf32> to vector<17x48xf32>
    %362 = arith.mulf %357, %361 : vector<17x48xf32>
    %363 = vector.broadcast %3 : vector<1x48xf32> to vector<17x48xf32>
    %364 = arith.mulf %362, %363 : vector<17x48xf32>
    %365 = vector.broadcast %4 : vector<1x48xf32> to vector<17x48xf32>
    %366 = arith.addf %364, %365 : vector<17x48xf32>
    %367 = arith.truncf %366 : vector<17x48xf32> to vector<17x48xbf16>
    %c0_117 = arith.constant 0 : index
    %c0_118 = arith.constant 0 : index
    %368 = vector.load %arg7[%c0_117, %c0_118] : memref<48x96xbf16, #tpu.memory_space<vmem>>, vector<48x96xbf16>
    %cst_119 = arith.constant dense<0.000000e+00> : vector<17x96xf32>
    %369 = tpu.matmul %367, %368, %cst_119 {dimension_numbers = #tpu.dot_dimension_numbers<[1], [0], [0], [1], [0, 0, 1, 1], [], []>} : vector<17x48xbf16>, vector<48x96xbf16>, vector<17x96xf32> -> vector<17x96xf32>
    %c0_120 = arith.constant 0 : index
    %c0_121 = arith.constant 0 : index
    %370 = vector.load %arg8[%c0_120, %c0_121] : memref<1x96xf32, #tpu.memory_space<vmem>>, vector<1x96xf32>
    %371 = vector.broadcast %370 : vector<1x96xf32> to vector<17x96xf32>
    %372 = arith.addf %369, %371 : vector<17x96xf32>
    %cst_122 = arith.constant 5.000000e-01 : f32
    %373 = vector.broadcast %cst_122 : f32 to vector<17x96xf32>
    %374 = arith.mulf %373, %372 : vector<17x96xf32>
    %cst_123 = arith.constant 4.471500e-02 : f32
    %375 = vector.broadcast %cst_123 : f32 to vector<17x96xf32>
    %376 = arith.mulf %375, %372 : vector<17x96xf32>
    %377 = arith.mulf %376, %372 : vector<17x96xf32>
    %378 = arith.mulf %377, %372 : vector<17x96xf32>
    %379 = arith.addf %372, %378 : vector<17x96xf32>
    %cst_124 = arith.constant 0.797884583 : f32
    %380 = vector.broadcast %cst_124 : f32 to vector<17x96xf32>
    %381 = arith.mulf %380, %379 : vector<17x96xf32>
    %382 = math.tanh %381 : vector<17x96xf32>
    %cst_125 = arith.constant 1.000000e+00 : f32
    %383 = vector.broadcast %cst_125 : f32 to vector<17x96xf32>
    %384 = arith.addf %383, %382 : vector<17x96xf32>
    %385 = arith.mulf %374, %384 : vector<17x96xf32>
    %386 = arith.truncf %385 : vector<17x96xf32> to vector<17x96xbf16>
    %c0_126 = arith.constant 0 : index
    %c0_127 = arith.constant 0 : index
    %387 = vector.load %arg9[%c0_126, %c0_127] : memref<96x48xbf16, #tpu.memory_space<vmem>>, vector<96x48xbf16>
    %cst_128 = arith.constant dense<0.000000e+00> : vector<17x48xf32>
    %388 = tpu.matmul %386, %387, %cst_128 {dimension_numbers = #tpu.dot_dimension_numbers<[1], [0], [0], [1], [0, 0, 1, 1], [], []>} : vector<17x96xbf16>, vector<96x48xbf16>, vector<17x48xf32> -> vector<17x48xf32>
    %389 = arith.addf %344, %388 : vector<17x48xf32>
    %390 = vector.broadcast %5 : vector<1x48xf32> to vector<17x48xf32>
    %391 = arith.addf %389, %390 : vector<17x48xf32>
    %392 = vector.shape_cast %391 : vector<17x48xf32> to vector<1x17x48xf32>
    %393 = vector.extract_strided_slice %392 {offsets = [0, 0, 0], sizes = [1, 1, 48], strides = [1, 1, 1]} : vector<1x17x48xf32> to vector<1x1x48xf32>
    %394 = vector.shape_cast %393 : vector<1x1x48xf32> to vector<1x48xf32>
    %395 = arith.truncf %394 : vector<1x48xf32> to vector<1x48xbf16>
    %c0_129 = arith.constant 0 : index
    %c0_130 = arith.constant 0 : index
    %396 = vector.load %arg10[%c0_129, %c0_130] : memref<48x128xbf16, #tpu.memory_space<vmem>>, vector<48x128xbf16>
    %cst_131 = arith.constant dense<0.000000e+00> : vector<1x128xf32>
    %397 = tpu.matmul %395, %396, %cst_131 {dimension_numbers = #tpu.dot_dimension_numbers<[1], [0], [0], [1], [0, 0, 1, 1], [], []>} : vector<1x48xbf16>, vector<48x128xbf16>, vector<1x128xf32> -> vector<1x128xf32>
    %c0_132 = arith.constant 0 : index
    %c0_133 = arith.constant 0 : index
    %398 = vector.load %arg11[%c0_132, %c0_133] : memref<1x128xf32, #tpu.memory_space<vmem>>, vector<1x128xf32>
    %399 = arith.addf %397, %398 : vector<1x128xf32>
    %c0_134 = arith.constant 0 : index
    %c0_135 = arith.constant 0 : index
    %c0_136 = arith.constant 0 : index
    %400 = vector.load %arg12[%c0_134, %c0_135, %c0_136] : memref<1x1x128xf32, #tpu.memory_space<vmem>>, vector<1x1x128xf32>
    %401 = vector.shape_cast %400 : vector<1x1x128xf32> to vector<1x128xf32>
    %402 = vector.shape_cast %399 : vector<1x128xf32> to vector<1x1x128xf32>
    tpu.vector_store %arg12[%c0_134, %c0_135, %c0_136], %402 {strides = array<i32>} : memref<1x1x128xf32, #tpu.memory_space<vmem>>, vector<1x1x128xf32>,
    return
  }
  func.func @transform_0(%arg0: i32) -> (i32, i32, i32) {
    %c0_i32 = arith.constant 0 : i32
    %c0_i32_0 = arith.constant 0 : i32
    %c0_i32_1 = arith.constant 0 : i32
    return %arg0, %c0_i32, %c0_i32_0 : i32, i32, i32
  }
  func.func @transform_1(%arg0: i32) -> (i32, i32) {
    %c0_i32 = arith.constant 0 : i32
    %c0_i32_0 = arith.constant 0 : i32
    %c0_i32_1 = arith.constant 0 : i32
    return %c0_i32, %c0_i32_0 : i32, i32
  }
  func.func @transform_2(%arg0: i32) -> (i32, i32) {
    %c0_i32 = arith.constant 0 : i32
    %c0_i32_0 = arith.constant 0 : i32
    %c0_i32_1 = arith.constant 0 : i32
    return %c0_i32, %c0_i32_0 : i32, i32
  }
  func.func @transform_3(%arg0: i32) -> (i32, i32) {
    %c0_i32 = arith.constant 0 : i32
    %c0_i32_0 = arith.constant 0 : i32
    %c0_i32_1 = arith.constant 0 : i32
    return %c0_i32, %c0_i32_0 : i32, i32
  }
  func.func @transform_4(%arg0: i32) -> (i32, i32) {
    %c0_i32 = arith.constant 0 : i32
    %c0_i32_0 = arith.constant 0 : i32
    %c0_i32_1 = arith.constant 0 : i32
    return %c0_i32, %c0_i32_0 : i32, i32
  }
  func.func @transform_5(%arg0: i32) -> (i32, i32) {
    %c0_i32 = arith.constant 0 : i32
    %c0_i32_0 = arith.constant 0 : i32
    %c0_i32_1 = arith.constant 0 : i32
    return %c0_i32, %c0_i32_0 : i32, i32
  }
  func.func @transform_6(%arg0: i32) -> (i32, i32) {
    %c0_i32 = arith.constant 0 : i32
    %c0_i32_0 = arith.constant 0 : i32
    %c0_i32_1 = arith.constant 0 : i32
    return %c0_i32, %c0_i32_0 : i32, i32
  }
  func.func @transform_7(%arg0: i32) -> (i32, i32) {
    %c0_i32 = arith.constant 0 : i32
    %c0_i32_0 = arith.constant 0 : i32
    %c0_i32_1 = arith.constant 0 : i32
    return %c0_i32, %c0_i32_0 : i32, i32
  }
  func.func @transform_8(%arg0: i32) -> (i32, i32) {
    %c0_i32 = arith.constant 0 : i32
    %c0_i32_0 = arith.constant 0 : i32
    %c0_i32_1 = arith.constant 0 : i32
    return %c0_i32, %c0_i32_0 : i32, i32
  }
  func.func @transform_9(%arg0: i32) -> (i32, i32) {
    %c0_i32 = arith.constant 0 : i32
    %c0_i32_0 = arith.constant 0 : i32
    %c0_i32_1 = arith.constant 0 : i32
    return %c0_i32, %c0_i32_0 : i32, i32
  }
  func.func @transform_10(%arg0: i32) -> (i32, i32) {
    %c0_i32 = arith.constant 0 : i32
    %c0_i32_0 = arith.constant 0 : i32
    %c0_i32_1 = arith.constant 0 : i32
    return %c0_i32, %c0_i32_0 : i32, i32
  }
  func.func @transform_11(%arg0: i32) -> (i32, i32, i32) {
    %c0_i32 = arith.constant 0 : i32
    %c0_i32_0 = arith.constant 0 : i32
    %c0_i32_1 = arith.constant 0 : i32
    return %arg0, %c0_i32, %c0_i32_0 : i32, i32, i32
  }
}

</mosaic_0001>

<bundles_post_ra>
// kernel: vision_transformer.1
= control target key start
LH: loop header
LB: loop body
LE: loop exit
PB: predicated region body
PF: predicated region fallthrough
CT: control target
= control target key end

     0   :  { %s4678_s0 = inlined_call_operand.vmem [shape: bf16[2,17,32], index: 0, kind: input, shape index: {}]   ;;  %s4679_s1 = inlined_call_operand.vmem [shape: f32[17,48], index: 1, kind: input, shape index: {}]   ;;  %s4680_s2 = inlined_call_operand.vmem [shape: f32[8,48], index: 2, kind: input, shape index: {}]   ;;  %s4681_s3 = inlined_call_operand.vmem [shape: bf16[32,48], index: 3, kind: input, shape index: {}]   ;;  %s4682_s4 = inlined_call_operand.vmem [shape: bf16[48,144], index: 4, kind: input, shape index: {}]   ;;  %s4683_s5 = inlined_call_operand.vmem [shape: bf16[48,48], index: 5, kind: input, shape index: {}]   ;;  %s4684_s6 = inlined_call_operand.vmem [shape: bf16[48,96], index: 6, kind: input, shape index: {}]   ;;  %s4685_s7 = inlined_call_operand.vmem [shape: f32[1,96], index: 7, kind: input, shape index: {}]   ;;  %s4686_s8 = inlined_call_operand.vmem [shape: bf16[96,48], index: 8, kind: input, shape index: {}]   ;;  %s4687_s9 = inlined_call_operand.vmem [shape: bf16[48,128], index: 9, kind: input, shape index: {}]   ;;  %s4688_s10 = inlined_call_operand.vmem [shape: f32[1,128], index: 10, kind: input, shape index: {}]   ;;  %s4689_s11 = inlined_call_operand.hbm [shape: f32[2,1,128], index: 11, kind: output, shape index: {}]  }
   0x1   :  { %4716 = sst [smem:[#allocation5_spill]] %s4678_s0 }
   0x2   :  { %4717 = sst [smem:[#allocation6_spill]] %s4679_s1 }
   0x3   :  { %16 = vsyncpa [#allocation3], 0 }
   0x4   :  { %18 = vsyncpa [#allocation3 + $0x1], 0  ;;  %s3563_s17 = smov 0   ;;  %s3565_s18 = smov 0  }
   0x5   :  { %s3567_s19 = smov 0   ;;  %s3569_s20 = smov 0  }
   0x6 LB: > { %s3584_s21 = sadd.s32 4294967295, %s3484_s20   ;;  %s2918_s22 = sadd.s32 4294967294, %s3484_s20   ;;  %s3484_s20 = sphi %s3569_s20, %s4738_s20   ;;  %s3480_s19 = sphi %s3567_s19, %s4737_s19   ;;  %s3476_s18 = sphi %s3565_s18, %s4736_s18   ;;  %s3472_s17 = sphi %s3563_s17, %s4735_s17  }
   0x7   : > { %s3588_s23 = sadd.s32 1, %s3484_s20   ;;  %s267_s24 = sadd.s32 1, %s3480_s19 }
   0x8   : > { %s264_s25 = ssub.s32 %s3484_s20, %s3588_s23  ;;  %p277_p0 = scmp.ne.s32.totalorder %s3480_s19, %s3476_s18 }
   0x9   : > { %p265_p1 = scmp.eq.s32.totalorder %s264_s25, 0  ;;  %p278_p2 = scmp.eq.s32.totalorder %s3584_s21, 1 }
   0xa   : > { %p283_p3 = scmp.ne.s32.totalorder %s3476_s18, %s3472_s17  ;;  %p284_p4 = scmp.eq.s32.totalorder %s2918_s22, 1 }
   0xb   : > { %s3599_s26 = scalar_select %p265_p1, %s3480_s19, %s267_s24  }
   0xc   : > { %p3601_p5 = por %p278_p2, %p277_p0  ;;  %p3605_p6 = por %p284_p4, %p283_p3 }
   0xd   : > { %p2921_p7 = scmp.ge.s32.totalorder %s3484_s20, 1  ;;  %p340_p8 = scmp.lt.s32.totalorder %s3484_s20, 3 }
   0xf   : > { %p341_p9 = pnand %p2921_p7, %p340_p8 }
  0x10   : > { %p379_p10 = scmp.lt.s32.totalorder (!%p341_p9), %s3584_s21, 1  ;;  %s4720_s0 = sld [smem:[#allocation5_spill]] (!%p341_p9) }
  0x11   : > { %344 = sbr.rel (%p341_p9) target bundleno = 4364 (0x110c), region = 64  ;;  %s4721_s1 = sld [smem:[#allocation6_spill]] (!%p341_p9) }
  0x12   : > { %s4704_s13 = smov (!%p341_p9), 80   ;;  %s4698_s16 = smov (!%p341_p9), 56  }
  0x13   : > { %s4690_s22 = smov (!%p341_p9), 64   ;;  %s4692_s25 = smov (!%p341_p9), 48  }
  0x14   : > { %s4696_s29 = smov (!%p341_p9), 104   ;;  %s4702_s30 = smov (!%p341_p9), 88  }
  0x15   : > { %s4714_s12 = smov (!%p341_p9), 40  }
  0x16   : > { %v3094_v0 = vld [vmem:[%s4681_s3 + $0x8] sm:$0xff]  ;;  %v3093_v1 = vld [vmem:[%s4681_s3] sm:$0xff]  ;;  %s380_s14 = scalar_select %p379_p10, %s3584_s21, 1  ;;  %vm421_vm0 = vcmask 261120   ;;  %vm446_vm1 = vcmask 392192   ;;  %vm453_vm2 = vcmask 385024  }
  0x17   : > { %434 = vmatpush.bf16.msra.mxu0 %v3094_v0  ;;  %v398_v6 = vld [vmem:[%s4721_s1] sm:$0xff]  ;;  %v399_v10 = vld [vmem:[%s4721_s1 + $0x8] sm:$0xff]  ;;  %v400_v14 = vld [vmem:[%s4721_s1 + $0x10] sm:$0x1]  ;;  %v3486_v19 = vmov 48.0   ;;  %vm624_vm13 = vcmask 64512  }
  0x18   : > { %s3116_s15 = smul.u32 12, %s380_s14  ;;  %3230 = vrcp.f32 %v3486_v19  ;;  %v2955_v41 = vld [vmem:[%s4682_s4 + $0x20] sm:$0xf]  ;;  %v3100_v42 = vld [vmem:[%s4682_s4 + $0x24] sm:$0xf0]  ;;  %s3488_s14 = smov 120  }
  0x19   : > { %v3099_v43 = vld [vmem:[%s4682_s4 + $0x24] sm:$0xf]  ;;  %v3677_v44 = vor.u32 %v3100_v42, %v2955_v41  ;;  %v2957_v45 = vld [vmem:[%s4682_s4 + $0x28] sm:$0xf0]  ;;  %v2947_v47 = vld [vmem:[%s4682_s4 + $0x10] sm:$0xf] }
  0x1a   : > { %s383_s24 = scalar_lea.vmem %s4720_s0, %s3116_s15  ;;  %v3682_v46 = vor.u32 %v3099_v43, %v2957_v45  ;;  %v3098_v48 = vld [vmem:[%s4682_s4 + $0x14] sm:$0xf0]  ;;  %v3097_v49 = vld [vmem:[%s4682_s4 + $0x14] sm:$0xf]  ;;  %v2949_v51 = vld [vmem:[%s4682_s4 + $0x18] sm:$0xf0] }
  0x1b   : > { %435 = vmatpush.bf16.msra.mxu0 %v3093_v1  ;;  %v3092_v2 = vld [vmem:[%s383_s24] sm:$0xff]  ;;  %v393_v3 = vld [vmem:[%s383_s24 + $0x8] sm:$0x1]  ;;  %578 = vmatpush.bf16.msra.mxu1 %v3677_v44  ;;  %v3695_v50 = vor.u32 %v3098_v48, %v2947_v47  ;;  %v3700_v52 = vor.u32 %v3097_v49, %v2949_v51  ;;  %v2941_v59 = vld [vmem:[%s4682_s4 + $0x8] sm:$0xf0]  ;;  %s3489_s15 = smov 72  }
  0x1c   : > { %v406_v4 = vunpack.c.l.b16 %v393_v3  ;;  %596 = vmatpush.bf16.msra.mxu2 %v3682_v46  ;;  %v2939_v55 = vld [vmem:[%s4682_s4] sm:$0xf]  ;;  %v3096_v56 = vld [vmem:[%s4682_s4 + $0x4] sm:$0xf0]  ;;  %v3095_v57 = vld [vmem:[%s4682_s4 + $0x4] sm:$0xf] }
  0x1d   : > { %v3714_v58 = vor.u32 %v3096_v56, %v2939_v55  ;;  %v3719_v61 = vor.u32 %v3095_v57, %v2941_v59  ;;  %s4694_s24 = smov 112   ;;  %vm715_vm14 = vcmask 1040384   ;;  %vm658_vm15 = vcmask 138240  }
  0x1e   : > { %2935 = vmatmul.msk.bf16.vlgmr.msra.gmra.mxu0 %vm421_vm0, %v3092_v2  ;;  %v408_v5 = vpack.c.b16 %v406_v4, %v406_v4  ;;  %v3231_v20 = vpop.eup %3230 }
  0x1f   : > { %v458_v21 = vmul.f32 48.0, %v3231_v20  ;;  %vm462_vm3 = vweird.f32 %v3231_v20  ;;  %579 = vmatpush.bf16.msra.mxu1 %v3695_v50 }
  0x20   : > { %597 = vmatpush.bf16.msra.mxu2 %v3700_v52 }
  0x21   : > { %v459_v22 = vsub.f32 1.0, %v458_v21  ;;  %v3223_v21 = vld [vmem:[%s4680_s2] ss:$0 sm:$0xff] }
  0x23   : > { %v460_v23 = vmul.f32 %v3231_v20, %v459_v22  ;;  %580 = vmatpush.bf16.msra.mxu1 %v3714_v58 }
  0x24   : > { %598 = vmatpush.bf16.msra.mxu2 %v3719_v61 }
  0x25   : > { %v461_v24 = vadd.f32 %v3231_v20, %v460_v23 }
  0x27   : > { %v3645_v25 = vsel %vm462_vm3, %v3231_v20, %v461_v24  ;;  %vm665_vm3 = vcmask 131072  }
  0x2e   : > { %2936 = vmatmul.msk.bf16.gmra.mxu0 %vm421_vm0, %v408_v5 }
  0x9b   : > { %v437_v7 = vpop.f32.mrf.mxu0 }
  0x9c   : > { %v3627_v8 = vadd.f32 %v437_v7, %v398_v6 }
  0x9e   : > { %v447_v9 = vsel %vm446_vm1, %v3627_v8, 0.0 }
  0x9f   : > { %448 = vadd.xlane.f32.xlu0 %v447_v9 }
  0xa3   : > { %v439_v11 = vpop.f32.mrf.mxu0 }
  0xa4   : > { %v3634_v12 = vadd.f32 %v439_v11, %v399_v10 }
  0xa6   : > { %v450_v13 = vsel %vm446_vm1, %v3634_v12, 0.0 }
  0xa7   : > { %451 = vadd.xlane.f32.xlu0 %v450_v13 }
  0xab   : > { %v442_v15 = vpop.f32.mrf.mxu0 }
  0xac   : > { %v3641_v16 = vadd.f32 %v442_v15, %v400_v14 }
  0xae   : > { %v454_v17 = vsel %vm453_vm2, %v3641_v16, 0.0 }
  0xaf   : > { %455 = vadd.xlane.f32.xlu1 %v454_v17 }
  0xb3   : > { %v444_v18 = vpop.f32.mrf.mxu0 }
 0x112   : > { %v449_v26 = vpop.xlane.xlu0 %448 }
 0x113   : > { %v464_v27 = vmul.f32 %v3645_v25, %v449_v26 }
 0x115   : > { %v3649_v28 = vsub.f32 %v3627_v8, %v464_v27 }
 0x117   : > { %v470_v29 = vmul.f32 %v3649_v28, %v3649_v28 }
 0x119   : > { %v473_v30 = vsel %vm446_vm1, %v470_v29, 0.0 }
 0x11a   : > { %474 = vadd.xlane.f32.xlu1 %v473_v30  ;;  %v452_v31 = vpop.xlane.xlu0 %451  ;;  %v3224_v30 = vld [vmem:[%s4680_s2 + $0x1] ss:$0 sm:$0xff] }
 0x11b   : > { %v465_v32 = vmul.f32 %v3645_v25, %v452_v31 }
 0x11d   : > { %v3656_v33 = vsub.f32 %v3634_v12, %v465_v32 }
 0x11f   : > { %v471_v34 = vmul.f32 %v3656_v33, %v3656_v33 }
 0x121   : > { %v476_v35 = vsel %vm446_vm1, %v471_v34, 0.0 }
 0x122   : > { %v456_v36 = vpop.xlane.xlu1 %455  ;;  %477 = vadd.xlane.f32.xlu2 %v476_v35 }
 0x123   : > { %v466_v37 = vmul.f32 %v3645_v25, %v456_v36 }
 0x125   : > { %v3663_v38 = vsub.f32 %v3641_v16, %v466_v37 }
 0x127   : > { %v472_v39 = vmul.f32 %v3663_v38, %v3663_v38 }
 0x129   : > { %v479_v40 = vsel %vm453_vm2, %v472_v39, 0.0 }
 0x12a   : > { %480 = vadd.xlane.f32.xlu2 %v479_v40 }
 0x18d   : > { %v475_v53 = vpop.xlane.xlu1 %474 }
 0x18e   : > { %v482_v54 = vmul.f32 %v475_v53, %v3645_v25 }
 0x190   : > { %v485_v60 = vadd.f32 1e-06, %v482_v54 }
 0x192   : > { %3232 = vrsqrt.f32 %v485_v60  ;;  %vm494_vm5 = vweird.f32 %v485_v60 }
 0x195   : > { %v478_v62 = vpop.xlane.xlu2 %477 }
 0x196   : > { %v483_v63 = vmul.f32 %v478_v62, %v3645_v25 }
 0x198   : > { %v3233_v0 = vpop.eup %3232  ;;  %v486_v1 = vadd.f32 1e-06, %v483_v63 }
 0x199   : > { %v489_v2 = vmul.f32 %v3233_v0, %v485_v60  ;;  %vm495_vm4 = vweird.f32 %v3233_v0 }
 0x19a   : > { %3234 = vrsqrt.f32 %v486_v1  ;;  %vm496_vm6 = vmor %vm494_vm5, %vm495_vm4  ;;  %vm504_vm8 = vweird.f32 %v486_v1  ;;  %vm1401_vm4 = vcmask 130048   ;;  %vm1405_vm5 = vcmask 195584  }
 0x19b   : > { %v490_v3 = vmul.f32 %v3233_v0, %v489_v2 }
 0x19d   : > { %v491_v4 = vmul.f32 0.5, %v490_v3  ;;  %v481_v5 = vpop.xlane.xlu2 %480 }
 0x19e   : > { %v484_v6 = vmul.f32 %v481_v5, %v3645_v25 }
 0x19f   : > { %v492_v7 = vsub.f32 1.5, %v491_v4 }
 0x1a0   : > { %v3235_v9 = vpop.eup %3234  ;;  %v487_v10 = vadd.f32 1e-06, %v484_v6 }
 0x1a1   : > { %v493_v11 = vmul.f32 %v3233_v0, %v492_v7  ;;  %v499_v13 = vmul.f32 %v3235_v9, %v486_v1  ;;  %vm505_vm7 = vweird.f32 %v3235_v9 }
 0x1a2   : > { %3236 = vrsqrt.f32 %v487_v10  ;;  %vm506_vm9 = vmor %vm504_vm8, %vm505_vm7  ;;  %vm514_vm11 = vweird.f32 %v487_v10 }
 0x1a3   : > { %v500_v14 = vmul.f32 %v3235_v9, %v499_v13  ;;  %v497_v15 = vsel %vm496_vm6, %v3233_v0, %v493_v11  ;;  %vm1412_vm6 = vcmask 326656  }
 0x1a4   : > { %v518_v20 = vmul.f32 %v497_v15, %v3649_v28 }
 0x1a5   : > { %v501_v17 = vmul.f32 0.5, %v500_v14 }
 0x1a6   : > { %v522_v29 = vmul.f32 %v3223_v21, %v518_v20 }
 0x1a7   : > { %v502_v18 = vsub.f32 1.5, %v501_v17 }
 0x1a8   : > { %v3237_v19 = vpop.eup %3236  ;;  %v526_v34 = vadd.f32 %v3224_v30, %v522_v29 }
 0x1a9   : > { %v503_v22 = vmul.f32 %v3235_v9, %v502_v18  ;;  %v509_v23 = vmul.f32 %v3237_v19, %v487_v10  ;;  %vm515_vm10 = vweird.f32 %v3237_v19 }
 0x1aa   : > { %vm516_vm12 = vmor %vm514_vm11, %vm515_vm10 }
 0x1ab   : > { %v507_v24 = vsel %vm506_vm9, %v3235_v9, %v503_v22  ;;  %v510_v26 = vmul.f32 %v3237_v19, %v509_v23 }
 0x1ac   : > { %v519_v27 = vmul.f32 %v507_v24, %v3656_v33 }
 0x1ad   : > { %v511_v31 = vmul.f32 0.5, %v510_v26 }
 0x1ae   : > { %v523_v32 = vmul.f32 %v3223_v21, %v519_v27 }
 0x1af   : > { %v512_v28 = vsub.f32 1.5, %v511_v31 }
 0x1b0   : > { %v527_v35 = vadd.f32 %v3224_v30, %v523_v32 }
 0x1b1   : > { %v513_v36 = vmul.f32 %v3237_v19, %v512_v28 }
 0x1b2   : > { %v529_v37 = vpack.c.bf16 %v527_v35, %v526_v34 }
 0x1b3   : > { %v517_v39 = vsel %vm516_vm12, %v3237_v19, %v513_v36 }
 0x1b4   : > { %2961 = vmatmul.msk.bf16.vlgmr.msra.gmra.mxu1 %vm446_vm1, %v529_v37  ;;  %2963 = vmatmul.msk.bf16.vlgmr.msra.gmra.mxu2 %vm446_vm1, %v529_v37  ;;  %v520_v33 = vmul.f32 %v517_v39, %v3663_v38 }
 0x1b6   : > { %v524_v40 = vmul.f32 %v3223_v21, %v520_v33 }
 0x1b8   : > { %v528_v41 = vadd.f32 %v3224_v30, %v524_v40  ;;  %v3502_v40 = vmov 0  }
 0x1ba   : > { %v530_v42 = vpack.c.bf16 %v528_v41, %v528_v41  ;;  %v3829_v41 = vsel %vm715_vm14, 65535, %v3502_v40 }
 0x1c4   : > { %2962 = vmatmul.msk.bf16.gmra.mxu1 %vm446_vm1, %v530_v42  ;;  %2964 = vmatmul.msk.bf16.gmra.mxu2 %vm446_vm1, %v530_v42 }
 0x231   : > { %v582_v43 = vpop.f32.mrf.mxu1 }
 0x237   : > { %v600_v45 = vpop.f32.mrf.mxu2 }
 0x238   : > { %v3738_v48 = vpack.c.bf16 %v600_v45, %v582_v43 }
 0x239   : > { %v584_v47 = vpop.f32.mrf.mxu1 }
 0x23a   : > { %v615_v54 = vunpack.c.l.b16 %v3738_v48 }
 0x23f   : > { %v602_v49 = vpop.f32.mrf.mxu2 }
 0x240   : > { %v3740_v51 = vpack.c.bf16 %v602_v49, %v584_v47 }
 0x241   : > { %v587_v53 = vpop.f32.mrf.mxu1 }
 0x242   : > { %v616_v38 = vunpack.c.l.b16 %v3740_v51 }
 0x244   : > { %v3744_v55 = vpack.c.b16 %v616_v38, %v615_v54 }
 0x246   : > { %620 = vrot.lane.b32.xlu2 %v3744_v55, %s4704_s13 }
 0x247   : > { %v605_v56 = vpop.f32.mrf.mxu2 }
 0x248   : > { %v3748_v57 = vpack.c.bf16 %v605_v56, %v587_v53 }
 0x249   : > { %v589_v59 = vpop.f32.mrf.mxu1 }
 0x24a   : > { %v617_v60 = vunpack.c.l.b16 %v3748_v57 }
 0x24c   : > { %v3751_v62 = vpack.c.b16 %v617_v60, %v617_v60 }
 0x24e   : > { %739 = vrot.lane.b32.xlu2 %v3744_v55, %s3488_s14  ;;  %745 = vrot.lane.b32.xlu1 %v3751_v62, %s3489_s15 }
 0x24f   : > { %622 = vrot.lane.b32.xlu0 %v3751_v62, %s4704_s13  ;;  %v607_v63 = vpop.f32.mrf.mxu2  ;;  %s4727_s13 = smov 40  }
 0x256   : > { %979 = vrot.lane.b32.xlu2 %v3751_v62, %s4698_s16  ;;  %862 = vrot.lane.b32.xlu1 %v3751_v62, %s4690_s22 }
 0x257   : > { %743 = vrot.lane.b32.xlu0 %v3744_v55, %s3489_s15 }
 0x25e   : > { %856 = vrot.lane.b32.xlu2 %v3744_v55, %s4694_s24  ;;  %860 = vrot.lane.b32.xlu1 %v3744_v55, %s4690_s22  ;;  %s4706_s22 = smov 24  }
 0x25f   : > { %741 = vrot.lane.b32.xlu0 %v3751_v62, %s3488_s14 }
 0x266   : > { %1096 = vrot.lane.b32.xlu2 %v3751_v62, %s4692_s25  ;;  %973 = vrot.lane.b32.xlu1 %v3744_v55, %s4696_s29 }
 0x267   : > { %977 = vrot.lane.b32.xlu0 %v3744_v55, %s4698_s16  ;;  %s4710_s16 = smov 32  }
 0x26e   : > { %1094 = vrot.lane.b32.xlu2 %v3744_v55, %s4692_s25  ;;  %975 = vrot.lane.b32.xlu1 %v3751_v62, %s4696_s29  ;;  %s4700_s25 = smov 96   ;;  %s4708_s29 = smov 8  }
 0x26f   : > { %858 = vrot.lane.b32.xlu0 %v3751_v62, %s4694_s24  ;;  %s4712_s24 = smov 16  }
 0x276   : > { %1211 = vrot.lane.b32.xlu2 %v3744_v55, %s4702_s30  ;;  %1215 = vrot.lane.b32.xlu1 %v3744_v55, %s4714_s12 }
 0x277   : > { %1217 = vrot.lane.b32.xlu0 %v3751_v62, %s4714_s12 }
 0x27e   : > { %824 = vrot.lane.b32.xlu2 %v3744_v55, %s4706_s22  ;;  %1092 = vrot.lane.b32.xlu1 %v3751_v62, %s4700_s25 }
 0x27f   : > { %1090 = vrot.lane.b32.xlu0 %v3744_v55, %s4700_s25  ;;  %s4730_s25 = smov 32  }
 0x286   : > { %943 = vrot.lane.b32.xlu2 %v3751_v62, %s4712_s24  ;;  %1058 = vrot.lane.b32.xlu1 %v3744_v55, %s4708_s29 }
 0x287   : > { %1213 = vrot.lane.b32.xlu0 %v3751_v62, %s4702_s30  ;;  %s4723_s30 = smov 56  }
 0x28e   : > { %826 = vrot.lane.b32.xlu1 %v3751_v62, %s4706_s22 }
 0x28f   : > { %704 = vrot.lane.b32.xlu0 %v3744_v55, %s4710_s16 }
 0x296   : > { %1060 = vrot.lane.b32.xlu1 %v3751_v62, %s4708_s29 }
 0x297   : > { %706 = vrot.lane.b32.xlu0 %v3751_v62, %s4710_s16 }
 0x2a0   : > { %v621_v0 = vpop.permute.xlu2 %620 }
 0x2a1   : > { %v632_v13 = vsel %vm624_vm13, %v621_v0, 0 }
 0x2a8   : > { %v740_v1 = vpop.permute.xlu2 %739 }
 0x2b0   : > { %v980_v2 = vpop.permute.xlu2 %979 }
 0x2b1   : > { %v991_v15 = vsel %vm624_vm13, %v980_v2, 0 }
 0x2b8   : > { %v857_v7 = vpop.permute.xlu2 %856 }
 0x2c0   : > { %v746_v3 = vpop.permute.xlu1 %745  ;;  %v1097_v17 = vpop.permute.xlu2 %1096 }
 0x2c1   : > { %v623_v4 = vpop.permute.xlu0 %622  ;;  %v757_v5 = vsel %vm624_vm13, %v746_v3, 0  ;;  %v1108_v21 = vsel %vm624_vm13, %v1097_v17, 0 }
 0x2c2   : > { %v635_v6 = vsel %vm624_vm13, %v623_v4, 0  ;;  %765 = vmatpush.bf16.xpose.msrb.mxu1 %v757_v5 }
 0x2c3   : > { %643 = vmatpush.bf16.xpose.msra.mxu3 %v635_v6 }
 0x2c8   : > { %v863_v9 = vpop.permute.xlu1 %862  ;;  %v1095_v23 = vpop.permute.xlu2 %1094 }
 0x2c9   : > { %v744_v10 = vpop.permute.xlu0 %743  ;;  %v874_v11 = vsel %vm624_vm13, %v863_v9, 0  ;;  %v1105_v27 = vsel %vm624_vm13, %v1095_v23, 0 }
 0x2ca   : > { %v754_v14 = vsel %vm624_vm13, %v744_v10, 0 }
 0x2cb   : > { %644 = vmatpush.bf16.xpose.msra.mxu3 %v632_v13  ;;  %766 = vmatpush.bf16.xpose.msrb.mxu1 %v754_v14 }
 0x2d0   : > { %v861_v18 = vpop.permute.xlu1 %860  ;;  %v1212_v37 = vpop.permute.xlu2 %1211 }
 0x2d1   : > { %v742_v19 = vpop.permute.xlu0 %741  ;;  %v871_v20 = vsel %vm624_vm13, %v861_v18, 0 }
 0x2d2   : > { %2965 = vmatmul.msk.bf16.vlgmr.msra.gmra.mxu3 %vm624_vm13, %v3744_v55  ;;  %2969 = vmatmul.msk.bf16.vlgmr.msrb.gmra.mxu1 %vm624_vm13, %v740_v1 }
 0x2d3   : > { %882 = vmatpush.bf16.xpose.msrb.mxu3 %v874_v11  ;;  %999 = vmatpush.bf16.xpose.msra.mxu1 %v991_v15 }
 0x2d8   : > { %v974_v22 = vpop.permute.xlu1 %973  ;;  %v825_v47 = vpop.permute.xlu2 %824 }
 0x2d9   : > { %v978_v24 = vpop.permute.xlu0 %977 }
 0x2da   : > { %v988_v26 = vsel %vm624_vm13, %v978_v24, 0 }
 0x2db   : > { %883 = vmatpush.bf16.xpose.msrb.mxu3 %v871_v20  ;;  %1000 = vmatpush.bf16.xpose.msra.mxu1 %v988_v26 }
 0x2e0   : > { %v976_v29 = vpop.permute.xlu1 %975  ;;  %v944_v56 = vpop.permute.xlu2 %943 }
 0x2e1   : > { %v859_v30 = vpop.permute.xlu0 %858  ;;  %v953_v59 = vand.u32 %v944_v56, %v3829_v41 }
 0x2e2   : > { %2966 = vmatmul.msk.bf16.gmra.mxu3 %vm624_vm13, %v3751_v62  ;;  %2970 = vmatmul.msk.bf16.gmra.mxu1 %vm624_vm13, %v742_v19 }
 0x2e3   : > { %1116 = vmatpush.bf16.xpose.msra.mxu3 %v1108_v21 }
 0x2e8   : > { %v1216_v31 = vpop.permute.xlu1 %1215 }
 0x2e9   : > { %v1218_v32 = vpop.permute.xlu0 %1217  ;;  %v1226_v36 = vsel %vm624_vm13, %v1216_v31, 0 }
 0x2ea   : > { %v1229_v28 = vsel %vm624_vm13, %v1218_v32, 0 }
 0x2eb   : > { %1117 = vmatpush.bf16.xpose.msra.mxu3 %v1105_v27  ;;  %1237 = vmatpush.bf16.xpose.msrb.mxu1 %v1229_v28 }
 0x2f0   : > { %v1093_v34 = vpop.permute.xlu1 %1092 }
 0x2f1   : > { %v1091_v35 = vpop.permute.xlu0 %1090 }
 0x2f2   : > { %2973 = vmatmul.msk.bf16.vlgmr.msrb.gmra.mxu3 %vm624_vm13, %v857_v7  ;;  %2977 = vmatmul.msk.bf16.vlgmr.msra.gmra.mxu1 %vm624_vm13, %v974_v22 }
 0x2f3   : > { %1238 = vmatpush.bf16.xpose.msrb.mxu1 %v1226_v36 }
 0x2f8   : > { %v1059_v39 = vpop.permute.xlu1 %1058 }
 0x2f9   : > { %v1214_v33 = vpop.permute.xlu0 %1213 }
 0x300   : > { %v827_v42 = vpop.permute.xlu1 %826 }
 0x301   : > { %v836_v43 = vand.u32 %v827_v42, %v3829_v41  ;;  %v705_v45 = vpop.permute.xlu0 %704 }
 0x302   : > { %2974 = vmatmul.msk.bf16.gmra.mxu3 %vm624_vm13, %v859_v30  ;;  %2978 = vmatmul.msk.bf16.gmra.mxu1 %vm624_vm13, %v976_v29 }
 0x303   : > { %844 = vmatpush.bf16.msrb.mxu2 %v836_v43 }
 0x307   : > { %845 = vmatpush.bf16.msrb.mxu2 %v825_v47 }
 0x308   : > { %v1061_v49 = vpop.permute.xlu1 %1060 }
 0x309   : > { %v1070_v53 = vand.u32 %v1061_v49, %v3829_v41  ;;  %v707_v54 = vpop.permute.xlu0 %706 }
 0x30a   : > { %v719_v38 = vand.u32 %v3829_v41, %v707_v54 }
 0x30b   : > { %1078 = vmatpush.bf16.msra.mxu2 %v1070_v53 }
 0x30c   : > { %727 = vmatpush.bf16.msrb.mxu0 %v719_v38 }
 0x30f   : > { %1079 = vmatpush.bf16.msra.mxu2 %v1059_v39 }
 0x310   : > { %728 = vmatpush.bf16.msrb.mxu0 %v705_v45 }
 0x312   : > { %2981 = vmatmul.msk.bf16.vlgmr.msra.gmra.mxu3 %vm624_vm13, %v1091_v35  ;;  %2985 = vmatmul.msk.bf16.vlgmr.msrb.gmra.mxu1 %vm624_vm13, %v1212_v37 }
 0x314   : > { %961 = vmatpush.bf16.msra.mxu0 %v953_v59 }
 0x322   : > { %2982 = vmatmul.msk.bf16.gmra.mxu3 %vm624_vm13, %v1093_v34  ;;  %2986 = vmatmul.msk.bf16.gmra.mxu1 %vm624_vm13, %v1214_v33 }
 0x34f   : > { %v768_v60 = vpop.f32.mrf.mxu1 }
 0x350   : > { %v3841_v62 = vmul.f32 0.35355338, %v768_v60 }
 0x352   : > { %v780_v63 = vsel %vm658_vm15, %v3841_v62, -inf }
 0x353   : > { %781 = vmax.xlane.f32.xlu2 %v780_v63 }
 0x355   : > { %v646_v0 = vpop.f32.mrf.mxu3 }
 0x356   : > { %v3845_v1 = vmul.f32 0.35355338, %v646_v0 }
 0x357   : > { %v770_v2 = vpop.f32.mrf.mxu1 }
 0x358   : > { %v3847_v3 = vmul.f32 0.35355338, %v770_v2  ;;  %v659_v4 = vsel %vm658_vm15, %v3845_v1, -inf }
 0x359   : > { %660 = vmax.xlane.f32.xlu0 %v659_v4 }
 0x35a   : > { %v783_v5 = vsel %vm658_vm15, %v3847_v3, -inf }
 0x35b   : > { %784 = vmax.xlane.f32.xlu1 %v783_v5 }
 0x35d   : > { %v648_v6 = vpop.f32.mrf.mxu3 }
 0x35e   : > { %v3853_v7 = vmul.f32 0.35355338, %v648_v6 }
 0x35f   : > { %v773_v9 = vpop.f32.mrf.mxu1 }
 0x360   : > { %v3855_v10 = vmul.f32 0.35355338, %v773_v9  ;;  %v662_v11 = vsel %vm658_vm15, %v3853_v7, -inf }
 0x361   : > { %663 = vmax.xlane.f32.xlu2 %v662_v11 }
 0x362   : > { %v786_v13 = vsel %vm665_vm3, %v3855_v10, -inf }
 0x363   : > { %787 = vmax.xlane.f32.xlu1 %v786_v13 }
 0x365   : > { %v651_v14 = vpop.f32.mrf.mxu3 }
 0x366   : > { %v3861_v15 = vmul.f32 0.35355338, %v651_v14 }
 0x367   : > { %v775_v17 = vpop.f32.mrf.mxu1 }
 0x368   : > { %v666_v18 = vsel %vm665_vm3, %v3861_v15, -inf }
 0x369   : > { %667 = vmax.xlane.f32.xlu0 %v666_v18 }
 0x36d   : > { %v653_v19 = vpop.f32.mrf.mxu3 }
 0x36f   : > { %v1002_v20 = vpop.f32.mrf.mxu1 }
 0x370   : > { %v3865_v21 = vmul.f32 0.35355338, %v1002_v20 }
 0x372   : > { %v1014_v22 = vsel %vm658_vm15, %v3865_v21, -inf }
 0x373   : > { %1015 = vmax.xlane.f32.xlu2 %v1014_v22 }
 0x375   : > { %v885_v23 = vpop.f32.mrf.mxu3 }
 0x376   : > { %v3869_v24 = vmul.f32 0.35355338, %v885_v23 }
 0x377   : > { %v1004_v26 = vpop.f32.mrf.mxu1 }
 0x378   : > { %v897_v27 = vsel %vm658_vm15, %v3869_v24, -inf  ;;  %v3889_v49 = vmul.f32 0.35355338, %v1004_v26 }
 0x379   : > { %898 = vmax.xlane.f32.xlu0 %v897_v27 }
 0x37a   : > { %v1017_v38 = vsel %vm658_vm15, %v3889_v49, -inf }
 0x37c   : > { %941 = vrot.lane.b32.xlu1 %v3744_v55, %s4712_s24 }
 0x37d   : > { %v887_v29 = vpop.f32.mrf.mxu3 }
 0x37e   : > { %v3875_v30 = vmul.f32 0.35355338, %v887_v29 }
 0x37f   : > { %v1007_v31 = vpop.f32.mrf.mxu1 }
 0x380   : > { %v900_v32 = vsel %vm658_vm15, %v3875_v30, -inf  ;;  %v3899_v63 = vmul.f32 0.35355338, %v1007_v31 }
 0x381   : > { %901 = vmax.xlane.f32.xlu2 %v900_v32 }
 0x382   : > { %v1020_v2 = vsel %vm665_vm3, %v3899_v63, -inf }
 0x385   : > { %v890_v28 = vpop.f32.mrf.mxu3 }
 0x386   : > { %v3903_v4 = vmul.f32 0.35355338, %v890_v28 }
 0x387   : > { %v1009_v34 = vpop.f32.mrf.mxu1 }
 0x388   : > { %v903_v5 = vsel %vm665_vm3, %v3903_v4, -inf }
 0x38d   : > { %v892_v35 = vpop.f32.mrf.mxu3 }
 0x38f   : > { %v1240_v36 = vpop.f32.mrf.mxu1 }
 0x390   : > { %v3879_v37 = vmul.f32 0.35355338, %v1240_v36 }
 0x392   : > { %v1252_v39 = vsel %vm658_vm15, %v3879_v37, -inf }
 0x393   : > { %1253 = vmax.xlane.f32.xlu2 %v1252_v39 }
 0x395   : > { %v1119_v33 = vpop.f32.mrf.mxu3 }
 0x396   : > { %v3907_v6 = vmul.f32 0.35355338, %v1119_v33 }
 0x397   : > { %v1242_v55 = vpop.f32.mrf.mxu1 }
 0x398   : > { %v3883_v40 = vmul.f32 0.35355338, %v1242_v55  ;;  %v1131_v9 = vsel %vm658_vm15, %v3907_v6, -inf }
 0x39a   : > { %v1255_v42 = vsel %vm658_vm15, %v3883_v40, -inf }
 0x39b   : > { %1256 = vmax.xlane.f32.xlu2 %v1255_v42 }
 0x39d   : > { %v1121_v43 = vpop.f32.mrf.mxu3 }
 0x39e   : > { %v3887_v45 = vmul.f32 0.35355338, %v1121_v43 }
 0x39f   : > { %v1245_v47 = vpop.f32.mrf.mxu1 }
 0x3a0   : > { %v1134_v53 = vsel %vm658_vm15, %v3887_v45, -inf  ;;  %v3911_v11 = vmul.f32 0.35355338, %v1245_v47 }
 0x3a2   : > { %v1258_v13 = vsel %vm665_vm3, %v3911_v11, -inf }
 0x3a3   : > { %1135 = vmax.xlane.f32.xlu2 %v1134_v53 }
 0x3a5   : > { %v1124_v54 = vpop.f32.mrf.mxu3 }
 0x3a6   : > { %v3895_v56 = vmul.f32 0.35355338, %v1124_v54  ;;  %1018 = vmax.xlane.f32.xlu1 %v1017_v38 }
 0x3a7   : > { %v1247_v59 = vpop.f32.mrf.mxu1 }
 0x3a8   : > { %v1137_v60 = vsel %vm665_vm3, %v3895_v56, -inf }
 0x3a9   : > { %1138 = vmax.xlane.f32.xlu0 %v1137_v60 }
 0x3ad   : > { %v1126_v0 = vpop.f32.mrf.mxu3 }
 0x3ae   : > { %1021 = vmax.xlane.f32.xlu1 %v1020_v2 }
 0x3b6   : > { %904 = vmax.xlane.f32.xlu1 %v903_v5 }
 0x3be   : > { %1132 = vmax.xlane.f32.xlu1 %v1131_v9 }
 0x3c6   : > { %1259 = vmax.xlane.f32.xlu1 %v1258_v13  ;;  %v782_v14 = vpop.xlane.xlu2 %781 }
 0x3c7   : > { %v789_v17 = vsub.f32 %v3841_v62, %v782_v14 }
 0x3c9   : > { %v792_v18 = vmul.f32 1.442695, %v789_v17 }
 0x3cb   : > { %3238 = vpow2.f32 %v792_v18 }
 0x3cc   : > { %v661_v19 = vpop.xlane.xlu0 %660 }
 0x3cd   : > { %v669_v20 = vsub.f32 %v3845_v1, %v661_v19 }
 0x3ce   : > { %v785_v22 = vpop.xlane.xlu1 %784 }
 0x3cf   : > { %v672_v23 = vmul.f32 1.442695, %v669_v20  ;;  %v790_v26 = vsub.f32 %v3847_v3, %v785_v22 }
 0x3d1   : > { %v3918_v27 = vpop.eup %3238  ;;  %3240 = vpow2.f32 %v672_v23  ;;  %v794_v29 = vmul.f32 1.442695, %v790_v26 }
 0x3d2   : > { %v798_v31 = vsel %vm658_vm15, %v3918_v27, 0.0 }
 0x3d3   : > { %3242 = vpow2.f32 %v794_v29  ;;  %799 = vadd.xlane.f32.xlu0 %v798_v31 }
 0x3d4   : > { %v664_v32 = vpop.xlane.xlu2 %663 }
 0x3d5   : > { %v670_v62 = vsub.f32 %v3853_v7, %v664_v32 }
 0x3d6   : > { %v788_v28 = vpop.xlane.xlu1 %787 }
 0x3d7   : > { %v3923_v34 = vpop.eup %3240  ;;  %v674_v1 = vmul.f32 1.442695, %v670_v62  ;;  %v791_v35 = vsub.f32 %v3855_v10, %v788_v28 }
 0x3d8   : > { %v678_v33 = vsel %vm658_vm15, %v3923_v34, 0.0 }
 0x3d9   : > { %v3926_v36 = vpop.eup %3242  ;;  %3244 = vpow2.f32 %v674_v1  ;;  %v796_v3 = vmul.f32 1.442695, %v791_v35 }
 0x3da   : > { %v801_v39 = vsel %vm658_vm15, %v3926_v36, 0.0 }
 0x3db   : > { %3246 = vpow2.f32 %v796_v3  ;;  %802 = vadd.xlane.f32.xlu2 %v801_v39  ;;  %679 = vadd.xlane.f32.xlu0 %v678_v33 }
 0x3dc   : > { %v668_v7 = vpop.xlane.xlu0 %667 }
 0x3dd   : > { %v671_v55 = vsub.f32 %v3861_v15, %v668_v7 }
 0x3df   : > { %v3933_v42 = vpop.eup %3244  ;;  %v676_v43 = vmul.f32 1.442695, %v671_v55 }
 0x3e0   : > { %v681_v53 = vsel %vm658_vm15, %v3933_v42, 0.0 }
 0x3e1   : > { %v3935_v10 = vpop.eup %3246  ;;  %3248 = vpow2.f32 %v676_v43 }
 0x3e2   : > { %v804_v47 = vsel %vm665_vm3, %v3935_v10, 0.0 }
 0x3e3   : > { %805 = vadd.xlane.f32.xlu0 %v804_v47  ;;  %682 = vadd.xlane.f32.xlu2 %v681_v53 }
 0x3e6   : > { %v1016_v54 = vpop.xlane.xlu2 %1015 }
 0x3e7   : > { %v3941_v38 = vpop.eup %3248  ;;  %v1023_v59 = vsub.f32 %v3865_v21, %v1016_v54 }
 0x3e8   : > { %v684_v15 = vsel %vm665_vm3, %v3941_v38, 0.0 }
 0x3e9   : > { %v1026_v60 = vmul.f32 1.442695, %v1023_v59  ;;  %685 = vadd.xlane.f32.xlu1 %v684_v15 }
 0x3eb   : > { %3250 = vpow2.f32 %v1026_v60 }
 0x3ec   : > { %v899_v0 = vpop.xlane.xlu0 %898 }
 0x3ed   : > { %v906_v2 = vsub.f32 %v3869_v24, %v899_v0 }
 0x3ee   : > { %v942_v5 = vpop.permute.xlu1 %941 }
 0x3ef   : > { %v909_v9 = vmul.f32 1.442695, %v906_v2  ;;  %962 = vmatpush.bf16.msra.mxu0 %v942_v5 }
 0x3f1   : > { %v3947_v13 = vpop.eup %3250  ;;  %3252 = vpow2.f32 %v909_v9 }
 0x3f2   : > { %v1032_v14 = vsel %vm658_vm15, %v3947_v13, 0.0 }
 0x3f3   : > { %1033 = vadd.xlane.f32.xlu1 %v1032_v14 }
 0x3f4   : > { %v902_v21 = vpop.xlane.xlu2 %901 }
 0x3f5   : > { %v907_v17 = vsub.f32 %v3875_v30, %v902_v21 }
 0x3f7   : > { %v3952_v18 = vpop.eup %3252  ;;  %v911_v19 = vmul.f32 1.442695, %v907_v17 }
 0x3f8   : > { %v915_v20 = vsel %vm658_vm15, %v3952_v18, 0.0 }
 0x3f9   : > { %3254 = vpow2.f32 %v911_v19  ;;  %916 = vadd.xlane.f32.xlu0 %v915_v20 }
 0x3ff   : > { %v3956_v24 = vpop.eup %3254 }
 0x400   : > { %v918_v22 = vsel %vm658_vm15, %v3956_v24, 0.0 }
 0x401   : > { %919 = vadd.xlane.f32.xlu2 %v918_v22 }
 0x406   : > { %v1254_v31 = vpop.xlane.xlu2 %1253 }
 0x40e   : > { %v1257_v35 = vpop.xlane.xlu2 %1256 }
 0x40f   : > { %v1262_v54 = vsub.f32 %v3883_v40, %v1257_v35 }
 0x411   : > { %v1266_v60 = vmul.f32 1.442695, %v1262_v54 }
 0x416   : > { %v1136_v43 = vpop.xlane.xlu2 %1135 }
 0x419   : > { %v1019_v23 = vpop.xlane.xlu1 %1018 }
 0x41a   : > { %v1024_v26 = vsub.f32 %v3889_v49, %v1019_v23  ;;  %v1261_v49 = vsub.f32 %v3879_v37, %v1254_v31 }
 0x41c   : > { %v1028_v29 = vmul.f32 1.442695, %v1024_v26  ;;  %v1264_v55 = vmul.f32 1.442695, %v1261_v49  ;;  %v1169_v49 = vrot.slane %v3748_v57, 4 }
 0x41e   : > { %3256 = vpow2.f32 %v1028_v29  ;;  %v1180_v54 = vunpack.c.l.b16 %v1169_v49 }
 0x421   : > { %v1022_v30 = vpop.xlane.xlu1 %1021 }
 0x422   : > { %v1025_v32 = vsub.f32 %v3899_v63, %v1022_v30 }
 0x424   : > { %v3962_v62 = vpop.eup %3256  ;;  %v1030_v28 = vmul.f32 1.442695, %v1025_v32 }
 0x425   : > { %v1035_v1 = vsel %vm658_vm15, %v3962_v62, 0.0 }
 0x426   : > { %3258 = vpow2.f32 %v1030_v28  ;;  %1036 = vadd.xlane.f32.xlu1 %v1035_v1 }
 0x429   : > { %v905_v3 = vpop.xlane.xlu1 %904 }
 0x42a   : > { %v908_v39 = vsub.f32 %v3903_v4, %v905_v3  ;;  %v1141_v4 = vsub.f32 %v3887_v45, %v1136_v43 }
 0x42c   : > { %v3967_v33 = vpop.eup %3258  ;;  %v913_v7 = vmul.f32 1.442695, %v908_v39  ;;  %v1145_v0 = vmul.f32 1.442695, %v1141_v4 }
 0x42d   : > { %v1038_v63 = vsel %vm665_vm3, %v3967_v33, 0.0 }
 0x42e   : > { %3260 = vpow2.f32 %v913_v7  ;;  %1039 = vadd.xlane.f32.xlu2 %v1038_v63 }
 0x42f   : > { %3262 = vpow2.f32 %v1264_v55 }
 0x431   : > { %v1133_v47 = vpop.xlane.xlu1 %1132 }
 0x432   : > { %v1140_v53 = vsub.f32 %v3907_v6, %v1133_v47  ;;  %v1139_v6 = vpop.xlane.xlu0 %1138 }
 0x433   : > { %v1142_v28 = vsub.f32 %v3895_v56, %v1139_v6 }
 0x434   : > { %v3974_v59 = vpop.eup %3260  ;;  %v1143_v15 = vmul.f32 1.442695, %v1140_v53 }
 0x435   : > { %v921_v37 = vsel %vm665_vm3, %v3974_v59, 0.0  ;;  %v3979_v2 = vpop.eup %3262  ;;  %v1147_v7 = vmul.f32 1.442695, %v1142_v28 }
 0x436   : > { %3264 = vpow2.f32 %v1143_v15  ;;  %922 = vadd.xlane.f32.xlu0 %v921_v37  ;;  %v1270_v45 = vsel %vm658_vm15, %v3979_v2, 0.0  ;;  %v1182_v37 = vpack.c.b16 %v1180_v54, %v1180_v54 }
 0x437   : > { %3266 = vpow2.f32 %v1266_v60 }
 0x438   : > { %3268 = vpow2.f32 %v1145_v0 }
 0x439   : > { %v1260_v29 = vpop.xlane.xlu1 %1259 }
 0x43c   : > { %v3981_v5 = vpop.eup %3264 }
 0x43d   : > { %v1149_v40 = vsel %vm658_vm15, %v3981_v5, 0.0  ;;  %v3989_v9 = vpop.eup %3266 }
 0x43e   : > { %1150 = vadd.xlane.f32.xlu2 %v1149_v40  ;;  %1271 = vadd.xlane.f32.xlu0 %v1270_v45  ;;  %v3991_v14 = vpop.eup %3268  ;;  %v1273_v21 = vsel %vm658_vm15, %v3989_v9, 0.0  ;;  %v1167_v40 = vrot.slane %v3738_v48, 4 }
 0x43f   : > { %1288 = vrot.lane.b32.xlu1 %v3738_v48, %s3488_s14  ;;  %v1152_v17 = vsel %vm658_vm15, %v3991_v14, 0.0 }
 0x446   : > { %v800_v19 = vpop.xlane.xlu0 %799  ;;  %1274 = vadd.xlane.f32.xlu0 %v1273_v21  ;;  %1153 = vadd.xlane.f32.xlu2 %v1152_v17 }
 0x447   : > { %3270 = vrcp.f32 %v800_v19 }
 0x44d   : > { %v3271_v23 = vpop.eup %3270 }
 0x44e   : > { %v680_v20 = vpop.xlane.xlu0 %679  ;;  %v803_v22 = vpop.xlane.xlu2 %802  ;;  %v810_v26 = vmul.f32 %v3271_v23, %v3918_v27 }
 0x44f   : > { %3272 = vrcp.f32 %v803_v22 }
 0x450   : > { %3274 = vrcp.f32 %v680_v20  ;;  %v813_v1 = vpack.c.bf16 %v810_v26, %v810_v26  ;;  %v1178_v20 = vunpack.c.l.b16 %v1167_v40 }
 0x452   : > { %v819_v27 = vunpack.c.l.b16 %v813_v1 }
 0x455   : > { %v3273_v31 = vpop.eup %3272 }
 0x456   : > { %v806_v30 = vpop.xlane.xlu0 %805  ;;  %v683_v32 = vpop.xlane.xlu2 %682  ;;  %v811_v35 = vmul.f32 %v3273_v31, %v3926_v36 }
 0x457   : > { %3276 = vrcp.f32 %v806_v30  ;;  %v3275_v3 = vpop.eup %3274 }
 0x458   : > { %3278 = vrcp.f32 %v683_v32  ;;  %v814_v39 = vpack.c.bf16 %v811_v35, %v811_v35  ;;  %v690_v63 = vmul.f32 %v3275_v3, %v3923_v34  ;;  %v1168_v34 = vrot.slane %v3740_v51, 4 }
 0x459   : > { %3280 = vpow2.f32 %v1147_v7  ;;  %v1263_v32 = vsub.f32 %v3911_v11, %v1260_v29 }
 0x45a   : > { %1292 = vrot.lane.b32.xlu0 %v3748_v57, %s3488_s14  ;;  %v820_v55 = vunpack.c.l.b16 %v814_v39  ;;  %v693_v36 = vpack.c.bf16 %v690_v63, %v690_v63  ;;  %v1179_v19 = vunpack.c.l.b16 %v1168_v34 }
 0x45b   : > { %v1268_v35 = vmul.f32 1.442695, %v1263_v32 }
 0x45c   : > { %v686_v47 = vpop.xlane.xlu1 %685  ;;  %v822_v56 = vpack.c.b16 %v820_v55, %v819_v27  ;;  %v699_v60 = vunpack.c.l.b16 %v693_v36  ;;  %v1181_v48 = vpack.c.b16 %v1179_v19, %v1178_v20 }
 0x45d   : > { %v3277_v43 = vpop.eup %3276  ;;  %3282 = vrcp.f32 %v686_v47 }
 0x45e   : > { %v3279_v53 = vpop.eup %3278  ;;  %1290 = vrot.lane.b32.xlu2 %v3740_v51, %s3488_s14  ;;  %2971 = vmatmul.msk.bf16.vlgmr.msrb.gmra.mxu2 %vm658_vm15, %v822_v56  ;;  %v812_v15 = vmul.f32 %v3277_v43, %v3935_v10 }
 0x45f   : > { %v691_v4 = vmul.f32 %v3279_v53, %v3933_v42  ;;  %v4011_v45 = vpop.eup %3280  ;;  %v1191_v42 = vand.u32 %v1182_v37, %v3829_v41 }
 0x460   : > { %v815_v21 = vpack.c.bf16 %v812_v15, %v812_v15  ;;  %v1155_v51 = vsel %vm665_vm3, %v4011_v45, 0.0 }
 0x461   : > { %v694_v57 = vpack.c.bf16 %v691_v4, %v691_v4 }
 0x462   : > { %v821_v10 = vunpack.c.l.b16 %v815_v21 }
 0x463   : > { %v700_v0 = vunpack.c.l.b16 %v694_v57  ;;  %v3283_v17 = vpop.eup %3282 }
 0x464   : > { %v692_v22 = vmul.f32 %v3283_v17, %v3941_v38  ;;  %v823_v23 = vpack.c.b16 %v821_v10, %v821_v10 }
 0x465   : > { %v702_v6 = vpack.c.b16 %v700_v0, %v699_v60 }
 0x466   : > { %v695_v26 = vpack.c.bf16 %v692_v22, %v692_v22  ;;  %v1034_v47 = vpop.xlane.xlu1 %1033 }
 0x467   : > { %2967 = vmatmul.msk.bf16.vlgmr.msrb.gmra.mxu0 %vm658_vm15, %v702_v6 }
 0x468   : > { %1199 = vmatpush.bf16.msrb.mxu0 %v1191_v42  ;;  %v701_v30 = vunpack.c.l.b16 %v695_v26 }
 0x469   : > { %1156 = vadd.xlane.f32.xlu1 %v1155_v51 }
 0x46a   : > { %v703_v1 = vpack.c.b16 %v701_v30, %v701_v30 }
 0x46c   : > { %1200 = vmatpush.bf16.msrb.mxu0 %v1181_v48  ;;  %v917_v31 = vpop.xlane.xlu0 %916 }
 0x46d   : > { %3284 = vrcp.f32 %v917_v31 }
 0x46e   : > { %2972 = vmatmul.msk.bf16.gmra.mxu2 %vm658_vm15, %v823_v23 }
 0x473   : > { %v3285_v3 = vpop.eup %3284 }
 0x474   : > { %v920_v28 = vpop.xlane.xlu2 %919  ;;  %v927_v39 = vmul.f32 %v3285_v3, %v3952_v18 }
 0x475   : > { %3286 = vrcp.f32 %v920_v28 }
 0x476   : > { %3288 = vpow2.f32 %v1268_v35  ;;  %v930_v27 = vpack.c.bf16 %v927_v39, %v927_v39 }
 0x477   : > { %2968 = vmatmul.msk.bf16.gmra.mxu0 %vm658_vm15, %v703_v1  ;;  %3290 = vrcp.f32 %v1034_v47 }
 0x478   : > { %v936_v11 = vunpack.c.l.b16 %v930_v27 }
 0x47b   : > { %v3287_v38 = vpop.eup %3286 }
 0x47c   : > { %v928_v49 = vmul.f32 %v3287_v38, %v3956_v24  ;;  %v4023_v63 = vpop.eup %3288 }
 0x47d   : > { %v1276_v29 = vsel %vm665_vm3, %v4023_v63, 0.0  ;;  %v3291_v53 = vpop.eup %3290 }
 0x47e   : > { %v931_v7 = vpack.c.bf16 %v928_v49, %v928_v49  ;;  %v1044_v18 = vmul.f32 %v3291_v53, %v3947_v13 }
 0x480   : > { %v937_v55 = vunpack.c.l.b16 %v931_v7  ;;  %v1047_v54 = vpack.c.bf16 %v1044_v18, %v1044_v18 }
 0x482   : > { %v939_v43 = vpack.c.b16 %v937_v55, %v936_v11  ;;  %v1053_v15 = vunpack.c.l.b16 %v1047_v54 }
 0x484   : > { %1277 = vadd.xlane.f32.xlu0 %v1276_v29 }
 0x487   : > { %2975 = vmatmul.msk.bf16.vlgmr.msra.gmra.mxu0 %vm658_vm15, %v939_v43 }
 0x499   : > { %v1037_v56 = vpop.xlane.xlu1 %1036 }
 0x49a   : > { %3292 = vrcp.f32 %v1037_v56 }
 0x4a0   : > { %v3293_v24 = vpop.eup %3292 }
 0x4a1   : > { %v1045_v36 = vmul.f32 %v3293_v24, %v3962_v62  ;;  %v1040_v4 = vpop.xlane.xlu2 %1039 }
 0x4a2   : > { %3294 = vrcp.f32 %v1040_v4 }
 0x4a3   : > { %v1048_v57 = vpack.c.bf16 %v1045_v36, %v1045_v36 }
 0x4a5   : > { %v1054_v34 = vunpack.c.l.b16 %v1048_v57 }
 0x4a7   : > { %v1056_v37 = vpack.c.b16 %v1054_v34, %v1053_v15 }
 0x4a8   : > { %v3295_v60 = vpop.eup %3294 }
 0x4a9   : > { %v923_v0 = vpop.xlane.xlu0 %922  ;;  %2979 = vmatmul.msk.bf16.vlgmr.msra.gmra.mxu2 %vm658_vm15, %v1056_v37  ;;  %v1046_v40 = vmul.f32 %v3295_v60, %v3967_v33 }
 0x4aa   : > { %3296 = vrcp.f32 %v923_v0 }
 0x4ab   : > { %v1049_v6 = vpack.c.bf16 %v1046_v40, %v1046_v40 }
 0x4ad   : > { %v1055_v62 = vunpack.c.l.b16 %v1049_v6 }
 0x4af   : > { %v1057_v51 = vpack.c.b16 %v1055_v62, %v1055_v62 }
 0x4b0   : > { %v3297_v21 = vpop.eup %3296 }
 0x4b1   : > { %v929_v13 = vmul.f32 %v3297_v21, %v3974_v59  ;;  %v1151_v17 = vpop.xlane.xlu2 %1150  ;;  %v1272_v10 = vpop.xlane.xlu0 %1271 }
 0x4b2   : > { %3298 = vrcp.f32 %v1151_v17  ;;  %v1289_v7 = vpop.permute.xlu1 %1288 }
 0x4b3   : > { %v932_v42 = vpack.c.bf16 %v929_v13, %v929_v13  ;;  %v1294_v11 = vrot.slane %v1289_v7, 4  ;;  %v4072_v7 = vld [vmem:[%s4683_s5 + $0x8] sm:$0xff] }
 0x4b5   : > { %v938_v19 = vunpack.c.l.b16 %v932_v42  ;;  %v1305_v18 = vunpack.c.l.b16 %v1294_v11 }
 0x4b7   : > { %v940_v20 = vpack.c.b16 %v938_v19, %v938_v19 }
 0x4b8   : > { %v3299_v48 = vpop.eup %3298 }
 0x4b9   : > { %2976 = vmatmul.msk.bf16.gmra.mxu0 %vm658_vm15, %v940_v20  ;;  %2980 = vmatmul.msk.bf16.gmra.mxu2 %vm658_vm15, %v1057_v51  ;;  %v1154_v22 = vpop.xlane.xlu2 %1153  ;;  %v1161_v33 = vmul.f32 %v3299_v48, %v3981_v5  ;;  %v1275_v59 = vpop.xlane.xlu0 %1274 }
 0x4ba   : > { %3300 = vrcp.f32 %v1154_v22 }
 0x4bb   : > { %v1164_v26 = vpack.c.bf16 %v1161_v33, %v1161_v33  ;;  %3302 = vrcp.f32 %v1275_v59 }
 0x4bc   : > { %3304 = vrcp.f32 %v1272_v10 }
 0x4bd   : > { %v1173_v32 = vunpack.c.l.b16 %v1164_v26 }
 0x4c0   : > { %v3301_v23 = vpop.eup %3300 }
 0x4c1   : > { %v1162_v31 = vmul.f32 %v3301_v23, %v3991_v14  ;;  %v3303_v35 = vpop.eup %3302  ;;  %v1291_v3 = vpop.permute.xlu2 %1290 }
 0x4c2   : > { %v3305_v39 = vpop.eup %3304  ;;  %v1283_v5 = vmul.f32 %v3303_v35, %v3989_v9  ;;  %v1295_v27 = vrot.slane %v1291_v3, 4 }
 0x4c3   : > { %v1165_v30 = vpack.c.bf16 %v1162_v31, %v1162_v31  ;;  %v1282_v14 = vmul.f32 %v3305_v39, %v3979_v2 }
 0x4c4   : > { %v1286_v43 = vpack.c.bf16 %v1283_v5, %v1283_v5  ;;  %v1306_v47 = vunpack.c.l.b16 %v1295_v27 }
 0x4c5   : > { %v1174_v28 = vunpack.c.l.b16 %v1165_v30  ;;  %v1285_v53 = vpack.c.bf16 %v1282_v14, %v1282_v14 }
 0x4c6   : > { %v1301_v24 = vunpack.c.l.b16 %v1286_v43  ;;  %v1308_v54 = vpack.c.b16 %v1306_v47, %v1305_v18 }
 0x4c7   : > { %v1176_v1 = vpack.c.b16 %v1174_v28, %v1173_v32  ;;  %v1300_v36 = vunpack.c.l.b16 %v1285_v53 }
 0x4c9   : > { %2983 = vmatmul.msk.bf16.vlgmr.msrb.gmra.mxu0 %vm658_vm15, %v1176_v1  ;;  %v1303_v4 = vpack.c.b16 %v1301_v24, %v1300_v36 }
 0x4cc   : > { %v1293_v38 = vpop.permute.xlu0 %1292 }
 0x4cd   : > { %v1296_v49 = vrot.slane %v1293_v38, 4 }
 0x4cf   : > { %v1307_v55 = vunpack.c.l.b16 %v1296_v49  ;;  %v4066_v49 = vld [vmem:[%s4683_s5 + $0x10] sm:$0xff] }
 0x4d0   : > { %1453 = vmatpush.bf16.msrb.mxu3 %v4066_v49 }
 0x4d1   : > { %v1309_v29 = vpack.c.b16 %v1307_v55, %v1307_v55  ;;  %v4080_v55 = vld [vmem:[%s4683_s5] sm:$0xff] }
 0x4d3   : > { %v1318_v56 = vand.u32 %v1309_v29, %v3829_v41 }
 0x4d4   : > { %1454 = vmatpush.bf16.msrb.mxu3 %v4072_v7 }
 0x4d5   : > { %1326 = vmatpush.bf16.msrb.mxu2 %v1318_v56 }
 0x4d8   : > { %1455 = vmatpush.bf16.msrb.mxu3 %v4080_v55 }
 0x4d9   : > { %1327 = vmatpush.bf16.msrb.mxu2 %v1308_v54 }
 0x4dc   : > { %v1157_v9 = vpop.xlane.xlu1 %1156  ;;  %2987 = vmatmul.msk.bf16.vlgmr.msrb.gmra.mxu2 %vm658_vm15, %v1303_v4  ;;  %1813 = vmatpush.bf16.msra.mxu3 %v3682_v46 }
 0x4dd   : > { %1795 = vmatpush.bf16.msra.mxu2 %v3677_v44  ;;  %3306 = vrcp.f32 %v1157_v9 }
 0x4e0   : > { %1814 = vmatpush.bf16.msra.mxu3 %v3700_v52 }
 0x4e1   : > { %1796 = vmatpush.bf16.msra.mxu2 %v3695_v50  ;;  %v847_v2 = vpop.f32.mrf.mxu2 }
 0x4e3   : > { %v3307_v57 = vpop.eup %3306 }
 0x4e4   : > { %v4045_v15 = vpop.f32.mrf.mxu0  ;;  %v1163_v34 = vmul.f32 %v3307_v57, %v4011_v45  ;;  %1815 = vmatpush.bf16.msra.mxu3 %v3719_v61 }
 0x4e5   : > { %1797 = vmatpush.bf16.msra.mxu2 %v3714_v58 }
 0x4e6   : > { %v1166_v37 = vpack.c.bf16 %v1163_v34, %v1163_v34 }
 0x4e8   : > { %v1175_v60 = vunpack.c.l.b16 %v1166_v37 }
 0x4e9   : > { %v849_v0 = vpop.f32.mrf.mxu2 }
 0x4ea   : > { %v1177_v40 = vpack.c.b16 %v1175_v60, %v1175_v60  ;;  %v3173_v6 = vpack.i.bf16 %v849_v0, %v847_v2 }
 0x4ec   : > { %v4048_v44 = vpop.f32.mrf.mxu0  ;;  %2984 = vmatmul.msk.bf16.gmra.mxu0 %vm658_vm15, %v1177_v40  ;;  %3174 = vrot.lane.b32.xlu2 %v3173_v6, %s4708_s29 }
 0x4f1   : > { %v852_v50 = vpop.f32.mrf.mxu2 }
 0x4f4   : > { %v4052_v21 = vpop.f32.mrf.mxu0 }
 0x4f7   : > { %v1278_v58 = vpop.xlane.xlu0 %1277 }
 0x4f8   : > { %3308 = vrcp.f32 %v1278_v58 }
 0x4f9   : > { %v854_v13 = vpop.f32.mrf.mxu2 }
 0x4fc   : > { %v737_v17 = vpop.f32.mrf.mxu0 }
 0x4fe   : > { %v3309_v42 = vpop.eup %3308 }
 0x4ff   : > { %v1284_v45 = vmul.f32 %v3309_v42, %v4023_v63 }
 0x501   : > { %v1287_v62 = vpack.c.bf16 %v1284_v45, %v1284_v45 }
 0x503   : > { %v1302_v19 = vunpack.c.l.b16 %v1287_v62 }
 0x504   : > { %v964_v20 = vpop.f32.mrf.mxu0 }
 0x505   : > { %v1304_v51 = vpack.c.b16 %v1302_v19, %v1302_v19 }
 0x507   : > { %2988 = vmatmul.msk.bf16.gmra.mxu2 %vm658_vm15, %v1304_v51 }
 0x50c   : > { %v966_v10 = vpop.f32.mrf.mxu0 }
 0x50d   : > { %v3178_v22 = vpack.i.bf16 %v966_v10, %v964_v20 }
 0x50f   : > { %3179 = vrot.lane.b32.xlu2 %v3178_v22, %s4712_s24  ;;  %v3225_v22 = vld [vmem:[%s4680_s2 + $0x2] ss:$0 sm:$0xff] }
 0x52c   : > { %v1081_v48 = vpop.f32.mrf.mxu2 }
 0x534   : > { %v1083_v33 = vpop.f32.mrf.mxu2 }
 0x535   : > { %v3183_v23 = vpack.i.bf16 %v1083_v33, %v1081_v48 }
 0x536   : > { %v969_v26 = vpop.f32.mrf.mxu0 }
 0x537   : > { %3184 = vrot.lane.b32.xlu2 %v3183_v23, %s4706_s22 }
 0x53c   : > { %v1086_v59 = vpop.f32.mrf.mxu2 }
 0x53e   : > { %v971_v31 = vpop.f32.mrf.mxu0 }
 0x544   : > { %v1088_v30 = vpop.f32.mrf.mxu2 }
 0x546   : > { %v1202_v63 = vpop.f32.mrf.mxu0  ;;  %v3175_v14 = vpop.permute.xlu2 %3174 }
 0x547   : > { %v3177_v43 = vunpack.i.h.bf16 %v3175_v14  ;;  %v3176_v47 = vunpack.i.l.bf16 %v3175_v14 }
 0x549   : > { %v1399_v54 = vsel %vm624_vm13, %v4048_v44, %v3177_v43  ;;  %v1398_v46 = vsel %vm624_vm13, %v4045_v15, %v3176_v47 }
 0x54e   : > { %v1204_v32 = vpop.f32.mrf.mxu0 }
 0x54f   : > { %v3188_v28 = vpack.i.bf16 %v1204_v32, %v1202_v63 }
 0x551   : > { %3189 = vrot.lane.b32.xlu0 %v3188_v28, %s4710_s16 }
 0x559   : > { %1369 = vrot.lane.b32.xlu0 %v1086_v59, %s4706_s22  ;;  %s4729_s22 = smov 88  }
 0x55f   : > { %v1329_v1 = vpop.f32.mrf.mxu2 }
 0x567   : > { %v1331_v35 = vpop.f32.mrf.mxu2 }
 0x568   : > { %v3193_v3 = vpack.i.bf16 %v1331_v35, %v1329_v1 }
 0x569   : > { %v1207_v38 = vpop.f32.mrf.mxu0  ;;  %v3180_v11 = vpop.permute.xlu2 %3179 }
 0x56a   : > { %1381 = vrot.lane.b32.xlu1 %v1207_v38, %s4710_s16  ;;  %3194 = vrot.lane.b32.xlu2 %v3193_v3, %s4714_s12  ;;  %v3182_v56 = vunpack.i.h.bf16 %v3180_v11  ;;  %v3181_v53 = vunpack.i.l.bf16 %v3180_v11  ;;  %s4728_s16 = smov 48  }
 0x56c   : > { %v1402_v52 = vsel %vm1401_vm4, %v1398_v46, %v3181_v53  ;;  %v1403_v61 = vsel %vm1401_vm4, %v1399_v54, %v3182_v56 }
 0x571   : > { %v1209_v39 = vpop.f32.mrf.mxu0 }
 0x572   : > { %1345 = vrot.lane.b32.xlu2 %v852_v50, %s4708_s29  ;;  %s4722_s29 = smov 80  }
 0x57a   : > { %1357 = vrot.lane.b32.xlu2 %v969_v26, %s4712_s24  ;;  %s4724_s24 = smov 104  }
 0x58a   : > { %v1334_v5 = vpop.f32.mrf.mxu2 }
 0x58b   : > { %1393 = vrot.lane.b32.xlu2 %v1334_v5, %s4714_s12  ;;  %s4725_s12 = smov 64  }
 0x591   : > { %v3185_v29 = vpop.permute.xlu2 %3184 }
 0x592   : > { %v1336_v27 = vpop.f32.mrf.mxu2  ;;  %v3187_v18 = vunpack.i.h.bf16 %v3185_v29  ;;  %v3186_v24 = vunpack.i.l.bf16 %v3185_v29 }
 0x594   : > { %v1406_v37 = vsel %vm1405_vm5, %v1402_v52, %v3186_v24  ;;  %v1407_v60 = vsel %vm1405_vm5, %v1403_v61, %v3187_v18  ;;  %v3106_v18 = vld [vmem:[%s4684_s6 + $0x10] sm:$0xff]  ;;  %v3105_v24 = vld [vmem:[%s4684_s6 + $0x8] sm:$0xff]  ;;  %v3104_v61 = vld [vmem:[%s4684_s6] sm:$0xff] }
 0x595   : > { %1588 = vmatpush.bf16.msra.mxu0 %v3106_v18 }
 0x599   : > { %1589 = vmatpush.bf16.msra.mxu0 %v3105_v24 }
 0x59d   : > { %1590 = vmatpush.bf16.msra.mxu0 %v3104_v61 }
 0x5c3   : > { %v3190_v36 = vpop.permute.xlu0 %3189 }
 0x5c4   : > { %v3195_v4 = vpop.permute.xlu2 %3194  ;;  %v3192_v9 = vunpack.i.h.bf16 %v3190_v36  ;;  %v3191_v2 = vunpack.i.l.bf16 %v3190_v36 }
 0x5c5   : > { %v3197_v57 = vunpack.i.h.bf16 %v3195_v4  ;;  %v3196_v34 = vunpack.i.l.bf16 %v3195_v4 }
 0x5c6   : > { %v1409_v0 = vsel %vm421_vm0, %v1406_v37, %v3191_v2  ;;  %v1410_v15 = vsel %vm421_vm0, %v1407_v60, %v3192_v9 }
 0x5c7   : > { %v1413_v40 = vsel %vm1412_vm6, %v1409_v0, %v3196_v34  ;;  %v1414_v6 = vsel %vm1412_vm6, %v1410_v15, %v3197_v57 }
 0x5c8   : > { %v1416_v44 = vpack.c.bf16 %v1414_v6, %v1413_v40 }
 0x5ca   : > { %3001 = vmatmul.msk.bf16.vlgmr.msrb.gmra.mxu3 %vm446_vm1, %v1416_v44 }
 0x5cb   : > { %v1370_v45 = vpop.permute.xlu0 %1369 }
 0x5cc   : > { %v1346_v50 = vpop.permute.xlu2 %1345 }
 0x5cd   : > { %v1400_v13 = vsel %vm624_vm13, %v4052_v21, %v1346_v50 }
 0x5d4   : > { %v1358_v58 = vpop.permute.xlu2 %1357 }
 0x5d5   : > { %v1404_v17 = vsel %vm1401_vm4, %v1400_v13, %v1358_v58  ;;  %v3226_v13 = vld [vmem:[%s4680_s2 + $0x3] ss:$0 sm:$0xff] }
 0x5d6   : > { %v1408_v62 = vsel %vm1405_vm5, %v1404_v17, %v1370_v45 }
 0x5dc   : > { %v1382_v42 = vpop.permute.xlu1 %1381 }
 0x5dd   : > { %v1411_v19 = vsel %vm421_vm0, %v1408_v62, %v1382_v42 }
 0x5e5   : > { %v1394_v20 = vpop.permute.xlu2 %1393 }
 0x5e6   : > { %v1415_v51 = vsel %vm1412_vm6, %v1411_v19, %v1394_v20  ;;  %v3227_v19 = vld [vmem:[%s4680_s2 + $0x4] ss:$0 sm:$0xff] }
 0x5e7   : > { %v1417_v10 = vpack.c.bf16 %v1415_v51, %v1415_v51 }
 0x5e9   : > { %3002 = vmatmul.msk.bf16.gmra.mxu3 %vm446_vm1, %v1417_v10 }
 0x64d   : > { %v1457_v48 = vpop.f32.mrf.mxu3 }
 0x64e   : > { %v1466_v21 = vadd.f32 %v1457_v48, %v3627_v8 }
 0x650   : > { %v4110_v33 = vadd.f32 %v3225_v22, %v1466_v21 }
 0x652   : > { %v1473_v23 = vsel %vm446_vm1, %v4110_v33, 0.0 }
 0x653   : > { %1474 = vadd.xlane.f32.xlu0 %v1473_v23 }
 0x655   : > { %v1459_v26 = vpop.f32.mrf.mxu3 }
 0x656   : > { %v1467_v59 = vadd.f32 %v1459_v26, %v3634_v12 }
 0x658   : > { %v4115_v31 = vadd.f32 %v3225_v22, %v1467_v59 }
 0x65a   : > { %v1476_v30 = vsel %vm446_vm1, %v4115_v31, 0.0 }
 0x65b   : > { %1477 = vadd.xlane.f32.xlu2 %v1476_v30 }
 0x66c   : > { %v1462_v63 = vpop.f32.mrf.mxu3 }
 0x66d   : > { %v1468_v32 = vadd.f32 %v1462_v63, %v3641_v16 }
 0x66f   : > { %v4120_v28 = vadd.f32 %v3225_v22, %v1468_v32 }
 0x671   : > { %v1479_v8 = vsel %vm453_vm2, %v4120_v28, 0.0 }
 0x672   : > { %1480 = vadd.xlane.f32.xlu1 %v1479_v8 }
 0x674   : > { %v1464_v1 = vpop.f32.mrf.mxu3 }
 0x6c6   : > { %v1475_v35 = vpop.xlane.xlu0 %1474 }
 0x6c7   : > { %v1482_v3 = vmul.f32 %v1475_v35, %v3645_v25 }
 0x6c9   : > { %v1485_v12 = vsub.f32 %v4110_v33, %v1482_v3 }
 0x6cb   : > { %v1488_v38 = vmul.f32 %v1485_v12, %v1485_v12 }
 0x6cd   : > { %v1491_v39 = vsel %vm446_vm1, %v1488_v38, 0.0 }
 0x6ce   : > { %1492 = vadd.xlane.f32.xlu0 %v1491_v39  ;;  %v1478_v5 = vpop.xlane.xlu2 %1477 }
 0x6cf   : > { %v1483_v27 = vmul.f32 %v1478_v5, %v3645_v25  ;;  %v4161_v5 = vld [vmem:[%s4686_s8 + $0x28] sm:$0xff] }
 0x6d0   : > { %1687 = vmatpush.bf16.msra.mxu1 %v4161_v5 }
 0x6d1   : > { %v1486_v16 = vsub.f32 %v4115_v31, %v1483_v27  ;;  %v4167_v27 = vld [vmem:[%s4686_s8 + $0x20] sm:$0xff] }
 0x6d3   : > { %v1489_v14 = vmul.f32 %v1486_v16, %v1486_v16 }
 0x6d4   : > { %1688 = vmatpush.bf16.msra.mxu1 %v4167_v27 }
 0x6d5   : > { %v1494_v11 = vsel %vm446_vm1, %v1489_v14, 0.0  ;;  %v4179_v14 = vld [vmem:[%s4686_s8 + $0x10] sm:$0xff] }
 0x6d6   : > { %1495 = vadd.xlane.f32.xlu2 %v1494_v11  ;;  %v4185_v11 = vld [vmem:[%s4686_s8 + $0x8] sm:$0xff] }
 0x6e5   : > { %v1481_v29 = vpop.xlane.xlu1 %1480 }
 0x6e6   : > { %v1484_v43 = vmul.f32 %v1481_v29, %v3645_v25  ;;  %v3228_v29 = vld [vmem:[%s4685_s7] ss:$0 sm:$0xff] }
 0x6e8   : > { %v4132_v47 = vsub.f32 %v4120_v28, %v1484_v43  ;;  %v4194_v43 = vld [vmem:[%s4686_s8] sm:$0xff] }
 0x6ea   : > { %v1490_v56 = vmul.f32 %v4132_v47, %v4132_v47 }
 0x6ec   : > { %v1497_v53 = vsel %vm453_vm2, %v1490_v56, 0.0 }
 0x6ed   : > { %1498 = vadd.xlane.f32.xlu0 %v1497_v53 }
 0x741   : > { %v1493_v54 = vpop.xlane.xlu0 %1492 }
 0x742   : > { %v1500_v46 = vmul.f32 %v1493_v54, %v3645_v25 }
 0x744   : > { %v1503_v52 = vadd.f32 1e-06, %v1500_v46 }
 0x746   : > { %3310 = vrsqrt.f32 %v1503_v52  ;;  %vm1512_vm8 = vweird.f32 %v1503_v52 }
 0x749   : > { %v1496_v36 = vpop.xlane.xlu2 %1495 }
 0x74a   : > { %v1501_v4 = vmul.f32 %v1496_v36, %v3645_v25 }
 0x74c   : > { %v3311_v9 = vpop.eup %3310  ;;  %v1504_v2 = vadd.f32 1e-06, %v1501_v4 }
 0x74d   : > { %v1507_v57 = vmul.f32 %v3311_v9, %v1503_v52  ;;  %vm1513_vm7 = vweird.f32 %v3311_v9 }
 0x74e   : > { %3312 = vrsqrt.f32 %v1504_v2  ;;  %vm1514_vm9 = vmor %vm1512_vm8, %vm1513_vm7  ;;  %vm1522_vm11 = vweird.f32 %v1504_v2 }
 0x74f   : > { %v1508_v34 = vmul.f32 %v3311_v9, %v1507_v57 }
 0x751   : > { %v1509_v37 = vmul.f32 0.5, %v1508_v34 }
 0x753   : > { %v1510_v60 = vsub.f32 1.5, %v1509_v37 }
 0x754   : > { %v3313_v0 = vpop.eup %3312 }
 0x755   : > { %v1511_v15 = vmul.f32 %v3311_v9, %v1510_v60  ;;  %v1517_v40 = vmul.f32 %v3313_v0, %v1504_v2  ;;  %vm1523_vm10 = vweird.f32 %v3313_v0 }
 0x756   : > { %vm1524_vm12 = vmor %vm1522_vm11, %vm1523_vm10 }
 0x757   : > { %v1518_v6 = vmul.f32 %v3313_v0, %v1517_v40  ;;  %v1515_v44 = vsel %vm1514_vm9, %v3311_v9, %v1511_v15  ;;  %vm1678_vm9 = vcmask 785408  }
 0x758   : > { %v1536_v17 = vmul.f32 %v1515_v44, %v1485_v12 }
 0x759   : > { %v1519_v50 = vmul.f32 0.5, %v1518_v6 }
 0x75a   : > { %v1540_v20 = vmul.f32 %v3226_v13, %v1536_v17 }
 0x75b   : > { %v1520_v58 = vsub.f32 1.5, %v1519_v50 }
 0x75c   : > { %v1544_v21 = vadd.f32 %v3227_v19, %v1540_v20 }
 0x75d   : > { %v1521_v42 = vmul.f32 %v3313_v0, %v1520_v58 }
 0x75f   : > { %v1525_v45 = vsel %vm1524_vm12, %v3313_v0, %v1521_v42 }
 0x760   : > { %v1499_v62 = vpop.xlane.xlu0 %1498  ;;  %v1537_v51 = vmul.f32 %v1525_v45, %v1486_v16  ;;  %v4173_v16 = vld [vmem:[%s4686_s8 + $0x18] sm:$0xff] }
 0x761   : > { %v1502_v10 = vmul.f32 %v1499_v62, %v3645_v25  ;;  %1689 = vmatpush.bf16.msra.mxu1 %v4173_v16 }
 0x762   : > { %v1541_v22 = vmul.f32 %v3226_v13, %v1537_v51 }
 0x763   : > { %v1505_v48 = vadd.f32 1e-06, %v1502_v10 }
 0x764   : > { %v1545_v23 = vadd.f32 %v3227_v19, %v1541_v22 }
 0x765   : > { %3314 = vrsqrt.f32 %v1505_v48  ;;  %vm1532_vm7 = vweird.f32 %v1505_v48  ;;  %1690 = vmatpush.bf16.msra.mxu1 %v4179_v14 }
 0x766   : > { %v1547_v26 = vpack.c.bf16 %v1545_v23, %v1544_v21  ;;  %v3229_v23 = vld [vmem:[%s4680_s2 + $0x5] ss:$0 sm:$0xff] }
 0x768   : > { %3015 = vmatmul.msk.bf16.vlgmr.msra.gmra.mxu0 %vm446_vm1, %v1547_v26 }
 0x769   : > { %1691 = vmatpush.bf16.msra.mxu1 %v4185_v11 }
 0x76b   : > { %v3315_v59 = vpop.eup %3314 }
 0x76c   : > { %v1527_v30 = vmul.f32 %v3315_v59, %v1505_v48  ;;  %vm1533_vm14 = vweird.f32 %v3315_v59 }
 0x76d   : > { %vm1534_vm8 = vmor %vm1532_vm7, %vm1533_vm14  ;;  %1692 = vmatpush.bf16.msra.mxu1 %v4194_v43 }
 0x76e   : > { %v1528_v63 = vmul.f32 %v3315_v59, %v1527_v30 }
 0x770   : > { %v1529_v32 = vmul.f32 0.5, %v1528_v63 }
 0x772   : > { %v1530_v8 = vsub.f32 1.5, %v1529_v32 }
 0x774   : > { %v1531_v1 = vmul.f32 %v3315_v59, %v1530_v8 }
 0x776   : > { %v1535_v35 = vsel %vm1534_vm8, %v3315_v59, %v1531_v1 }
 0x777   : > { %v1538_v3 = vmul.f32 %v1535_v35, %v4132_v47 }
 0x779   : > { %v1542_v12 = vmul.f32 %v3226_v13, %v1538_v3 }
 0x77b   : > { %v1546_v38 = vadd.f32 %v3227_v19, %v1542_v12 }
 0x77d   : > { %v1548_v39 = vpack.c.bf16 %v1546_v38, %v1546_v38 }
 0x77f   : > { %3016 = vmatmul.msk.bf16.gmra.mxu0 %vm446_vm1, %v1548_v39 }
 0x7e5   : > { %v1592_v47 = vpop.f32.mrf.mxu0 }
 0x7e6   : > { %v1593_v56 = vadd.f32 %v3228_v29, %v1592_v47 }
 0x7e8   : > { %v1604_v53 = vmul.f32 0.044715, %v1593_v56  ;;  %v1601_v44 = vmul.f32 0.5, %v1593_v56 }
 0x7ea   : > { %v1607_v18 = vmul.f32 %v1604_v53, %v1593_v56 }
 0x7ec   : > { %v1610_v24 = vmul.f32 %v1607_v18, %v1593_v56 }
 0x7ed   : > { %v1594_v54 = vpop.f32.mrf.mxu0 }
 0x7ee   : > { %v1613_v46 = vadd.f32 %v1610_v24, %v1593_v56  ;;  %v1595_v52 = vadd.f32 %v3228_v29, %v1594_v54 }
 0x7f0   : > { %v1605_v61 = vmul.f32 0.044715, %v1595_v52  ;;  %v1616_v36 = vmul.f32 0.7978846, %v1613_v46  ;;  %v1602_v50 = vmul.f32 0.5, %v1595_v52 }
 0x7f2   : > { %v1608_v4 = vmul.f32 %v1605_v61, %v1595_v52  ;;  %3316 = vtanh.f32 %v1616_v36 }
 0x7f4   : > { %v1611_v9 = vmul.f32 %v1608_v4, %v1595_v52 }
 0x7f6   : > { %v1614_v2 = vadd.f32 %v1611_v9, %v1595_v52 }
 0x7f8   : > { %v1617_v57 = vmul.f32 0.7978846, %v1614_v2  ;;  %v3317_v37 = vpop.eup %3316 }
 0x7f9   : > { %v1622_v15 = vadd.f32 1.0, %v3317_v37 }
 0x7fa   : > { %3318 = vtanh.f32 %v1617_v57 }
 0x7fb   : > { %v1625_v42 = vmul.f32 %v1622_v15, %v1601_v44 }
 0x7fc   : > { %v1597_v34 = vpop.f32.mrf.mxu0 }
 0x7fd   : > { %v1598_v60 = vadd.f32 %v3228_v29, %v1597_v34 }
 0x7ff   : > { %v1606_v0 = vmul.f32 0.044715, %v1598_v60  ;;  %v1603_v10 = vmul.f32 0.5, %v1598_v60 }
 0x800   : > { %v3319_v40 = vpop.eup %3318 }
 0x801   : > { %v1609_v6 = vmul.f32 %v1606_v0, %v1598_v60  ;;  %v1623_v58 = vadd.f32 1.0, %v3319_v40 }
 0x803   : > { %v1612_v13 = vmul.f32 %v1609_v6, %v1598_v60  ;;  %v1626_v45 = vmul.f32 %v1623_v58, %v1602_v50 }
 0x804   : > { %v1599_v17 = vpop.f32.mrf.mxu0 }
 0x805   : > { %v1615_v62 = vadd.f32 %v1612_v13, %v1598_v60  ;;  %v1628_v19 = vpack.c.bf16 %v1626_v45, %v1625_v42 }
 0x807   : > { %v1618_v20 = vmul.f32 0.7978846, %v1615_v62  ;;  %3041 = vmatmul.msk.bf16.vlgmr.msra.gmra.mxu1 %vm1678_vm9, %v1628_v19 }
 0x809   : > { %3320 = vtanh.f32 %v1618_v20 }
 0x80f   : > { %v3321_v51 = vpop.eup %3320 }
 0x810   : > { %v1624_v22 = vadd.f32 1.0, %v3321_v51 }
 0x812   : > { %v1627_v48 = vmul.f32 %v1624_v22, %v1603_v10 }
 0x814   : > { %v1629_v21 = vpack.c.bf16 %v1627_v48, %v1627_v48 }
 0x817   : > { %3042 = vmatmul.msk.bf16.gmra.mxu1 %vm1678_vm9, %v1629_v21 }
 0x884   : > { %v1694_v26 = vpop.f32.mrf.mxu1 }
 0x885   : > { %v1703_v59 = vadd.f32 %v1694_v26, %v4110_v33 }
 0x887   : > { %v4203_v30 = vadd.f32 %v3229_v23, %v1703_v59 }
 0x889   : > { %v1710_v63 = vsel %vm446_vm1, %v4203_v30, 0.0 }
 0x88a   : > { %1711 = vadd.xlane.f32.xlu2 %v1710_v63  ;;  %v3412_v63 = vld [vmem:[%s4680_s2] ss:$0 sm:$0xff] }
 0x88c   : > { %v1696_v32 = vpop.f32.mrf.mxu1 }
 0x88d   : > { %v1704_v8 = vadd.f32 %v1696_v32, %v4115_v31 }
 0x88f   : > { %v4208_v1 = vadd.f32 %v3229_v23, %v1704_v8 }
 0x891   : > { %v1713_v35 = vsel %vm446_vm1, %v4208_v1, 0.0 }
 0x892   : > { %1714 = vadd.xlane.f32.xlu0 %v1713_v35 }
 0x894   : > { %v1699_v3 = vpop.f32.mrf.mxu1 }
 0x895   : > { %v1705_v12 = vadd.f32 %v1699_v3, %v4120_v28 }
 0x897   : > { %v4213_v38 = vadd.f32 %v3229_v23, %v1705_v12 }
 0x899   : > { %v1716_v33 = vsel %vm453_vm2, %v4213_v38, 0.0 }
 0x89a   : > { %1717 = vadd.xlane.f32.xlu1 %v1716_v33  ;;  %v3413_v33 = vld [vmem:[%s4680_s2 + $0x1] ss:$0 sm:$0xff] }
 0x89c   : > { %v1701_v39 = vpop.f32.mrf.mxu1 }
 0x8fd   : > { %v1712_v29 = vpop.xlane.xlu2 %1711 }
 0x8fe   : > { %v1719_v47 = vmul.f32 %v1712_v29, %v3645_v25 }
 0x900   : > { %v1722_v31 = vsub.f32 %v4203_v30, %v1719_v47 }
 0x902   : > { %v1725_v56 = vmul.f32 %v1722_v31, %v1722_v31 }
 0x904   : > { %v1728_v53 = vsel %vm446_vm1, %v1725_v56, 0.0 }
 0x905   : > { %1729 = vadd.xlane.f32.xlu2 %v1728_v53  ;;  %v1715_v18 = vpop.xlane.xlu0 %1714 }
 0x906   : > { %v1720_v24 = vmul.f32 %v1715_v18, %v3645_v25 }
 0x908   : > { %v1723_v28 = vsub.f32 %v4208_v1, %v1720_v24 }
 0x90a   : > { %v1726_v54 = vmul.f32 %v1723_v28, %v1723_v28 }
 0x90c   : > { %v1731_v46 = vsel %vm446_vm1, %v1726_v54, 0.0 }
 0x90d   : > { %v1718_v52 = vpop.xlane.xlu1 %1717  ;;  %1732 = vadd.xlane.f32.xlu0 %v1731_v46 }
 0x90e   : > { %v1721_v61 = vmul.f32 %v1718_v52, %v3645_v25 }
 0x910   : > { %v1724_v36 = vsub.f32 %v4213_v38, %v1721_v61 }
 0x912   : > { %v1727_v4 = vmul.f32 %v1724_v36, %v1724_v36 }
 0x914   : > { %v1734_v9 = vsel %vm453_vm2, %v1727_v4, 0.0 }
 0x915   : > { %1735 = vadd.xlane.f32.xlu1 %v1734_v9 }
 0x978   : > { %v1730_v2 = vpop.xlane.xlu2 %1729 }
 0x979   : > { %v1737_v57 = vmul.f32 %v1730_v2, %v3645_v25 }
 0x97b   : > { %v1740_v34 = vadd.f32 1e-06, %v1737_v57 }
 0x97d   : > { %3322 = vrsqrt.f32 %v1740_v34  ;;  %vm1749_vm11 = vweird.f32 %v1740_v34 }
 0x980   : > { %v1733_v37 = vpop.xlane.xlu0 %1732 }
 0x981   : > { %v1738_v60 = vmul.f32 %v1733_v37, %v3645_v25 }
 0x983   : > { %v3323_v0 = vpop.eup %3322  ;;  %v1741_v15 = vadd.f32 1e-06, %v1738_v60 }
 0x984   : > { %v1744_v40 = vmul.f32 %v3323_v0, %v1740_v34  ;;  %vm1750_vm10 = vweird.f32 %v3323_v0 }
 0x985   : > { %3324 = vrsqrt.f32 %v1741_v15  ;;  %vm1751_vm12 = vmor %vm1749_vm11, %vm1750_vm10  ;;  %vm1759_vm7 = vweird.f32 %v1741_v15 }
 0x986   : > { %v1745_v6 = vmul.f32 %v3323_v0, %v1744_v40 }
 0x988   : > { %v1746_v44 = vmul.f32 0.5, %v1745_v6  ;;  %v1736_v50 = vpop.xlane.xlu1 %1735 }
 0x989   : > { %v1739_v58 = vmul.f32 %v1736_v50, %v3645_v25 }
 0x98a   : > { %v1747_v13 = vsub.f32 1.5, %v1746_v44 }
 0x98b   : > { %v3325_v17 = vpop.eup %3324  ;;  %v1742_v42 = vadd.f32 1e-06, %v1739_v58 }
 0x98c   : > { %v1748_v45 = vmul.f32 %v3323_v0, %v1747_v13  ;;  %v1754_v62 = vmul.f32 %v3325_v17, %v1741_v15  ;;  %vm1760_vm14 = vweird.f32 %v3325_v17 }
 0x98d   : > { %3326 = vrsqrt.f32 %v1742_v42  ;;  %vm1761_vm8 = vmor %vm1759_vm7, %vm1760_vm14  ;;  %vm1769_vm11 = vweird.f32 %v1742_v42 }
 0x98e   : > { %v1755_v19 = vmul.f32 %v3325_v17, %v1754_v62  ;;  %v1752_v20 = vsel %vm1751_vm12, %v3323_v0, %v1748_v45 }
 0x98f   : > { %v1773_v48 = vmul.f32 %v1752_v20, %v1722_v31 }
 0x990   : > { %v1756_v51 = vmul.f32 0.5, %v1755_v19 }
 0x991   : > { %v1776_v32 = vmul.f32 %v3412_v63, %v1773_v48 }
 0x992   : > { %v1757_v10 = vsub.f32 1.5, %v1756_v51 }
 0x993   : > { %v3327_v22 = vpop.eup %3326  ;;  %v1779_v39 = vadd.f32 %v3413_v33, %v1776_v32 }
 0x994   : > { %v1758_v21 = vmul.f32 %v3325_v17, %v1757_v10  ;;  %v1764_v23 = vmul.f32 %v3327_v22, %v1742_v42  ;;  %vm1770_vm10 = vweird.f32 %v3327_v22 }
 0x995   : > { %vm1771_vm12 = vmor %vm1769_vm11, %vm1770_vm10 }
 0x996   : > { %v1762_v26 = vsel %vm1761_vm8, %v3325_v17, %v1758_v21  ;;  %v1765_v59 = vmul.f32 %v3327_v22, %v1764_v23 }
 0x997   : > { %v1774_v8 = vmul.f32 %v1762_v26, %v1723_v28 }
 0x998   : > { %v1766_v35 = vmul.f32 0.5, %v1765_v59 }
 0x999   : > { %v1777_v3 = vmul.f32 %v3412_v63, %v1774_v8 }
 0x99a   : > { %v1767_v12 = vsub.f32 1.5, %v1766_v35 }
 0x99b   : > { %v1780_v29 = vadd.f32 %v3413_v33, %v1777_v3 }
 0x99c   : > { %v1768_v47 = vmul.f32 %v3327_v22, %v1767_v12 }
 0x99d   : > { %v1782_v31 = vpack.c.bf16 %v1780_v29, %v1779_v39 }
 0x99e   : > { %v1772_v56 = vsel %vm1771_vm12, %v3327_v22, %v1768_v47 }
 0x99f   : > { %3043 = vmatmul.msk.bf16.vlgmr.msra.gmra.mxu2 %vm446_vm1, %v1782_v31  ;;  %3045 = vmatmul.msk.bf16.vlgmr.msra.gmra.mxu3 %vm446_vm1, %v1782_v31  ;;  %v1775_v53 = vmul.f32 %v1772_v56, %v1724_v36 }
 0x9a1   : > { %v1778_v18 = vmul.f32 %v3412_v63, %v1775_v53 }
 0x9a3   : > { %v1781_v24 = vadd.f32 %v3413_v33, %v1778_v18 }
 0x9a5   : > { %v1783_v28 = vpack.c.bf16 %v1781_v24, %v1781_v24 }
 0x9af   : > { %3044 = vmatmul.msk.bf16.gmra.mxu2 %vm446_vm1, %v1783_v28  ;;  %3046 = vmatmul.msk.bf16.gmra.mxu3 %vm446_vm1, %v1783_v28 }
 0xa22   : > { %v1799_v54 = vpop.f32.mrf.mxu2  ;;  %v1817_v46 = vpop.f32.mrf.mxu3 }
 0xa23   : > { %v4239_v52 = vpack.c.bf16 %v1817_v46, %v1799_v54 }
 0xa25   : > { %v1832_v2 = vunpack.c.l.b16 %v4239_v52 }
 0xa2a   : > { %v1801_v61 = vpop.f32.mrf.mxu2  ;;  %v1819_v4 = vpop.f32.mrf.mxu3 }
 0xa2b   : > { %v4241_v9 = vpack.c.bf16 %v1819_v4, %v1801_v61 }
 0xa2d   : > { %v1833_v57 = vunpack.c.l.b16 %v4241_v9 }
 0xa2f   : > { %v4245_v36 = vpack.c.b16 %v1833_v57, %v1832_v2 }
 0xa31   : > { %1954 = vrot.lane.b32.xlu0 %v4245_v36, %s3489_s15 }
 0xa32   : > { %v1804_v34 = vpop.f32.mrf.mxu2  ;;  %v1822_v37 = vpop.f32.mrf.mxu3 }
 0xa33   : > { %v4249_v60 = vpack.c.bf16 %v1822_v37, %v1804_v34 }
 0xa35   : > { %v1834_v0 = vunpack.c.l.b16 %v4249_v60 }
 0xa37   : > { %v4252_v15 = vpack.c.b16 %v1834_v0, %v1834_v0 }
 0xa39   : > { %1950 = vrot.lane.b32.xlu0 %v4245_v36, %s3488_s14  ;;  %1839 = vrot.lane.b32.xlu1 %v4252_v15, %s4722_s29 }
 0xa3a   : > { %1956 = vrot.lane.b32.xlu2 %v4252_v15, %s3489_s15  ;;  %v1806_v40 = vpop.f32.mrf.mxu2  ;;  %v1824_v6 = vpop.f32.mrf.mxu3  ;;  %s4726_s15 = smov 112  }
 0xa41   : > { %2190 = vrot.lane.b32.xlu0 %v4252_v15, %s4723_s30  ;;  %1952 = vrot.lane.b32.xlu1 %v4252_v15, %s3488_s14 }
 0xa42   : > { %1837 = vrot.lane.b32.xlu2 %v4245_v36, %s4722_s29  ;;  %s4731_s29 = smov 96  }
 0xa49   : > { %2184 = vrot.lane.b32.xlu0 %v4245_v36, %s4724_s24  ;;  %2073 = vrot.lane.b32.xlu1 %v4252_v15, %s4725_s12 }
 0xa4a   : > { %2188 = vrot.lane.b32.xlu2 %v4245_v36, %s4723_s30  ;;  %s4732_s30 = smov 24  }
 0xa51   : > { %2186 = vrot.lane.b32.xlu0 %v4252_v15, %s4724_s24  ;;  %2067 = vrot.lane.b32.xlu1 %v4245_v36, %s4726_s15  ;;  %s4733_s24 = smov 8  }
 0xa52   : > { %2071 = vrot.lane.b32.xlu2 %v4245_v36, %s4725_s12  ;;  %s4734_s12 = smov 16  }
 0xa59   : > { %2069 = vrot.lane.b32.xlu0 %v4252_v15, %s4726_s15  ;;  %2426 = vrot.lane.b32.xlu1 %v4245_v36, %s4727_s13 }
 0xa5a   : > { %2428 = vrot.lane.b32.xlu2 %v4252_v15, %s4727_s13 }
 0xa61   : > { %2305 = vrot.lane.b32.xlu0 %v4245_v36, %s4728_s16  ;;  %2422 = vrot.lane.b32.xlu1 %v4245_v36, %s4729_s22 }
 0xa62   : > { %2307 = vrot.lane.b32.xlu2 %v4252_v15, %s4728_s16  ;;  %s377_s16 = sand.u32 1, %s3476_s18  }
 0xa63   : > { %s2851_s15 = scalar_lea.sflag [#allocation3], %s377_s16 }
 0xa69   : > { %2424 = vrot.lane.b32.xlu0 %v4252_v15, %s4729_s22  ;;  %1918 = vrot.lane.b32.xlu1 %v4245_v36, %s4730_s25 }
 0xa6a   : > { %2301 = vrot.lane.b32.xlu2 %v4245_v36, %s4731_s29 }
 0xa71   : > { %1920 = vrot.lane.b32.xlu0 %v4252_v15, %s4730_s25  ;;  %2037 = vrot.lane.b32.xlu1 %v4252_v15, %s4732_s30 }
 0xa72   : > { %2035 = vrot.lane.b32.xlu2 %v4245_v36, %s4732_s30 }
 0xa7a   : > { %2303 = vrot.lane.b32.xlu2 %v4252_v15, %s4731_s29  ;;  %s3442_s29 = scalar_lea.hbm %s4689_s11, 2 }
 0xa94   : > { %v1957_v44 = vpop.permute.xlu2 %1956 }
 0xa95   : > { %v1968_v50 = vsel %vm624_vm13, %v1957_v44, 0 }
 0xa96   : > { %1976 = vmatpush.bf16.xpose.msrb.mxu2 %v1968_v50 }
 0xa9c   : > { %v1838_v58 = vpop.permute.xlu2 %1837 }
 0xa9d   : > { %v1848_v22 = vsel %vm624_vm13, %v1838_v58, 0 }
 0xaa3   : > { %v1955_v13 = vpop.permute.xlu0 %1954 }
 0xaa4   : > { %v1965_v17 = vsel %vm624_vm13, %v1955_v13, 0  ;;  %v2189_v42 = vpop.permute.xlu2 %2188 }
 0xaa5   : > { %1977 = vmatpush.bf16.xpose.msrb.mxu2 %v1965_v17  ;;  %v2199_v59 = vsel %vm624_vm13, %v2189_v42, 0 }
 0xaab   : > { %v1951_v45 = vpop.permute.xlu0 %1950  ;;  %v1840_v62 = vpop.permute.xlu1 %1839 }
 0xaac   : > { %v1851_v19 = vsel %vm624_vm13, %v1840_v62, 0  ;;  %3051 = vmatmul.msk.bf16.vlgmr.msrb.gmra.mxu2 %vm624_vm13, %v1951_v45  ;;  %v2072_v20 = vpop.permute.xlu2 %2071 }
 0xaad   : > { %1859 = vmatpush.bf16.xpose.msrb.mxu0 %v1851_v19  ;;  %v2082_v12 = vsel %vm624_vm13, %v2072_v20, 0 }
 0xab3   : > { %v2191_v51 = vpop.permute.xlu0 %2190  ;;  %v1953_v10 = vpop.permute.xlu1 %1952 }
 0xab4   : > { %v2202_v48 = vsel %vm624_vm13, %v2191_v51, 0  ;;  %v2429_v21 = vpop.permute.xlu2 %2428 }
 0xab5   : > { %1860 = vmatpush.bf16.xpose.msrb.mxu0 %v1848_v22  ;;  %2210 = vmatpush.bf16.xpose.msra.mxu2 %v2202_v48  ;;  %v2440_v32 = vsel %vm624_vm13, %v2429_v21, 0 }
 0xabb   : > { %v2185_v23 = vpop.permute.xlu0 %2184  ;;  %v2074_v26 = vpop.permute.xlu1 %2073 }
 0xabc   : > { %v2085_v63 = vsel %vm624_vm13, %v2074_v26, 0  ;;  %3047 = vmatmul.msk.bf16.vlgmr.msrb.gmra.mxu0 %vm624_vm13, %v4245_v36  ;;  %3052 = vmatmul.msk.bf16.gmra.mxu2 %vm624_vm13, %v1953_v10  ;;  %v2308_v8 = vpop.permute.xlu2 %2307 }
 0xabd   : > { %2093 = vmatpush.bf16.xpose.msra.mxu0 %v2085_v63  ;;  %2211 = vmatpush.bf16.xpose.msra.mxu2 %v2199_v59  ;;  %v2319_v33 = vsel %vm624_vm13, %v2308_v8, 0 }
 0xac3   : > { %v2187_v35 = vpop.permute.xlu0 %2186  ;;  %v2068_v3 = vpop.permute.xlu1 %2067 }
 0xac5   : > { %2448 = vmatpush.bf16.xpose.msrb.mxu2 %v2440_v32  ;;  %2094 = vmatpush.bf16.xpose.msra.mxu0 %v2082_v12 }
 0xacb   : > { %v2070_v39 = vpop.permute.xlu0 %2069  ;;  %v2427_v29 = vpop.permute.xlu1 %2426 }
 0xacc   : > { %v2437_v47 = vsel %vm624_vm13, %v2427_v29, 0  ;;  %3048 = vmatmul.msk.bf16.gmra.mxu0 %vm624_vm13, %v4252_v15  ;;  %3059 = vmatmul.msk.bf16.vlgmr.msra.gmra.mxu2 %vm624_vm13, %v2185_v23 }
 0xacd   : > { %2327 = vmatpush.bf16.xpose.msrb.mxu0 %v2319_v33  ;;  %2449 = vmatpush.bf16.xpose.msrb.mxu2 %v2437_v47 }
 0xad3   : > { %v2306_v31 = vpop.permute.xlu0 %2305  ;;  %v2423_v56 = vpop.permute.xlu1 %2422 }
 0xad4   : > { %v2316_v53 = vsel %vm624_vm13, %v2306_v31, 0 }
 0xad5   : > { %2791 = vmatpush.bf16.msra.mxu2 %v4161_v5  ;;  %2328 = vmatpush.bf16.xpose.msrb.mxu0 %v2316_v53  ;;  %v2302_v5 = vpop.permute.xlu2 %2301 }
 0xad9   : > { %2792 = vmatpush.bf16.msra.mxu2 %v4167_v27 }
 0xadb   : > { %v2425_v18 = vpop.permute.xlu0 %2424  ;;  %v1919_v24 = vpop.permute.xlu1 %1918 }
 0xadc   : > { %3055 = vmatmul.msk.bf16.vlgmr.msra.gmra.mxu0 %vm624_vm13, %v2068_v3  ;;  %3060 = vmatmul.msk.bf16.gmra.mxu2 %vm624_vm13, %v2187_v35 }
 0xadd   : > { %2793 = vmatpush.bf16.msra.mxu2 %v4173_v16  ;;  %2637 = vmatpush.bf16.msra.mxu0 %v4066_v49  ;;  %v2036_v54 = vpop.permute.xlu2 %2035 }
 0xae1   : > { %2794 = vmatpush.bf16.msra.mxu2 %v4179_v14  ;;  %2638 = vmatpush.bf16.msra.mxu0 %v4072_v7 }
 0xae3   : > { %v1921_v27 = vpop.permute.xlu0 %1920  ;;  %v2038_v28 = vpop.permute.xlu1 %2037 }
 0xae4   : > { %v1930_v16 = vand.u32 %v1921_v27, %v3829_v41  ;;  %v2047_v14 = vand.u32 %v2038_v28, %v3829_v41 }
 0xae5   : > { %2795 = vmatpush.bf16.msra.mxu2 %v4185_v11  ;;  %2639 = vmatpush.bf16.msra.mxu0 %v4080_v55  ;;  %v2304_v49 = vpop.permute.xlu2 %2303 }
 0xae6   : > { %1938 = vmatpush.bf16.msrb.mxu1 %v1930_v16  ;;  %2055 = vmatpush.bf16.msrb.mxu3 %v2047_v14 }
 0xae9   : > { %2796 = vmatpush.bf16.msra.mxu2 %v4194_v43 }
 0xaea   : > { %1939 = vmatpush.bf16.msrb.mxu1 %v1919_v24  ;;  %2056 = vmatpush.bf16.msrb.mxu3 %v2036_v54 }
 0xaec   : > { %3056 = vmatmul.msk.bf16.gmra.mxu0 %vm624_vm13, %v2070_v39  ;;  %3067 = vmatmul.msk.bf16.vlgmr.msrb.gmra.mxu2 %vm624_vm13, %v2423_v56 }
 0xafc   : > { %3063 = vmatmul.msk.bf16.vlgmr.msrb.gmra.mxu0 %vm624_vm13, %v2302_v5  ;;  %3068 = vmatmul.msk.bf16.gmra.mxu2 %vm624_vm13, %v2425_v18 }
 0xb0c   : > { %3064 = vmatmul.msk.bf16.gmra.mxu0 %vm624_vm13, %v2304_v49 }
 0xb2f   : > { %v1979_v7 = vpop.f32.mrf.mxu2 }
 0xb30   : > { %v4341_v11 = vmul.f32 0.35355338, %v1979_v7 }
 0xb32   : > { %v1991_v55 = vsel %vm658_vm15, %v4341_v11, -inf }
 0xb33   : > { %1992 = vmax.xlane.f32.xlu1 %v1991_v55 }
 0xb37   : > { %v1981_v43 = vpop.f32.mrf.mxu2 }
 0xb38   : > { %v4345_v46 = vmul.f32 0.35355338, %v1981_v43 }
 0xb39   : > { %v1862_v61 = vpop.f32.mrf.mxu0 }
 0xb3a   : > { %v4347_v4 = vmul.f32 0.35355338, %v1862_v61  ;;  %v1994_v2 = vsel %vm658_vm15, %v4345_v46, -inf }
 0xb3b   : > { %1995 = vmax.xlane.f32.xlu0 %v1994_v2 }
 0xb3c   : > { %v1874_v57 = vsel %vm658_vm15, %v4347_v4, -inf }
 0xb3d   : > { %1875 = vmax.xlane.f32.xlu2 %v1874_v57 }
 0xb3f   : > { %v1984_v34 = vpop.f32.mrf.mxu2 }
 0xb40   : > { %v4353_v37 = vmul.f32 0.35355338, %v1984_v34 }
 0xb41   : > { %v1864_v0 = vpop.f32.mrf.mxu0 }
 0xb42   : > { %v4355_v40 = vmul.f32 0.35355338, %v1864_v0  ;;  %v1997_v6 = vsel %vm665_vm3, %v4353_v37, -inf }
 0xb43   : > { %1998 = vmax.xlane.f32.xlu0 %v1997_v6 }
 0xb44   : > { %v1877_v44 = vsel %vm658_vm15, %v4355_v40, -inf }
 0xb45   : > { %1878 = vmax.xlane.f32.xlu1 %v1877_v44 }
 0xb47   : > { %v1986_v50 = vpop.f32.mrf.mxu2 }
 0xb49   : > { %v1867_v58 = vpop.f32.mrf.mxu0 }
 0xb4a   : > { %v4361_v13 = vmul.f32 0.35355338, %v1867_v58 }
 0xb4c   : > { %v1880_v17 = vsel %vm665_vm3, %v4361_v13, -inf }
 0xb4d   : > { %1881 = vmax.xlane.f32.xlu2 %v1880_v17 }
 0xb4f   : > { %v2213_v42 = vpop.f32.mrf.mxu2 }
 0xb50   : > { %v4365_v45 = vmul.f32 0.35355338, %v2213_v42 }
 0xb51   : > { %v1869_v62 = vpop.f32.mrf.mxu0 }
 0xb52   : > { %v2225_v19 = vsel %vm658_vm15, %v4365_v45, -inf }
 0xb53   : > { %2226 = vmax.xlane.f32.xlu1 %v2225_v19 }
 0xb57   : > { %v2215_v20 = vpop.f32.mrf.mxu2 }
 0xb58   : > { %v4369_v51 = vmul.f32 0.35355338, %v2215_v20 }
 0xb59   : > { %v2096_v10 = vpop.f32.mrf.mxu0 }
 0xb5a   : > { %v4371_v22 = vmul.f32 0.35355338, %v2096_v10  ;;  %v2228_v48 = vsel %vm658_vm15, %v4369_v51, -inf }
 0xb5b   : > { %2229 = vmax.xlane.f32.xlu0 %v2228_v48 }
 0xb5c   : > { %v2108_v21 = vsel %vm658_vm15, %v4371_v22, -inf }
 0xb5d   : > { %2109 = vmax.xlane.f32.xlu2 %v2108_v21 }
 0xb5f   : > { %v2218_v23 = vpop.f32.mrf.mxu2 }
 0xb60   : > { %v4377_v26 = vmul.f32 0.35355338, %v2218_v23 }
 0xb61   : > { %v2098_v59 = vpop.f32.mrf.mxu0 }
 0xb62   : > { %v4379_v63 = vmul.f32 0.35355338, %v2098_v59  ;;  %v2231_v32 = vsel %vm665_vm3, %v4377_v26, -inf }
 0xb63   : > { %2232 = vmax.xlane.f32.xlu0 %v2231_v32 }
 0xb64   : > { %v2111_v8 = vsel %vm658_vm15, %v4379_v63, -inf }
 0xb65   : > { %2112 = vmax.xlane.f32.xlu1 %v2111_v8 }
 0xb67   : > { %v2220_v35 = vpop.f32.mrf.mxu2 }
 0xb69   : > { %v2101_v3 = vpop.f32.mrf.mxu0 }
 0xb6a   : > { %v4385_v12 = vmul.f32 0.35355338, %v2101_v3 }
 0xb6c   : > { %v2114_v33 = vsel %vm665_vm3, %v4385_v12, -inf }
 0xb6d   : > { %2115 = vmax.xlane.f32.xlu2 %v2114_v33 }
 0xb6f   : > { %v2451_v39 = vpop.f32.mrf.mxu2 }
 0xb70   : > { %v4399_v27 = vmul.f32 0.35355338, %v2451_v39 }
 0xb71   : > { %v2103_v29 = vpop.f32.mrf.mxu0 }
 0xb72   : > { %v2463_v16 = vsel %vm658_vm15, %v4399_v27, -inf }
 0xb77   : > { %v2453_v47 = vpop.f32.mrf.mxu2 }
 0xb78   : > { %v4389_v31 = vmul.f32 0.35355338, %v2453_v47 }
 0xb79   : > { %v2330_v56 = vpop.f32.mrf.mxu0 }
 0xb7a   : > { %v4391_v53 = vmul.f32 0.35355338, %v2330_v56  ;;  %v2466_v18 = vsel %vm658_vm15, %v4389_v31, -inf }
 0xb7b   : > { %2467 = vmax.xlane.f32.xlu1 %v2466_v18 }
 0xb7c   : > { %v2342_v24 = vsel %vm658_vm15, %v4391_v53, -inf }
 0xb7d   : > { %2343 = vmax.xlane.f32.xlu0 %v2342_v24 }
 0xb7f   : > { %v4397_v5 = vpop.f32.mrf.mxu2 }
 0xb81   : > { %v2332_v28 = vpop.f32.mrf.mxu0 }
 0xb82   : > { %v4403_v54 = vmul.f32 0.35355338, %v2332_v28 }
 0xb84   : > { %v2345_v7 = vsel %vm658_vm15, %v4403_v54, -inf }
 0xb85   : > { %2464 = vmax.xlane.f32.xlu0 %v2463_v16 }
 0xb87   : > { %v2458_v14 = vpop.f32.mrf.mxu2 }
 0xb89   : > { %v4405_v49 = vpop.f32.mrf.mxu0 }
 0xb8d   : > { %2346 = vmax.xlane.f32.xlu0 %v2345_v7 }
 0xb91   : > { %v2337_v55 = vpop.f32.mrf.mxu0 }
 0xba1   : > { %2269 = vrot.lane.b32.xlu0 %v4245_v36, %s4733_s24 }
 0xba6   : > { %v1993_v43 = vpop.xlane.xlu1 %1992 }
 0xba7   : > { %v2000_v61 = vsub.f32 %v4341_v11, %v1993_v43 }
 0xba9   : > { %v2003_v2 = vmul.f32 1.442695, %v2000_v61  ;;  %2152 = vrot.lane.b32.xlu0 %v4245_v36, %s4734_s12 }
 0xbab   : > { %3328 = vpow2.f32 %v2003_v2 }
 0xbae   : > { %v1996_v57 = vpop.xlane.xlu0 %1995 }
 0xbaf   : > { %v2001_v50 = vsub.f32 %v4345_v46, %v1996_v57 }
 0xbb0   : > { %v1876_v34 = vpop.xlane.xlu2 %1875 }
 0xbb1   : > { %v4414_v0 = vpop.eup %3328  ;;  %v1883_v6 = vsub.f32 %v4347_v4, %v1876_v34  ;;  %v2005_v11 = vmul.f32 1.442695, %v2001_v50 }
 0xbb2   : > { %v2009_v44 = vsel %vm658_vm15, %v4414_v0, 0.0 }
 0xbb3   : > { %v1886_v58 = vmul.f32 1.442695, %v1883_v6  ;;  %2010 = vadd.xlane.f32.xlu2 %v2009_v44 }
 0xbb5   : > { %3330 = vpow2.f32 %v1886_v58 }
 0xbb6   : > { %3332 = vpow2.f32 %v2005_v11  ;;  %v1999_v59 = vpop.xlane.xlu0 %1998 }
 0xbb7   : > { %v2002_v28 = vsub.f32 %v4353_v37, %v1999_v59 }
 0xbb8   : > { %v1879_v17 = vpop.xlane.xlu1 %1878 }
 0xbb9   : > { %v1884_v42 = vsub.f32 %v4355_v40, %v1879_v17  ;;  %v2007_v16 = vmul.f32 1.442695, %v2002_v28 }
 0xbbb   : > { %v4421_v36 = vpop.eup %3330  ;;  %v1888_v62 = vmul.f32 1.442695, %v1884_v42 }
 0xbbc   : > { %v1892_v19 = vsel %vm658_vm15, %v4421_v36, 0.0  ;;  %v4425_v20 = vpop.eup %3332 }
 0xbbd   : > { %3334 = vpow2.f32 %v1888_v62  ;;  %1893 = vadd.xlane.f32.xlu1 %v1892_v19  ;;  %v2012_v40 = vsel %vm658_vm15, %v4425_v20, 0.0 }
 0xbc0   : > { %v1882_v4 = vpop.xlane.xlu2 %1881 }
 0xbc1   : > { %v1885_v46 = vsub.f32 %v4361_v13, %v1882_v4 }
 0xbc3   : > { %v4428_v10 = vpop.eup %3334  ;;  %v1890_v21 = vmul.f32 1.442695, %v1885_v46 }
 0xbc4   : > { %v1895_v48 = vsel %vm658_vm15, %v4428_v10, 0.0 }
 0xbc5   : > { %1896 = vadd.xlane.f32.xlu2 %v1895_v48  ;;  %2013 = vadd.xlane.f32.xlu1 %v2012_v40  ;;  %3336 = vpow2.f32 %v1890_v21 }
 0xbc6   : > { %v2227_v32 = vpop.xlane.xlu1 %2226 }
 0xbcb   : > { %v4434_v23 = vpop.eup %3336 }
 0xbcc   : > { %v1898_v8 = vsel %vm665_vm3, %v4434_v23, 0.0 }
 0xbce   : > { %v2230_v13 = vpop.xlane.xlu0 %2229 }
 0xbcf   : > { %v2235_v33 = vsub.f32 %v4369_v51, %v2230_v13 }
 0xbd0   : > { %v2110_v7 = vpop.xlane.xlu2 %2109 }
 0xbd1   : > { %v2239_v29 = vmul.f32 1.442695, %v2235_v33  ;;  %v2117_v57 = vsub.f32 %v4371_v22, %v2110_v7  ;;  %v4505_v7 = vmul.f32 0.35355338, %v4405_v49  ;;  %v2379_v49 = vrot.slane %v4241_v9, 4 }
 0xbd3   : > { %1899 = vadd.xlane.f32.xlu0 %v1898_v8  ;;  %v2120_v6 = vmul.f32 1.442695, %v2117_v57 }
 0xbd6   : > { %v2233_v18 = vpop.xlane.xlu0 %2232 }
 0xbd8   : > { %v2113_v35 = vpop.xlane.xlu1 %2112 }
 0xbd9   : > { %v2118_v3 = vsub.f32 %v4379_v63, %v2113_v35 }
 0xbdb   : > { %v2122_v39 = vmul.f32 1.442695, %v2118_v3 }
 0xbdd   : > { %3338 = vpow2.f32 %v2122_v39  ;;  %2154 = vrot.lane.b32.xlu2 %v4252_v15, %s4734_s12 }
 0xbde   : > { %2271 = vrot.lane.b32.xlu1 %v4252_v15, %s4733_s24  ;;  %3340 = vpow2.f32 %v2239_v29  ;;  %v2236_v15 = vsub.f32 %v4377_v26, %v2233_v18 }
 0xbdf   : > { %3342 = vpow2.f32 %v2007_v16 }
 0xbe0   : > { %v2241_v43 = vmul.f32 1.442695, %v2236_v15  ;;  %v2116_v17 = vpop.xlane.xlu2 %2115  ;;  %v2380_v15 = vrot.slane %v4249_v60, 4 }
 0xbe3   : > { %v4444_v47 = vpop.eup %3338 }
 0xbe4   : > { %v2129_v56 = vsel %vm658_vm15, %v4444_v47, 0.0  ;;  %v4448_v63 = vpop.eup %3340 }
 0xbe5   : > { %2130 = vadd.xlane.f32.xlu0 %v2129_v56  ;;  %v2246_v51 = vsel %vm658_vm15, %v4448_v63, 0.0  ;;  %v4457_v44 = vpop.eup %3342 }
 0xbe6   : > { %v2015_v22 = vsel %vm665_vm3, %v4457_v44, 0.0 }
 0xbed   : > { %2247 = vadd.xlane.f32.xlu0 %v2246_v51 }
 0xbee   : > { %v2468_v61 = vpop.xlane.xlu1 %2467 }
 0xbef   : > { %v2473_v34 = vsub.f32 %v4389_v31, %v2468_v61 }
 0xbf0   : > { %v2344_v24 = vpop.xlane.xlu0 %2343 }
 0xbf1   : > { %v2477_v37 = vmul.f32 1.442695, %v2473_v34  ;;  %v2351_v40 = vsub.f32 %v4391_v53, %v2344_v24 }
 0xbf3   : > { %v2354_v59 = vmul.f32 1.442695, %v2351_v40 }
 0xbf8   : > { %v2465_v14 = vpop.xlane.xlu0 %2464 }
 0xbf9   : > { %v2472_v55 = vsub.f32 %v4399_v27, %v2465_v14  ;;  %v2234_v27 = vsub.f32 %v4365_v45, %v2227_v32  ;;  %v2119_v45 = vsub.f32 %v4385_v12, %v2116_v17 }
 0xbfb   : > { %v2475_v2 = vmul.f32 1.442695, %v2472_v55  ;;  %v2237_v11 = vmul.f32 1.442695, %v2234_v27  ;;  %v2124_v46 = vmul.f32 1.442695, %v2119_v45 }
 0xbfc   : > { %v2378_v45 = vrot.slane %v4239_v52, 4 }
 0xbfd   : > { %3344 = vpow2.f32 %v2475_v2  ;;  %v2391_v2 = vunpack.c.l.b16 %v2380_v15 }
 0xbfe   : > { %3346 = vpow2.f32 %v2241_v43 }
 0xbff   : > { %3348 = vpow2.f32 %v2120_v6 }
 0xc00   : > { %3350 = vpow2.f32 %v2477_v37  ;;  %v2347_v12 = vpop.xlane.xlu0 %2346 }
 0xc01   : > { %3352 = vpow2.f32 %v2237_v11  ;;  %v2352_v8 = vsub.f32 %v4403_v54, %v2347_v12 }
 0xc02   : > { %3354 = vpow2.f32 %v2124_v46  ;;  %v2390_v46 = vunpack.c.l.b16 %v2379_v49 }
 0xc03   : > { %v4459_v26 = vpop.eup %3344  ;;  %3356 = vpow2.f32 %v2354_v59  ;;  %v2356_v35 = vmul.f32 1.442695, %v2352_v8 }
 0xc04   : > { %v4461_v50 = vpop.eup %3346  ;;  %v2481_v58 = vsel %vm658_vm15, %v4459_v26, 0.0 }
 0xc05   : > { %2482 = vadd.xlane.f32.xlu0 %v2481_v58  ;;  %v2249_v31 = vsel %vm665_vm3, %v4461_v50, 0.0  ;;  %v4470_v42 = vpop.eup %3348  ;;  %3358 = vpow2.f32 %v2356_v35 }
 0xc06   : > { %2016 = vadd.xlane.f32.xlu2 %v2015_v22  ;;  %v4472_v62 = vpop.eup %3350  ;;  %v2126_v19 = vsel %vm658_vm15, %v4470_v42, 0.0  ;;  %v2393_v22 = vpack.c.b16 %v2391_v2, %v2391_v2 }
 0xc07   : > { %v2484_v4 = vsel %vm658_vm15, %v4472_v62, 0.0  ;;  %v4479_v48 = vpop.eup %3352 }
 0xc08   : > { %2250 = vadd.xlane.f32.xlu1 %v2249_v31  ;;  %v2243_v21 = vsel %vm658_vm15, %v4479_v48, 0.0  ;;  %v4486_v32 = vpop.eup %3354  ;;  %v2402_v40 = vand.u32 %v2393_v22, %v3829_v41 }
 0xc09   : > { %v2132_v13 = vsel %vm665_vm3, %v4486_v32, 0.0  ;;  %v4491_v53 = vpop.eup %3356 }
 0xc0a   : > { %v2360_v3 = vsel %vm658_vm15, %v4491_v53, 0.0 }
 0xc0b   : > { %v4497_v33 = vpop.eup %3358 }
 0xc0c   : > { %v2363_v54 = vsel %vm658_vm15, %v4497_v33, 0.0 }
 0xc0e   : > { %2127 = vadd.xlane.f32.xlu2 %v2126_v19 }
 0xc10   : > { %2485 = vadd.xlane.f32.xlu1 %v2484_v4 }
 0xc13   : > { %v2270_v56 = vpop.permute.xlu0 %2269 }
 0xc16   : > { %2244 = vadd.xlane.f32.xlu2 %v2243_v21  ;;  %v2389_v21 = vunpack.c.l.b16 %v2378_v45 }
 0xc18   : > { %v2392_v59 = vpack.c.b16 %v2390_v46, %v2389_v21 }
 0xc19   : > { %2499 = vrot.lane.b32.xlu0 %v4239_v52, %s3488_s14  ;;  %v4520_v52 = vmul.f32 0.35355338, %v4397_v5 }
 0xc1b   : > { %v2153_v55 = vpop.permute.xlu0 %2152 }
 0xc1e   : > { %2133 = vadd.xlane.f32.xlu2 %v2132_v13 }
 0xc26   : > { %2361 = vadd.xlane.f32.xlu2 %v2360_v3  ;;  %v2011_v39 = vpop.xlane.xlu2 %2010  ;;  %v2469_v3 = vsel %vm665_vm3, %v4520_v52, -inf }
 0xc27   : > { %3360 = vrcp.f32 %v2011_v39 }
 0xc29   : > { %2503 = vrot.lane.b32.xlu1 %v4249_v60, %s3488_s14 }
 0xc2d   : > { %v3361_v24 = vpop.eup %3360 }
 0xc2e   : > { %2364 = vadd.xlane.f32.xlu2 %v2363_v54  ;;  %v2021_v16 = vmul.f32 %v3361_v24, %v4414_v0  ;;  %v2348_v0 = vsel %vm665_vm3, %v4505_v7, -inf }
 0xc30   : > { %v1894_v29 = vpop.xlane.xlu1 %1893  ;;  %v2024_v57 = vpack.c.bf16 %v2021_v16, %v2021_v16 }
 0xc31   : > { %3362 = vrcp.f32 %v1894_v29 }
 0xc32   : > { %v2030_v31 = vunpack.c.l.b16 %v2024_v57 }
 0xc37   : > { %v3363_v28 = vpop.eup %3362 }
 0xc38   : > { %v2014_v18 = vpop.xlane.xlu1 %2013  ;;  %v1897_v51 = vpop.xlane.xlu2 %1896  ;;  %v1904_v14 = vmul.f32 %v3363_v28, %v4421_v36 }
 0xc39   : > { %3364 = vrcp.f32 %v2014_v18 }
 0xc3a   : > { %3366 = vrcp.f32 %v1897_v51  ;;  %v1907_v37 = vpack.c.bf16 %v1904_v14, %v1904_v14 }
 0xc3c   : > { %v1913_v17 = vunpack.c.l.b16 %v1907_v37 }
 0xc3f   : > { %v3365_v43 = vpop.eup %3364 }
 0xc40   : > { %v3367_v61 = vpop.eup %3366  ;;  %v2022_v34 = vmul.f32 %v3365_v43, %v4425_v20  ;;  %v2155_v6 = vpop.permute.xlu2 %2154 }
 0xc41   : > { %v1905_v27 = vmul.f32 %v3367_v61, %v4428_v10  ;;  %v2164_v60 = vand.u32 %v2155_v6, %v3829_v41 }
 0xc42   : > { %v2025_v58 = vpack.c.bf16 %v2022_v34, %v2022_v34 }
 0xc43   : > { %v1908_v36 = vpack.c.bf16 %v1905_v27, %v1905_v27  ;;  %2349 = vmax.xlane.f32.xlu0 %v2348_v0  ;;  %2172 = vmatpush.bf16.msra.mxu1 %v2164_v60 }
 0xc44   : > { %v2031_v11 = vunpack.c.l.b16 %v2025_v58 }
 0xc45   : > { %v1914_v20 = vunpack.c.l.b16 %v1908_v36 }
 0xc46   : > { %v2033_v19 = vpack.c.b16 %v2031_v11, %v2030_v31  ;;  %v1900_v10 = vpop.xlane.xlu0 %1899  ;;  %2501 = vrot.lane.b32.xlu2 %v4241_v9, %s3488_s14  ;;  %v3415_v11 = vld [vmem:[%s4684_s6 + $0x8] sm:$0xff]  ;;  %s2859_s14 = scalar_lea.hbm %s4689_s11, %s3584_s21 }
 0xc47   : > { %v1916_v4 = vpack.c.b16 %v1914_v20, %v1913_v17  ;;  %3368 = vrcp.f32 %v1900_v10  ;;  %2173 = vmatpush.bf16.msra.mxu1 %v2153_v55  ;;  %v3416_v10 = vld [vmem:[%s4684_s6] sm:$0xff] }
 0xc48   : > { %3053 = vmatmul.msk.bf16.vlgmr.msrb.gmra.mxu3 %vm658_vm15, %v2033_v19 }
 0xc49   : > { %3049 = vmatmul.msk.bf16.vlgmr.msrb.gmra.mxu1 %vm658_vm15, %v1916_v4 }
 0xc4b   : > { %2410 = vmatpush.bf16.msrb.mxu1 %v2402_v40 }
 0xc4d   : > { %v3369_v12 = vpop.eup %3368 }
 0xc4e   : > { %v1906_v9 = vmul.f32 %v3369_v12, %v4434_v23 }
 0xc4f   : > { %2411 = vmatpush.bf16.msrb.mxu1 %v2392_v59 }
 0xc50   : > { %v2272_v8 = vpop.permute.xlu1 %2271  ;;  %v1909_v13 = vpack.c.bf16 %v1906_v9, %v1906_v9 }
 0xc51   : > { %v2281_v35 = vand.u32 %v2272_v8, %v3829_v41 }
 0xc52   : > { %v1915_v54 = vunpack.c.l.b16 %v1909_v13 }
 0xc53   : > { %2470 = vmax.xlane.f32.xlu1 %v2469_v3  ;;  %2289 = vmatpush.bf16.msra.mxu3 %v2281_v35 }
 0xc54   : > { %v1917_v39 = vpack.c.b16 %v1915_v54, %v1915_v54 }
 0xc57   : > { %2290 = vmatpush.bf16.msra.mxu3 %v2270_v56 }
 0xc58   : > { %v2131_v29 = vpop.xlane.xlu0 %2130 }
 0xc59   : > { %3050 = vmatmul.msk.bf16.gmra.mxu1 %vm658_vm15, %v1917_v39 }
 0xc60   : > { %v2248_v23 = vpop.xlane.xlu0 %2247 }
 0xc78   : > { %v2483_v59 = vpop.xlane.xlu0 %2482 }
 0xc79   : > { %v2017_v5 = vpop.xlane.xlu2 %2016 }
 0xc7a   : > { %3370 = vrcp.f32 %v2017_v5 }
 0xc7b   : > { %3372 = vrcp.f32 %v2131_v29  ;;  %v2251_v61 = vpop.xlane.xlu1 %2250 }
 0xc80   : > { %v3371_v18 = vpop.eup %3370 }
 0xc81   : > { %v2128_v51 = vpop.xlane.xlu2 %2127  ;;  %v2023_v24 = vmul.f32 %v3371_v18, %v4457_v44  ;;  %v3373_v28 = vpop.eup %3372 }
 0xc82   : > { %3374 = vrcp.f32 %v2128_v51  ;;  %v2139_v16 = vmul.f32 %v3373_v28, %v4444_v47 }
 0xc83   : > { %v2026_v15 = vpack.c.bf16 %v2023_v24, %v2023_v24  ;;  %3376 = vrcp.f32 %v2248_v23  ;;  %v2486_v49 = vpop.xlane.xlu1 %2485 }
 0xc84   : > { %v2142_v43 = vpack.c.bf16 %v2139_v16, %v2139_v16 }
 0xc85   : > { %v2032_v14 = vunpack.c.l.b16 %v2026_v15 }
 0xc86   : > { %v2148_v44 = vunpack.c.l.b16 %v2142_v43 }
 0xc87   : > { %v2034_v56 = vpack.c.b16 %v2032_v14, %v2032_v14 }
 0xc88   : > { %v3375_v55 = vpop.eup %3374 }
 0xc89   : > { %v2138_v2 = vmul.f32 %v3375_v55, %v4470_v42  ;;  %3054 = vmatmul.msk.bf16.gmra.mxu3 %vm658_vm15, %v2034_v56  ;;  %v2245_v57 = vpop.xlane.xlu2 %2244  ;;  %v3377_v34 = vpop.eup %3376  ;;  %v3414_v42 = vld [vmem:[%s4684_s6 + $0x10] sm:$0xff] }
 0xc8a   : > { %3378 = vrcp.f32 %v2245_v57  ;;  %v2256_v37 = vmul.f32 %v3377_v34, %v4448_v63 }
 0xc8b   : > { %v2141_v6 = vpack.c.bf16 %v2138_v2, %v2138_v2  ;;  %3380 = vrcp.f32 %v2251_v61 }
 0xc8c   : > { %v2259_v47 = vpack.c.bf16 %v2256_v37, %v2256_v37 }
 0xc8d   : > { %v2147_v27 = vunpack.c.l.b16 %v2141_v6 }
 0xc8e   : > { %v2265_v31 = vunpack.c.l.b16 %v2259_v47 }
 0xc8f   : > { %v2150_v60 = vpack.c.b16 %v2148_v44, %v2147_v27 }
 0xc90   : > { %v3379_v58 = vpop.eup %3378 }
 0xc91   : > { %v2255_v0 = vmul.f32 %v3379_v58, %v4479_v48  ;;  %3057 = vmatmul.msk.bf16.vlgmr.msra.gmra.mxu1 %vm658_vm15, %v2150_v60  ;;  %v2134_v36 = vpop.xlane.xlu2 %2133  ;;  %v3381_v17 = vpop.eup %3380 }
 0xc92   : > { %3382 = vrcp.f32 %v2134_v36  ;;  %2741 = vmatpush.bf16.msra.mxu1 %v3414_v42  ;;  %v2257_v4 = vmul.f32 %v3381_v17, %v4461_v50  ;;  %v2500_v50 = vpop.permute.xlu0 %2499 }
 0xc93   : > { %v2258_v22 = vpack.c.bf16 %v2255_v0, %v2255_v0  ;;  %v2505_v51 = vrot.slane %v2500_v50, 4 }
 0xc94   : > { %v2260_v8 = vpack.c.bf16 %v2257_v4, %v2257_v4 }
 0xc95   : > { %v2264_v63 = vunpack.c.l.b16 %v2258_v22  ;;  %v2516_v55 = vunpack.c.l.b16 %v2505_v51 }
 0xc96   : > { %2742 = vmatpush.bf16.msra.mxu1 %v3415_v11  ;;  %v2266_v39 = vunpack.c.l.b16 %v2260_v8 }
 0xc97   : > { %v2267_v48 = vpack.c.b16 %v2265_v31, %v2264_v63 }
 0xc98   : > { %v3383_v20 = vpop.eup %3382  ;;  %v2268_v18 = vpack.c.b16 %v2266_v39, %v2266_v39 }
 0xc99   : > { %v2140_v45 = vmul.f32 %v3383_v20, %v4486_v32  ;;  %3061 = vmatmul.msk.bf16.vlgmr.msra.gmra.mxu3 %vm658_vm15, %v2267_v48  ;;  %v2362_v19 = vpop.xlane.xlu2 %2361 }
 0xc9a   : > { %2743 = vmatpush.bf16.msra.mxu1 %v3416_v10  ;;  %3384 = vrcp.f32 %v2362_v19 }
 0xc9b   : > { %v2143_v46 = vpack.c.bf16 %v2140_v45, %v2140_v45  ;;  %v2504_v40 = vpop.permute.xlu1 %2503  ;;  %3386 = vrcp.f32 %v2486_v49 }
 0xc9c   : > { %v2507_v21 = vrot.slane %v2504_v40, 4 }
 0xc9d   : > { %v2149_v12 = vunpack.c.l.b16 %v2143_v46 }
 0xc9e   : > { %v2518_v9 = vunpack.c.l.b16 %v2507_v21 }
 0xc9f   : > { %v2151_v13 = vpack.c.b16 %v2149_v12, %v2149_v12 }
 0xca0   : > { %v2520_v32 = vpack.c.b16 %v2518_v9, %v2518_v9  ;;  %v3385_v3 = vpop.eup %3384 }
 0xca1   : > { %3058 = vmatmul.msk.bf16.gmra.mxu1 %vm658_vm15, %v2151_v13  ;;  %v2365_v35 = vpop.xlane.xlu2 %2364  ;;  %v2372_v29 = vmul.f32 %v3385_v3, %v4491_v53  ;;  %v3387_v5 = vpop.eup %3386 }
 0xca2   : > { %v2529_v54 = vand.u32 %v2520_v32, %v3829_v41  ;;  %3388 = vrcp.f32 %v2365_v35  ;;  %v2494_v41 = vmul.f32 %v3387_v5, %v4472_v62 }
 0xca3   : > { %3390 = vrcp.f32 %v2483_v59  ;;  %v2375_v24 = vpack.c.bf16 %v2372_v29, %v2372_v29 }
 0xca4   : > { %2537 = vmatpush.bf16.msrb.mxu3 %v2529_v54  ;;  %v2497_v34 = vpack.c.bf16 %v2494_v41, %v2494_v41 }
 0xca5   : > { %v2384_v53 = vunpack.c.l.b16 %v2375_v24 }
 0xca8   : > { %v3389_v23 = vpop.eup %3388 }
 0xca9   : > { %v2373_v28 = vmul.f32 %v3389_v23, %v4497_v33  ;;  %3062 = vmatmul.msk.bf16.gmra.mxu3 %vm658_vm15, %v2268_v18  ;;  %v2502_v15 = vpop.permute.xlu2 %2501  ;;  %v3391_v16 = vpop.eup %3390  ;;  %v2512_v33 = vunpack.c.l.b16 %v2497_v34 }
 0xcaa   : > { %v2506_v14 = vrot.slane %v2502_v15, 4  ;;  %v2493_v61 = vmul.f32 %v3391_v16, %v4459_v26 }
 0xcab   : > { %v2376_v56 = vpack.c.bf16 %v2373_v28, %v2373_v28 }
 0xcac   : > { %v2517_v43 = vunpack.c.l.b16 %v2506_v14  ;;  %v2496_v44 = vpack.c.bf16 %v2493_v61, %v2493_v61 }
 0xcad   : > { %v2385_v2 = vunpack.c.l.b16 %v2376_v56 }
 0xcae   : > { %v2519_v57 = vpack.c.b16 %v2517_v43, %v2516_v55  ;;  %v2511_v37 = vunpack.c.l.b16 %v2496_v44 }
 0xcaf   : > { %v2387_v6 = vpack.c.b16 %v2385_v2, %v2384_v53 }
 0xcb0   : > { %2538 = vmatpush.bf16.msrb.mxu3 %v2519_v57  ;;  %v2514_v60 = vpack.c.b16 %v2512_v33, %v2511_v37 }
 0xcb1   : > { %3065 = vmatmul.msk.bf16.vlgmr.msrb.gmra.mxu1 %vm658_vm15, %v2387_v6 }
 0xcb6   : > { %v2350_v27 = vpop.xlane.xlu0 %2349 }
 0xcb7   : > { %v2353_v62 = vsub.f32 %v4505_v7, %v2350_v27 }
 0xcb9   : > { %v2358_v58 = vmul.f32 1.442695, %v2353_v62  ;;  %3069 = vmatmul.msk.bf16.vlgmr.msrb.gmra.mxu3 %vm658_vm15, %v2514_v60 }
 0xcbb   : > { %3392 = vpow2.f32 %v2358_v58 }
 0xcc1   : > { %v3393_v26 = vpop.eup %3392 }
 0xcc2   : > { %v2366_v47 = vsel %vm665_vm3, %v3393_v26, 0.0 }
 0xcc3   : > { %2367 = vadd.xlane.f32.xlu1 %v2366_v47 }
 0xcc6   : > { %v4557_v0 = vpop.f32.mrf.mxu1  ;;  %v2471_v36 = vpop.xlane.xlu1 %2470 }
 0xcc7   : > { %v2474_v42 = vsub.f32 %v4520_v52, %v2471_v36 }
 0xcc9   : > { %v2479_v49 = vmul.f32 1.442695, %v2474_v42 }
 0xccb   : > { %3394 = vpow2.f32 %v2479_v49  ;;  %v2058_v22 = vpop.f32.mrf.mxu3 }
 0xcce   : > { %v1943_v31 = vpop.f32.mrf.mxu1 }
 0xcd1   : > { %v3395_v63 = vpop.eup %3394 }
 0xcd2   : > { %v2487_v7 = vsel %vm665_vm3, %v3395_v63, 0.0 }
 0xcd3   : > { %2488 = vadd.xlane.f32.xlu2 %v2487_v7  ;;  %v2060_v17 = vpop.f32.mrf.mxu3 }
 0xcd4   : > { %v3198_v48 = vpack.i.bf16 %v2060_v17, %v2058_v22 }
 0xcd6   : > { %v4561_v11 = vpop.f32.mrf.mxu1 }
 0xcdc   : > { %3199 = vrot.lane.b32.xlu1 %v3198_v48, %s4733_s24 }
 0xcde   : > { %v1948_v20 = vpop.f32.mrf.mxu1 }
 0xd0c   : > { %v2063_v45 = vpop.f32.mrf.mxu3 }
 0xd0e   : > { %v2175_v19 = vpop.f32.mrf.mxu1 }
 0xd14   : > { %v2065_v10 = vpop.f32.mrf.mxu3 }
 0xd16   : > { %v2177_v4 = vpop.f32.mrf.mxu1 }
 0xd17   : > { %v3203_v52 = vpack.i.bf16 %v2177_v4, %v2175_v19  ;;  %v3417_v4 = vld [vmem:[%s4680_s2 + $0x2] ss:$0 sm:$0xff] }
 0xd19   : > { %3204 = vrot.lane.b32.xlu0 %v3203_v52, %s4734_s12 }
 0xd1c   : > { %v2292_v46 = vpop.f32.mrf.mxu3 }
 0xd1e   : > { %v2180_v40 = vpop.f32.mrf.mxu1 }
 0xd24   : > { %v2294_v21 = vpop.f32.mrf.mxu3 }
 0xd25   : > { %v3208_v59 = vpack.i.bf16 %v2294_v21, %v2292_v46 }
 0xd26   : > { %v2182_v12 = vpop.f32.mrf.mxu1 }
 0xd27   : > { %3209 = vrot.lane.b32.xlu2 %v3208_v59, %s4732_s30 }
 0xd2c   : > { %v2297_v9 = vpop.f32.mrf.mxu3 }
 0xd2e   : > { %v2413_v8 = vpop.f32.mrf.mxu1 }
 0xd2f   : > { %2580 = vrot.lane.b32.xlu2 %v2297_v9, %s4732_s30 }
 0xd34   : > { %v2299_v13 = vpop.f32.mrf.mxu3 }
 0xd36   : > { %v2368_v32 = vpop.xlane.xlu1 %2367  ;;  %v2415_v35 = vpop.f32.mrf.mxu1 }
 0xd37   : > { %3396 = vrcp.f32 %v2368_v32  ;;  %v3213_v3 = vpack.i.bf16 %v2415_v35, %v2413_v8 }
 0xd39   : > { %3214 = vrot.lane.b32.xlu0 %v3213_v3, %s4730_s25 }
 0xd3c   : > { %v2540_v54 = vpop.f32.mrf.mxu3 }
 0xd3d   : > { %v3397_v39 = vpop.eup %3396 }
 0xd3e   : > { %v2374_v50 = vmul.f32 %v3397_v39, %v3393_v26 }
 0xd40   : > { %v2377_v29 = vpack.c.bf16 %v2374_v50, %v2374_v50 }
 0xd41   : > { %2556 = vrot.lane.b32.xlu0 %v2063_v45, %s4733_s24 }
 0xd42   : > { %v2386_v5 = vunpack.c.l.b16 %v2377_v29 }
 0xd44   : > { %v2542_v18 = vpop.f32.mrf.mxu3  ;;  %v2388_v23 = vpack.c.b16 %v2386_v5, %v2386_v5 }
 0xd45   : > { %v3218_v51 = vpack.i.bf16 %v2542_v18, %v2540_v54 }
 0xd46   : > { %3066 = vmatmul.msk.bf16.gmra.mxu1 %vm658_vm15, %v2388_v23  ;;  %v2489_v24 = vpop.xlane.xlu2 %2488 }
 0xd47   : > { %3398 = vrcp.f32 %v2489_v24  ;;  %3219 = vrot.lane.b32.xlu1 %v3218_v51, %s4727_s13 }
 0xd4d   : > { %v3399_v28 = vpop.eup %3398 }
 0xd4e   : > { %v2495_v15 = vmul.f32 %v3399_v28, %v3395_v63  ;;  %v3200_v55 = vpop.permute.xlu1 %3199 }
 0xd4f   : > { %2568 = vrot.lane.b32.xlu1 %v2180_v40, %s4734_s12  ;;  %v3202_v43 = vunpack.i.h.bf16 %v3200_v55  ;;  %v3201_v61 = vunpack.i.l.bf16 %v3200_v55  ;;  %s2863_s12 = sshll.u32 %s2859_s14, 4  ;;  %s2864_s12 = int_to_ptr.hbm [resolvable:$true] %s2863_s12 }
 0xd50   : > { %v2498_v16 = vpack.c.bf16 %v2495_v15, %v2495_v15  ;;  %s3436_s0 = sshra.s32 %s2864_s12, 4  ;;  %s3437_s0 = int_to_ptr.hbm [resolvable:$true] %s3436_s0 }
 0xd51   : > { %v2610_v6 = vsel %vm624_vm13, %v1943_v31, %v3202_v43  ;;  %v2609_v44 = vsel %vm624_vm13, %v4557_v0, %v3201_v61  ;;  %s3438_s1 = scalar_lea.hbm %s3437_s0, 1  ;;  %p3443_p0 = scmp.lt.s32.totalorder %s3437_s0, %s4689_s11 }
 0xd52   : > { %v2513_v14 = vunpack.c.l.b16 %v2498_v16  ;;  %p3439_p11 = scmp.ne.s32.totalorder %s3437_s0, %s3438_s1  ;;  %p3444_p1 = scmp.lt.s32.totalorder %s3442_s29, %s3438_s1 }
 0xd54   : > { %v2515_v41 = vpack.c.b16 %v2513_v14, %v2513_v14  ;;  %p3440_p12 = pnand %p3439_p11, %p3601_p5  ;;  %p3445_p2 = por %p3444_p1, %p3443_p0 }
 0xd56   : > { %3070 = vmatmul.msk.bf16.gmra.mxu3 %vm658_vm15, %v2515_v41  ;;  %p3441_p13 = pneg %p3440_p12 }
 0xd58   : > { %p3446_p3 = pnand %p3445_p2, %p3441_p13 }
 0xd81   : > { %v3210_v34 = vpop.permute.xlu2 %3209 }
 0xd82   : > { %v3212_v62 = vunpack.i.h.bf16 %v3210_v34  ;;  %v3211_v58 = vunpack.i.l.bf16 %v3210_v34 }
 0xd89   : > { %v2581_v35 = vpop.permute.xlu2 %2580 }
 0xd8b   : > { %v3205_v56 = vpop.permute.xlu0 %3204 }
 0xd8c   : > { %v3207_v53 = vunpack.i.h.bf16 %v3205_v56  ;;  %v3206_v2 = vunpack.i.l.bf16 %v3205_v56 }
 0xd8e   : > { %v2612_v33 = vsel %vm1401_vm4, %v2609_v44, %v3206_v2  ;;  %v2613_v37 = vsel %vm1401_vm4, %v2610_v6, %v3207_v53 }
 0xd8f   : > { %v2615_v47 = vsel %vm1405_vm5, %v2612_v33, %v3211_v58  ;;  %v2616_v36 = vsel %vm1405_vm5, %v2613_v37, %v3212_v62 }
 0xdab   : > { %v3215_v57 = vpop.permute.xlu0 %3214 }
 0xdac   : > { %v3217_v27 = vunpack.i.h.bf16 %v3215_v57  ;;  %v3216_v60 = vunpack.i.l.bf16 %v3215_v57 }
 0xdae   : > { %v2618_v22 = vsel %vm421_vm0, %v2615_v47, %v3216_v60  ;;  %v2619_v31 = vsel %vm421_vm0, %v2616_v36, %v3217_v27 }
 0xdb3   : > { %v2557_v46 = vpop.permute.xlu0 %2556 }
 0xdb4   : > { %v2611_v9 = vsel %vm624_vm13, %v4561_v11, %v2557_v46 }
 0xdb9   : > { %v3220_v26 = vpop.permute.xlu1 %3219 }
 0xdba   : > { %v3222_v42 = vunpack.i.h.bf16 %v3220_v26  ;;  %v3221_v49 = vunpack.i.l.bf16 %v3220_v26 }
 0xdbc   : > { %v2622_v0 = vsel %vm1412_vm6, %v2619_v31, %v3222_v42  ;;  %v2621_v63 = vsel %vm1412_vm6, %v2618_v22, %v3221_v49 }
 0xdbd   : > { %v2624_v7 = vpack.c.bf16 %v2622_v0, %v2621_v63 }
 0xdbf   : > { %3071 = vmatmul.msk.bf16.vlgmr.msra.gmra.mxu0 %vm446_vm1, %v2624_v7 }
 0xdc1   : > { %v2569_v21 = vpop.permute.xlu1 %2568 }
 0xdc3   : > { %v2418_v17 = vpop.f32.mrf.mxu1 }
 0xdc4   : > { %2592 = vrot.lane.b32.xlu0 %v2418_v17, %s4730_s25 }
 0xdcb   : > { %v2420_v48 = vpop.f32.mrf.mxu1 }
 0xdd9   : > { %v2545_v20 = vpop.f32.mrf.mxu3 }
 0xdda   : > { %2604 = vrot.lane.b32.xlu1 %v2545_v20, %s4727_s13  ;;  %v3418_v20 = vld [vmem:[%s4680_s2 + $0x3] ss:$0 sm:$0xff]  ;;  %s378_s13 = scalar_lea.vmem [#allocation2], %s377_s16 }
 0xddb   : > { %s2861_s25 = sshll.u32 %s378_s13, 4  ;;  %s2862_s25 = int_to_ptr.vmem [resolvable:$true] %s2861_s25 }
 0xde1   : > { %v2547_v45 = vpop.f32.mrf.mxu3 }
 0xe36   : > { %v2593_v13 = vpop.permute.xlu0 %2592 }
 0xe3c   : > { %v2641_v19 = vpop.f32.mrf.mxu0 }
 0xe3d   : > { %v2650_v10 = vadd.f32 %v2641_v19, %v4203_v30  ;;  %v2614_v30 = vsel %vm1401_vm4, %v2611_v9, %v2569_v21 }
 0xe3e   : > { %v2617_v3 = vsel %vm1405_vm5, %v2614_v30, %v2581_v35 }
 0xe3f   : > { %v4591_v52 = vadd.f32 %v3417_v4, %v2650_v10  ;;  %v2620_v54 = vsel %vm421_vm0, %v2617_v3, %v2593_v13 }
 0xe41   : > { %v2656_v40 = vsel %vm446_vm1, %v4591_v52, 0.0 }
 0xe42   : > { %2657 = vadd.xlane.f32.xlu2 %v2656_v40 }
 0xe44   : > { %v2643_v59 = vpop.f32.mrf.mxu0 }
 0xe45   : > { %v2651_v12 = vadd.f32 %v2643_v59, %v4208_v1 }
 0xe47   : > { %v2654_v8 = vadd.f32 %v3417_v4, %v2651_v12 }
 0xe49   : > { %v2659_v32 = vsel %vm446_vm1, %v2654_v8, 0.0 }
 0xe4a   : > { %2660 = vadd.xlane.f32.xlu0 %v2659_v32 }
 0xe4c   : > { %v2605_v39 = vpop.permute.xlu1 %2604 }
 0xe4d   : > { %v2623_v50 = vsel %vm1412_vm6, %v2620_v54, %v2605_v39  ;;  %v3420_v39 = vld [vmem:[%s4685_s7] ss:$0 sm:$0xff] }
 0xe4e   : > { %v2625_v29 = vpack.c.bf16 %v2623_v50, %v2623_v50 }
 0xe50   : > { %3072 = vmatmul.msk.bf16.gmra.mxu0 %vm446_vm1, %v2625_v29 }
 0xeb5   : > { %v2658_v1 = vpop.xlane.xlu2 %2657 }
 0xeb6   : > { %v2665_v11 = vmul.f32 %v2658_v1, %v3645_v25 }
 0xeb8   : > { %v2668_v5 = vsub.f32 %v4591_v52, %v2665_v11 }
 0xeba   : > { %v2671_v18 = vmul.f32 %v2668_v5, %v2668_v5 }
 0xebc   : > { %v2674_v23 = vsel %vm446_vm1, %v2671_v18, 0.0 }
 0xebd   : > { %v2661_v51 = vpop.xlane.xlu0 %2660  ;;  %2675 = vadd.xlane.f32.xlu1 %v2674_v23 }
 0xebe   : > { %v2666_v24 = vmul.f32 %v2661_v51, %v3645_v25 }
 0xec0   : > { %v2669_v28 = vsub.f32 %v2654_v8, %v2666_v24 }
 0xec2   : > { %v2672_v15 = vmul.f32 %v2669_v28, %v2669_v28 }
 0xec4   : > { %v2677_v16 = vsel %vm446_vm1, %v2672_v15, 0.0 }
 0xec5   : > { %2678 = vadd.xlane.f32.xlu2 %v2677_v16 }
 0xecd   : > { %v2646_v14 = vpop.f32.mrf.mxu0 }
 0xece   : > { %v2652_v41 = vadd.f32 %v2646_v14, %v4213_v38 }
 0xed0   : > { %v2655_v56 = vadd.f32 %v3417_v4, %v2652_v41  ;;  %v3419_v4 = vld [vmem:[%s4680_s2 + $0x4] ss:$0 sm:$0xff] }
 0xed2   : > { %v2662_v55 = vsel %vm453_vm2, %v2655_v56, 0.0 }
 0xed3   : > { %2663 = vadd.xlane.f32.xlu0 %v2662_v55 }
 0xed5   : > { %v2648_v43 = vpop.f32.mrf.mxu0 }
 0xf30   : > { %v2676_v61 = vpop.xlane.xlu1 %2675 }
 0xf31   : > { %v2683_v53 = vmul.f32 %v2676_v61, %v3645_v25 }
 0xf33   : > { %v2686_v2 = vadd.f32 1e-06, %v2683_v53 }
 0xf35   : > { %3400 = vrsqrt.f32 %v2686_v2  ;;  %vm2695_vm13 = vweird.f32 %v2686_v2 }
 0xf38   : > { %v2679_v57 = vpop.xlane.xlu2 %2678 }
 0xf39   : > { %v2684_v34 = vmul.f32 %v2679_v57, %v3645_v25 }
 0xf3b   : > { %v3401_v6 = vpop.eup %3400  ;;  %v2687_v44 = vadd.f32 1e-06, %v2684_v34 }
 0xf3c   : > { %v2690_v33 = vmul.f32 %v3401_v6, %v2686_v2  ;;  %vm2696_vm0 = vweird.f32 %v3401_v6 }
 0xf3d   : > { %3402 = vrsqrt.f32 %v2687_v44  ;;  %vm2697_vm15 = vmor %vm2695_vm13, %vm2696_vm0  ;;  %vm2705_vm4 = vweird.f32 %v2687_v44 }
 0xf3e   : > { %v2691_v37 = vmul.f32 %v3401_v6, %v2690_v33 }
 0xf40   : > { %v2692_v27 = vmul.f32 0.5, %v2691_v37 }
 0xf42   : > { %v2693_v38 = vsub.f32 1.5, %v2692_v27  ;;  %v3115_v27 = vld [vmem:[%s4687_s9 + $0x10] sm:$0xff] }
 0xf43   : > { %v3403_v60 = vpop.eup %3402  ;;  %2841 = vmatpush.bf16.msra.mxu3 %v3115_v27 }
 0xf44   : > { %v2694_v62 = vmul.f32 %v3401_v6, %v2693_v38  ;;  %v2700_v58 = vmul.f32 %v3403_v60, %v2687_v44  ;;  %vm2706_vm3 = vweird.f32 %v3403_v60  ;;  %v3114_v38 = vld [vmem:[%s4687_s9 + $0x8] sm:$0xff] }
 0xf45   : > { %vm2707_vm5 = vmor %vm2705_vm4, %vm2706_vm3 }
 0xf46   : > { %v2701_v26 = vmul.f32 %v3403_v60, %v2700_v58  ;;  %v2664_v47 = vpop.xlane.xlu0 %2663  ;;  %v2698_v42 = vsel %vm2697_vm15, %v3401_v6, %v2694_v62  ;;  %v3113_v62 = vld [vmem:[%s4687_s9] sm:$0xff] }
 0xf47   : > { %v2667_v36 = vmul.f32 %v2664_v47, %v3645_v25  ;;  %v2719_v0 = vmul.f32 %v2698_v42, %v2668_v5  ;;  %2842 = vmatpush.bf16.msra.mxu3 %v3114_v38 }
 0xf48   : > { %v2702_v49 = vmul.f32 0.5, %v2701_v26 }
 0xf49   : > { %v2670_v22 = vsub.f32 %v2655_v56, %v2667_v36  ;;  %v2722_v45 = vmul.f32 %v3418_v20, %v2719_v0 }
 0xf4a   : > { %v2703_v31 = vsub.f32 1.5, %v2702_v49 }
 0xf4b   : > { %v2673_v63 = vmul.f32 %v2670_v22, %v2670_v22  ;;  %v2725_v46 = vadd.f32 %v3419_v4, %v2722_v45  ;;  %2843 = vmatpush.bf16.msra.mxu3 %v3113_v62  ;;  %v3421_v45 = vld [vmem:[%s4680_s2 + $0x5] ss:$0 sm:$0xff] }
 0xf4c   : > { %v2704_v7 = vmul.f32 %v3403_v60, %v2703_v31 }
 0xf4d   : > { %v2680_v17 = vsel %vm453_vm2, %v2673_v63, 0.0 }
 0xf4e   : > { %v2708_v48 = vsel %vm2707_vm5, %v3403_v60, %v2704_v7  ;;  %2681 = vadd.xlane.f32.xlu1 %v2680_v17 }
 0xf4f   : > { %v2720_v19 = vmul.f32 %v2708_v48, %v2669_v28 }
 0xf51   : > { %v2723_v10 = vmul.f32 %v3418_v20, %v2720_v19 }
 0xf53   : > { %v2726_v40 = vadd.f32 %v3419_v4, %v2723_v10 }
 0xf55   : > { %v2728_v21 = vpack.c.bf16 %v2726_v40, %v2725_v46 }
 0xf57   : > { %3073 = vmatmul.msk.bf16.vlgmr.msra.gmra.mxu1 %vm446_vm1, %v2728_v21 }
 0xfc1   : > { %v2682_v59 = vpop.xlane.xlu1 %2681 }
 0xfc2   : > { %v2685_v12 = vmul.f32 %v2682_v59, %v3645_v25 }
 0xfc4   : > { %v2688_v9 = vadd.f32 1e-06, %v2685_v12 }
 0xfc6   : > { %3404 = vrsqrt.f32 %v2688_v9  ;;  %vm2715_vm6 = vweird.f32 %v2688_v9 }
 0xfcc   : > { %v3405_v8 = vpop.eup %3404 }
 0xfcd   : > { %v2710_v30 = vmul.f32 %v3405_v8, %v2688_v9  ;;  %vm2716_vm2 = vweird.f32 %v3405_v8 }
 0xfce   : > { %vm2717_vm14 = vmor %vm2715_vm6, %vm2716_vm2 }
 0xfcf   : > { %v2711_v13 = vmul.f32 %v3405_v8, %v2710_v30 }
 0xfd1   : > { %v2712_v32 = vmul.f32 0.5, %v2711_v13 }
 0xfd3   : > { %v2713_v35 = vsub.f32 1.5, %v2712_v32 }
 0xfd4   : > { %v2745_v3 = vpop.f32.mrf.mxu1 }
 0xfd5   : > { %v2714_v54 = vmul.f32 %v3405_v8, %v2713_v35  ;;  %v2746_v50 = vadd.f32 %v3420_v39, %v2745_v3 }
 0xfd7   : > { %v2718_v29 = vsel %vm2717_vm14, %v3405_v8, %v2714_v54  ;;  %v2757_v1 = vmul.f32 0.044715, %v2746_v50  ;;  %v2754_v57 = vmul.f32 0.5, %v2746_v50 }
 0xfd8   : > { %v2721_v25 = vmul.f32 %v2718_v29, %v2670_v22 }
 0xfd9   : > { %v2760_v11 = vmul.f32 %v2757_v1, %v2746_v50 }
 0xfda   : > { %v2724_v5 = vmul.f32 %v3418_v20, %v2721_v25 }
 0xfdb   : > { %v2763_v18 = vmul.f32 %v2760_v11, %v2746_v50 }
 0xfdc   : > { %v2747_v23 = vpop.f32.mrf.mxu1  ;;  %v2727_v51 = vadd.f32 %v3419_v4, %v2724_v5 }
 0xfdd   : > { %v2766_v24 = vadd.f32 %v2763_v18, %v2746_v50  ;;  %v2748_v28 = vadd.f32 %v3420_v39, %v2747_v23 }
 0xfde   : > { %v2729_v15 = vpack.c.bf16 %v2727_v51, %v2727_v51 }
 0xfdf   : > { %v2758_v16 = vmul.f32 0.044715, %v2748_v28  ;;  %v2769_v14 = vmul.f32 0.7978846, %v2766_v24  ;;  %v2755_v34 = vmul.f32 0.5, %v2748_v28 }
 0xfe0   : > { %3074 = vmatmul.msk.bf16.gmra.mxu1 %vm446_vm1, %v2729_v15 }
 0xfe1   : > { %v2761_v41 = vmul.f32 %v2758_v16, %v2748_v28  ;;  %3406 = vtanh.f32 %v2769_v14 }
 0xfe3   : > { %v2764_v56 = vmul.f32 %v2761_v41, %v2748_v28 }
 0xfe5   : > { %v2767_v55 = vadd.f32 %v2764_v56, %v2748_v28 }
 0xfe7   : > { %v2770_v43 = vmul.f32 0.7978846, %v2767_v55  ;;  %v3407_v61 = vpop.eup %3406 }
 0xfe8   : > { %v2775_v53 = vadd.f32 1.0, %v3407_v61 }
 0xfe9   : > { %3408 = vtanh.f32 %v2770_v43 }
 0xfea   : > { %v2778_v44 = vmul.f32 %v2775_v53, %v2754_v57 }
 0xfef   : > { %v3409_v2 = vpop.eup %3408 }
 0xff0   : > { %v2776_v6 = vadd.f32 1.0, %v3409_v2 }
 0xff2   : > { %v2779_v33 = vmul.f32 %v2776_v6, %v2755_v34 }
 0xff4   : > { %v2781_v37 = vpack.c.bf16 %v2779_v33, %v2778_v44 }
 0xff6   : > { %3075 = vmatmul.msk.bf16.vlgmr.msra.gmra.mxu2 %vm1678_vm9, %v2781_v37 }
0x105d   : > { %v2750_v60 = vpop.f32.mrf.mxu1 }
0x105e   : > { %v2751_v58 = vadd.f32 %v3420_v39, %v2750_v60 }
0x1060   : > { %v2759_v26 = vmul.f32 0.044715, %v2751_v58  ;;  %v2756_v0 = vmul.f32 0.5, %v2751_v58 }
0x1062   : > { %v2762_v47 = vmul.f32 %v2759_v26, %v2751_v58 }
0x1064   : > { %v2765_v36 = vmul.f32 %v2762_v47, %v2751_v58 }
0x1065   : > { %v2752_v42 = vpop.f32.mrf.mxu1 }
0x1066   : > { %v2768_v49 = vadd.f32 %v2765_v36, %v2751_v58 }
0x1068   : > { %v2771_v22 = vmul.f32 0.7978846, %v2768_v49 }
0x106a   : > { %3410 = vtanh.f32 %v2771_v22 }
0x1070   : > { %v3411_v31 = vpop.eup %3410 }
0x1071   : > { %v2777_v63 = vadd.f32 1.0, %v3411_v31 }
0x1073   : > { %v2780_v7 = vmul.f32 %v2777_v63, %v2756_v0 }
0x1075   : > { %v2782_v17 = vpack.c.bf16 %v2780_v7, %v2780_v7 }
0x1077   : > { %3076 = vmatmul.msk.bf16.gmra.mxu2 %vm1678_vm9, %v2782_v17 }
0x1079   : > { %v2798_v48 = vpop.f32.mrf.mxu2 }
0x107a   : > { %v2805_v20 = vadd.f32 %v2798_v48, %v4591_v52  ;;  %v2814_v52 = vld [vmem:[%s4688_s10] sm:$0x1] }
0x107c   : > { %v2806_v19 = vadd.f32 %v3421_v45, %v2805_v20 }
0x107e   : > { %v2807_v10 = vpack.c.bf16 %v2806_v19, %v2806_v19 }
0x1080   : > { %3089 = vmatmul.msk.bf16.vlgmr.msra.gmra.mxu3 %vm446_vm1, %v2807_v10 }
0x1081   : > { %v2800_v4 = vpop.f32.mrf.mxu2 }
0x10fa   : > { %v2802_v46 = vpop.f32.mrf.mxu2 }
0x1102   : > { %v2803_v40 = vpop.f32.mrf.mxu2 }
0x1103   : > { %v2845_v21 = vpop.f32.mrf.mxu3 }
0x1104   : > { %v2846_v59 = vadd.f32 %v2845_v21, %v2814_v52 }
0x1106   : > { %2849 = vst [vmem:[%s378_s13] sm:$0x1] %v2846_v59 }
0x1107   : > { %3449 = shalt.err (!%p3446_p3)
}
0x1108   : > { %3117 = dma.vmem_to_hbm [thread:$0]  (%p3601_p5), %s2862_s25, 16, %s2864_s12, %s2851_s15  }
0x110b   : > { %v2847_v12 = vpop.f32.mrf.mxu3 }
0x110c PF: > { %p3123_p4 = scmp.ge.s32.totalorder %s3484_s20, 2  ;;  %s2875_s16 = sand.u32 1, %s3472_s17  }
0x110d   : > { %s2876_s24 = scalar_lea.sflag [#allocation3], %s2875_s16 }
0x110e   : > { %p3120_p7 = pnand %p3123_p4, %p3605_p6 }
0x1110   : > { %p3121_p8 = pneg %p3120_p7 }
0x1112   : > { %3467 = dma.done.wait (%p3121_p8), %s2876_s24, 16  }
0x1113   : > { %3469 = vsyncadd (%p3121_p8), %s2876_s24, 4294967280  ;;  %p21_p9 = scmp.ge.s32.totalorder %s3588_s23, 4   ;;  %s4735_s17 = smov %s3476_s18 }
0x1114   : > { %s4736_s18 = smov %s3480_s19  ;;  %s4737_s19 = smov %s3599_s26 }
0x1115   : > { %s4738_s20 = smov %s3588_s23  ;;  %23 = sbr.rel (!%p21_p9) target bundleno = 6 (0x6), region = 99 }
0x111a   :  { %2881 = vsyncpa [#allocation3], 1 }
0x111b   :  { %2883 = vsyncpa [#allocation3 + $0x1], 1 }

</bundles_post_ra>
